<compile_context>
chip_gen: v7x
topology: tpu7x:2x2x1
jax: 0.10.0
libtpu: 0.0.40
codegen_flags: <defaults>
</compile_context>

<pallas_src>
import functools

import jax
import jax.numpy as jnp
from jax import lax
from jax.experimental import pallas as pl
from jax.experimental.pallas import tpu as pltpu

N_CLASSES = 21

# Lane layout of the fused head-weight matrix (hidden, 128):
#   [0:4)   prd bbox head          [4:8)   RCNN bbox head
#   [8:29)  cls head (21)          [29:50) act head (21)
#   [50:71) RCNN cls head (21)     [71:128) zero padding
PRD_OFF = 0
RBOX_OFF = 4
CLS_OFF = 8
ACT_OFF = CLS_OFF + N_CLASSES
RCLS_OFF = ACT_OFF + N_CLASSES
HEAD_LANES = 128


def _tubenet_kernel(nvalid_ref, frames_ref, labels_ref, bboxes_ref,
                    w1_ref, wh_ref, out_ref, *, inv_t, inv_t4):
    """One block of C_BLK*T = 128 (clip, frame) rows.

    nvalid_ref : SMEM (1,)  int32   number of valid rows (= n_proc * T)
    frames_ref : (M, F)     bf16    flattened frame features
    labels_ref : (M, 1)     int32   per-frame class labels
    bboxes_ref : (M, 4)     f32     per-frame gt boxes
    w1_ref     : (F, H)     bf16    backbone surrogate weight
    wh_ref     : (H, 128)   f32     fused head weights (lane layout above)
    out_ref    : (1,1,128)  f32     per-block loss row, lanes 0..4 =
                                    (cls, prd, act, RCNN_cls, RCNN_bbox) sums
    """
    m_rows = frames_ref.shape[0]

    frames = frames_ref[...]                       # (M, F) bf16
    labels = labels_ref[...]                       # (M, 1) int32
    bboxes = bboxes_ref[...]                       # (M, 4) f32

    # Row-validity mask: covers both the clip_num cutoff and the row padding.
    row = lax.broadcasted_iota(jnp.int32, (m_rows, 1), 0)
    row_valid = ((pl.program_id(0) * m_rows + row) < nvalid_ref[0]
                 ).astype(jnp.float32)             # (M, 1)

    # Backbone surrogate: bf16 MXU matmul, f32 accumulate, ReLU.
    feats = jnp.maximum(
        jnp.dot(frames, w1_ref[...], preferred_element_type=jnp.float32), 0.0)

    # Single fused, lane-dense head matmul -> (M, 128) logits.
    logits = jnp.dot(feats, wh_ref[...], preferred_element_type=jnp.float32)

    lane = lax.broadcasted_iota(jnp.int32, (1, HEAD_LANES), 1)

    def ce_head(start):
        # Masked, numerically-stable softmax CE over this head's 21 lanes.
        lmask = (lane >= start) & (lane < start + N_CLASSES)
        z = jnp.where(lmask, logits, jnp.float32(-1e30))
        m = jnp.max(z, axis=-1, keepdims=True)
        ez = jnp.where(lmask, jnp.exp(z - m), 0.0)
        lse = jnp.log(jnp.sum(ez, axis=-1, keepdims=True))
        tgt = lane == (start + labels)                               # (M,128)
        logp_t = jnp.sum(jnp.where(tgt, z - m - lse, 0.0),
                         axis=-1, keepdims=True)                     # (M,1)
        # sum over clips of per-clip means over T frames
        return jnp.sum(-logp_t * row_valid, axis=0, keepdims=True) * inv_t

    def box_head(start):
        pred = logits[:, start:start + 4]                            # (M,4)
        sse = jnp.sum((pred - bboxes) ** 2, axis=-1, keepdims=True)  # (M,1)
        return jnp.sum(sse * row_valid, axis=0, keepdims=True) * inv_t4

    l_prd = box_head(PRD_OFF)
    l_rbox = box_head(RBOX_OFF)
    l_cls = ce_head(CLS_OFF)
    l_act = ce_head(ACT_OFF)
    l_rcls = ce_head(RCLS_OFF)

    # Pack the five (1,1) block-sums into lanes 0..4 of this block's row.
    out_ref[0] = (jnp.where(lane == 0, l_cls, 0.0)
                  + jnp.where(lane == 1, l_prd, 0.0)
                  + jnp.where(lane == 2, l_act, 0.0)
                  + jnp.where(lane == 3, l_rcls, 0.0)
                  + jnp.where(lane == 4, l_rbox, 0.0))


def init_params(key, feat_dim, hidden):
    ks = jax.random.split(key, 6)
    s1 = 1.0 / jnp.sqrt(jnp.float32(feat_dim))
    s2 = 1.0 / jnp.sqrt(jnp.float32(hidden))
    w1 = jax.random.normal(ks[0], (feat_dim, hidden), jnp.float32) * s1
    wcls = jax.random.normal(ks[1], (hidden, N_CLASSES), jnp.float32) * s2
    wprd = jax.random.normal(ks[2], (hidden, 4), jnp.float32) * s2
    wact = jax.random.normal(ks[3], (hidden, N_CLASSES), jnp.float32) * s2
    wrcls = jax.random.normal(ks[4], (hidden, N_CLASSES), jnp.float32) * s2
    wrbox = jax.random.normal(ks[5], (hidden, 4), jnp.float32) * s2
    return (w1, wcls, wprd, wact, wrcls, wrbox)


def tubenet_forward(clips_frames, clips_bboxes, clips_indice, clips_labels,
                    clip_num, params):
    """Returns (cls_los/count, prd_los/count, act_los/count,
                RCNN_loss_cls/count, RCNN_loss_bbox/count)."""
    del clips_indice  # unused by TubeNet.forward
    B, n_clips, T, H, W, C = clips_frames.shape
    assert B == 1, "TubeNet.forward assumes batch size 1"
    feat_dim = H * W * C

    w1, wcls, wprd, wact, wrcls, wrbox = params
    hidden = w1.shape[1]

    # Fused lane-dense head weights (hidden, 128); layout documented above.
    pad_lanes = HEAD_LANES - (4 + 4 + 3 * N_CLASSES)
    w_heads = jnp.concatenate(
        [wprd.astype(jnp.float32), wrbox.astype(jnp.float32),
         wcls.astype(jnp.float32), wact.astype(jnp.float32),
         wrcls.astype(jnp.float32),
         jnp.zeros((hidden, pad_lanes), jnp.float32)], axis=1)

    # Flatten (clip, frame) -> rows and pad rows to a multiple of 128.
    R = n_clips * T
    M_BLK = 128
    n_blocks = pl.cdiv(R, M_BLK)
    pad = n_blocks * M_BLK - R

    frames_rows = clips_frames[0].reshape(R, feat_dim).astype(jnp.bfloat16)
    labels_rows = clips_labels[0].reshape(R, 1).astype(jnp.int32)
    bboxes_rows = clips_bboxes[0].reshape(R, 4).astype(jnp.float32)
    if pad:
        frames_rows = jnp.pad(frames_rows, ((0, pad), (0, 0)))
        labels_rows = jnp.pad(labels_rows, ((0, pad), (0, 0)))
        bboxes_rows = jnp.pad(bboxes_rows, ((0, pad), (0, 0)))

    # PyTorch loop breaks AFTER processing clip `clip_num`, so clips
    # 0..min(n_clips-1, clip_num) are processed and count = last clip index.
    # (count == 0 would divide by zero exactly like the original code.)
    n_proc = jnp.minimum(jnp.asarray(n_clips, jnp.int32),
                         jnp.asarray(clip_num, jnp.int32) + 1)
    count = (n_proc - 1).astype(jnp.float32)
    n_valid_rows = (n_proc * T).astype(jnp.int32).reshape(1)   # SMEM scalar

    kernel = functools.partial(_tubenet_kernel,
                               inv_t=1.0 / T, inv_t4=1.0 / (T * 4))

    out = pl.pallas_call(
        kernel,
        out_shape=jax.ShapeDtypeStruct((n_blocks, 1, HEAD_LANES), jnp.float32),
        grid_spec=pltpu.PrefetchScalarGridSpec(
            num_scalar_prefetch=1,
            grid=(n_blocks,),
            in_specs=[
                pl.BlockSpec((M_BLK, feat_dim), lambda i, nv: (i, 0)),   # frames
                pl.BlockSpec((M_BLK, 1), lambda i, nv: (i, 0)),          # labels
                pl.BlockSpec((M_BLK, 4), lambda i, nv: (i, 0)),          # bboxes
                pl.BlockSpec((feat_dim, hidden), lambda i, nv: (0, 0)),  # w1
                pl.BlockSpec((hidden, HEAD_LANES), lambda i, nv: (0, 0)),# heads
            ],
            out_specs=pl.BlockSpec((1, 1, HEAD_LANES),
                                   lambda i, nv: (i, 0, 0)),
        ),
        compiler_params=pltpu.CompilerParams(
            dimension_semantics=("parallel",)),   # independent blocks (v7x megacore)
    )(n_valid_rows, frames_rows, labels_rows, bboxes_rows,
      w1.astype(jnp.bfloat16), w_heads)

    tot = jnp.sum(out[:, 0, :], axis=0)          # (128,) summed block rows
    inv_count = 1.0 / count
    return (tot[0] * inv_count, tot[1] * inv_count, tot[2] * inv_count,
            tot[3] * inv_count, tot[4] * inv_count)


if __name__ == "__main__":
    key = jax.random.PRNGKey(0)
    k_frames, k_bbox, k_idx, k_lbl, k_par = jax.random.split(key, 5)

    # Small shapes consistent with the module's (1, n_clips, T, H, W, 3) layout.
    B, n_clips, T, H, W, C = 1, 6, 8, 16, 16, 3
    clip_num = 4   # processes clips 0..4, count = 4

    clips_frames = jax.random.uniform(
        k_frames, (B, n_clips, T, H, W, C), jnp.float32)
    clips_bboxes = jax.random.uniform(
        k_bbox, (B, n_clips, T, 4), jnp.float32) * 16.0
    clips_indice = jax.random.randint(
        k_idx, (B, n_clips, T, 2), 0, T, jnp.int32)
    clips_labels = jax.random.randint(
        k_lbl, (B, n_clips, T), 0, N_CLASSES, jnp.int32)

    params = init_params(k_par, H * W * C, 32)

    losses = tubenet_forward(clips_frames, clips_bboxes, clips_indice,
                             clips_labels, clip_num, params)
    losses = jax.block_until_ready(losses)

    names = ("cls_los", "prd_los", "act_los", "RCNN_loss_cls",
             "RCNN_loss_bbox")
    for nm, v in zip(names, losses):
        assert jnp.isfinite(v), f"non-finite loss {nm}"
    print("KERNEL_OK")
</pallas_src>

<mosaic_0001>
module attributes {stable_mosaic.version = 11 : i64} {
  func.func @_tubenet_kernel(%arg0: i32, %arg1: memref<1xi32, #tpu.memory_space<smem>>, %arg2: memref<128x768xbf16, #tpu.memory_space<vmem>>, %arg3: memref<128x1xi32, #tpu.memory_space<vmem>>, %arg4: memref<128x4xf32, #tpu.memory_space<vmem>>, %arg5: memref<768x32xbf16, #tpu.memory_space<vmem>>, %arg6: memref<32x128xf32, #tpu.memory_space<vmem>>, %arg7: memref<1x1x128xf32, #tpu.memory_space<vmem>>) attributes {dimension_semantics = [#tpu.dimension_semantics<parallel>], iteration_bounds = array<i64: 1>, scalar_prefetch = 1 : i64, scratch_operands = 0 : i64, tpu.core_type = #tpu.core_type<tc>, window_params = [{transform_indices = @transform_0, window_bounds = array<i64: 128, 768>}, {transform_indices = @transform_1, window_bounds = array<i64: 128, 1>}, {transform_indices = @transform_2, window_bounds = array<i64: 128, 4>}, {pipeline_mode = #tpu.pipeline_mode<synchronous>, transform_indices = @transform_3, window_bounds = array<i64: 768, 32>}, {pipeline_mode = #tpu.pipeline_mode<synchronous>, transform_indices = @transform_4, window_bounds = array<i64: 32, 128>}, {transform_indices = @transform_5, window_bounds = array<i64: 1, 1, 128>}]} {
    %c0 = arith.constant 0 : index
    %c0_0 = arith.constant 0 : index
    %0 = vector.load %arg2[%c0, %c0_0] : memref<128x768xbf16, #tpu.memory_space<vmem>>, vector<128x768xbf16>
    %c0_1 = arith.constant 0 : index
    %c0_2 = arith.constant 0 : index
    %1 = vector.load %arg3[%c0_1, %c0_2] : memref<128x1xi32, #tpu.memory_space<vmem>>, vector<128x1xi32>
    %c0_3 = arith.constant 0 : index
    %c0_4 = arith.constant 0 : index
    %2 = vector.load %arg4[%c0_3, %c0_4] : memref<128x4xf32, #tpu.memory_space<vmem>>, vector<128x4xf32>
    %3 = tpu.iota {dimensions = array<i32: 0>} : vector<128x1xi32>
    %c128_i32 = arith.constant 128 : i32
    %4 = arith.muli %arg0, %c128_i32 : i32
    %5 = vector.broadcast %4 : i32 to vector<128x1xi32>
    %6 = arith.addi %5, %3 : vector<128x1xi32>
    %c0_5 = arith.constant 0 : index
    %7 = memref.load %arg1[%c0_5] : memref<1xi32, #tpu.memory_space<smem>>
    %8 = vector.broadcast %7 : i32 to vector<128x1xi32>
    %9 = arith.cmpi slt, %6, %8 : vector<128x1xi32>
    %10 = arith.extui %9 : vector<128x1xi1> to vector<128x1xi32>
    %11 = arith.sitofp %10 : vector<128x1xi32> to vector<128x1xf32>
    %c0_6 = arith.constant 0 : index
    %c0_7 = arith.constant 0 : index
    %12 = vector.load %arg5[%c0_6, %c0_7] : memref<768x32xbf16, #tpu.memory_space<vmem>>, vector<768x32xbf16>
    %cst = arith.constant dense<0.000000e+00> : vector<128x32xf32>
    %13 = tpu.matmul %0, %12, %cst {dimension_numbers = #tpu.dot_dimension_numbers<[1], [0], [0], [1], [0, 0, 1, 1], [], []>} : vector<128x768xbf16>, vector<768x32xbf16>, vector<128x32xf32> -> vector<128x32xf32>
    %cst_8 = arith.constant 0.000000e+00 : f32
    %14 = vector.broadcast %cst_8 : f32 to vector<128x32xf32>
    %15 = arith.maximumf %13, %14 : vector<128x32xf32>
    %c0_9 = arith.constant 0 : index
    %c0_10 = arith.constant 0 : index
    %16 = vector.load %arg6[%c0_9, %c0_10] : memref<32x128xf32, #tpu.memory_space<vmem>>, vector<32x128xf32>
    %cst_11 = arith.constant dense<0.000000e+00> : vector<128x128xf32>
    %17 = tpu.matmul %15, %16, %cst_11 {dimension_numbers = #tpu.dot_dimension_numbers<[1], [0], [0], [1], [0, 0, 1, 1], [], []>} : vector<128x32xf32>, vector<32x128xf32>, vector<128x128xf32> -> vector<128x128xf32>
    %18 = tpu.iota {dimensions = array<i32: 1>} : vector<1x128xi32>
    %19 = vector.extract_strided_slice %17 {offsets = [0, 0], sizes = [128, 4], strides = [1, 1]} : vector<128x128xf32> to vector<128x4xf32>
    %20 = arith.subf %19, %2 : vector<128x4xf32>
    %21 = arith.mulf %20, %20 : vector<128x4xf32>
    %cst_12 = arith.constant dense<0.000000e+00> : vector<128xf32>
    %22 = vector.multi_reduction <add>, %21, %cst_12 [1] : vector<128x4xf32> to vector<128xf32>
    %23 = vector.shape_cast %22 : vector<128xf32> to vector<128x1xf32>
    %24 = arith.mulf %23, %11 : vector<128x1xf32>
    %cst_13 = arith.constant dense<0.000000e+00> : vector<1xf32>
    %25 = vector.multi_reduction <add>, %24, %cst_13 [0] : vector<128x1xf32> to vector<1xf32>
    %26 = vector.shape_cast %25 : vector<1xf32> to vector<1x1xf32>
    %cst_14 = arith.constant 3.125000e-02 : f32
    %27 = vector.broadcast %cst_14 : f32 to vector<1x1xf32>
    %28 = arith.mulf %26, %27 : vector<1x1xf32>
    %29 = vector.extract_strided_slice %17 {offsets = [0, 4], sizes = [128, 4], strides = [1, 1]} : vector<128x128xf32> to vector<128x4xf32>
    %30 = arith.subf %29, %2 : vector<128x4xf32>
    %31 = arith.mulf %30, %30 : vector<128x4xf32>
    %cst_15 = arith.constant dense<0.000000e+00> : vector<128xf32>
    %32 = vector.multi_reduction <add>, %31, %cst_15 [1] : vector<128x4xf32> to vector<128xf32>
    %33 = vector.shape_cast %32 : vector<128xf32> to vector<128x1xf32>
    %34 = arith.mulf %33, %11 : vector<128x1xf32>
    %cst_16 = arith.constant dense<0.000000e+00> : vector<1xf32>
    %35 = vector.multi_reduction <add>, %34, %cst_16 [0] : vector<128x1xf32> to vector<1xf32>
    %36 = vector.shape_cast %35 : vector<1xf32> to vector<1x1xf32>
    %cst_17 = arith.constant 3.125000e-02 : f32
    %37 = vector.broadcast %cst_17 : f32 to vector<1x1xf32>
    %38 = arith.mulf %36, %37 : vector<1x1xf32>
    %c8_i32 = arith.constant 8 : i32
    %39 = vector.broadcast %c8_i32 : i32 to vector<1x128xi32>
    %40 = arith.cmpi sge, %18, %39 : vector<1x128xi32>
    %c29_i32 = arith.constant 29 : i32
    %41 = vector.broadcast %c29_i32 : i32 to vector<1x128xi32>
    %42 = arith.cmpi slt, %18, %41 : vector<1x128xi32>
    %43 = arith.andi %40, %42 : vector<1x128xi1>
    %cst_18 = arith.constant -1.000000e+30 : f32
    %44 = vector.shape_cast %43 : vector<1x128xi1> to vector<1x128xi1>
    %45 = vector.broadcast %44 : vector<1x128xi1> to vector<128x128xi1>
    %46 = vector.broadcast %cst_18 : f32 to vector<128x128xf32>
    %47 = arith.select %45, %17, %46 : vector<128x128xi1>, vector<128x128xf32>
    %cst_19 = arith.constant dense<0xFF800000> : vector<128xf32>
    %48 = vector.multi_reduction <maximumf>, %47, %cst_19 [1] : vector<128x128xf32> to vector<128xf32>
    %49 = vector.shape_cast %48 : vector<128xf32> to vector<128x1xf32>
    %50 = vector.broadcast %49 : vector<128x1xf32> to vector<128x128xf32>
    %51 = arith.subf %47, %50 : vector<128x128xf32>
    %52 = math.exp %51 : vector<128x128xf32>
    %cst_20 = arith.constant 0.000000e+00 : f32
    %53 = vector.shape_cast %43 : vector<1x128xi1> to vector<1x128xi1>
    %54 = vector.broadcast %53 : vector<1x128xi1> to vector<128x128xi1>
    %55 = vector.broadcast %cst_20 : f32 to vector<128x128xf32>
    %56 = arith.select %54, %52, %55 : vector<128x128xi1>, vector<128x128xf32>
    %cst_21 = arith.constant dense<0.000000e+00> : vector<128xf32>
    %57 = vector.multi_reduction <add>, %56, %cst_21 [1] : vector<128x128xf32> to vector<128xf32>
    %58 = vector.shape_cast %57 : vector<128xf32> to vector<128x1xf32>
    %59 = math.log %58 : vector<128x1xf32>
    %c8_i32_22 = arith.constant 8 : i32
    %60 = vector.broadcast %c8_i32_22 : i32 to vector<128x1xi32>
    %61 = arith.addi %60, %1 : vector<128x1xi32>
    %62 = vector.broadcast %18 : vector<1x128xi32> to vector<128x128xi32>
    %63 = vector.broadcast %61 : vector<128x1xi32> to vector<128x128xi32>
    %64 = arith.cmpi eq, %62, %63 : vector<128x128xi32>
    %65 = vector.broadcast %49 : vector<128x1xf32> to vector<128x128xf32>
    %66 = arith.subf %47, %65 : vector<128x128xf32>
    %67 = vector.broadcast %59 : vector<128x1xf32> to vector<128x128xf32>
    %68 = arith.subf %66, %67 : vector<128x128xf32>
    %cst_23 = arith.constant 0.000000e+00 : f32
    %69 = vector.broadcast %cst_23 : f32 to vector<128x128xf32>
    %70 = arith.select %64, %68, %69 : vector<128x128xi1>, vector<128x128xf32>
    %cst_24 = arith.constant dense<0.000000e+00> : vector<128xf32>
    %71 = vector.multi_reduction <add>, %70, %cst_24 [1] : vector<128x128xf32> to vector<128xf32>
    %72 = vector.shape_cast %71 : vector<128xf32> to vector<128x1xf32>
    %cst_25 = arith.constant 0.000000e+00 : f32
    %73 = vector.broadcast %cst_25 : f32 to vector<128x1xf32>
    %74 = arith.subf %73, %72 : vector<128x1xf32>
    %75 = arith.mulf %74, %11 : vector<128x1xf32>
    %cst_26 = arith.constant dense<0.000000e+00> : vector<1xf32>
    %76 = vector.multi_reduction <add>, %75, %cst_26 [0] : vector<128x1xf32> to vector<1xf32>
    %77 = vector.shape_cast %76 : vector<1xf32> to vector<1x1xf32>
    %cst_27 = arith.constant 1.250000e-01 : f32
    %78 = vector.broadcast %cst_27 : f32 to vector<1x1xf32>
    %79 = arith.mulf %77, %78 : vector<1x1xf32>
    %c29_i32_28 = arith.constant 29 : i32
    %80 = vector.broadcast %c29_i32_28 : i32 to vector<1x128xi32>
    %81 = arith.cmpi sge, %18, %80 : vector<1x128xi32>
    %c50_i32 = arith.constant 50 : i32
    %82 = vector.broadcast %c50_i32 : i32 to vector<1x128xi32>
    %83 = arith.cmpi slt, %18, %82 : vector<1x128xi32>
    %84 = arith.andi %81, %83 : vector<1x128xi1>
    %cst_29 = arith.constant -1.000000e+30 : f32
    %85 = vector.shape_cast %84 : vector<1x128xi1> to vector<1x128xi1>
    %86 = vector.broadcast %85 : vector<1x128xi1> to vector<128x128xi1>
    %87 = vector.broadcast %cst_29 : f32 to vector<128x128xf32>
    %88 = arith.select %86, %17, %87 : vector<128x128xi1>, vector<128x128xf32>
    %cst_30 = arith.constant dense<0xFF800000> : vector<128xf32>
    %89 = vector.multi_reduction <maximumf>, %88, %cst_30 [1] : vector<128x128xf32> to vector<128xf32>
    %90 = vector.shape_cast %89 : vector<128xf32> to vector<128x1xf32>
    %91 = vector.broadcast %90 : vector<128x1xf32> to vector<128x128xf32>
    %92 = arith.subf %88, %91 : vector<128x128xf32>
    %93 = math.exp %92 : vector<128x128xf32>
    %cst_31 = arith.constant 0.000000e+00 : f32
    %94 = vector.shape_cast %84 : vector<1x128xi1> to vector<1x128xi1>
    %95 = vector.broadcast %94 : vector<1x128xi1> to vector<128x128xi1>
    %96 = vector.broadcast %cst_31 : f32 to vector<128x128xf32>
    %97 = arith.select %95, %93, %96 : vector<128x128xi1>, vector<128x128xf32>
    %cst_32 = arith.constant dense<0.000000e+00> : vector<128xf32>
    %98 = vector.multi_reduction <add>, %97, %cst_32 [1] : vector<128x128xf32> to vector<128xf32>
    %99 = vector.shape_cast %98 : vector<128xf32> to vector<128x1xf32>
    %100 = math.log %99 : vector<128x1xf32>
    %c29_i32_33 = arith.constant 29 : i32
    %101 = vector.broadcast %c29_i32_33 : i32 to vector<128x1xi32>
    %102 = arith.addi %101, %1 : vector<128x1xi32>
    %103 = vector.broadcast %18 : vector<1x128xi32> to vector<128x128xi32>
    %104 = vector.broadcast %102 : vector<128x1xi32> to vector<128x128xi32>
    %105 = arith.cmpi eq, %103, %104 : vector<128x128xi32>
    %106 = vector.broadcast %90 : vector<128x1xf32> to vector<128x128xf32>
    %107 = arith.subf %88, %106 : vector<128x128xf32>
    %108 = vector.broadcast %100 : vector<128x1xf32> to vector<128x128xf32>
    %109 = arith.subf %107, %108 : vector<128x128xf32>
    %cst_34 = arith.constant 0.000000e+00 : f32
    %110 = vector.broadcast %cst_34 : f32 to vector<128x128xf32>
    %111 = arith.select %105, %109, %110 : vector<128x128xi1>, vector<128x128xf32>
    %cst_35 = arith.constant dense<0.000000e+00> : vector<128xf32>
    %112 = vector.multi_reduction <add>, %111, %cst_35 [1] : vector<128x128xf32> to vector<128xf32>
    %113 = vector.shape_cast %112 : vector<128xf32> to vector<128x1xf32>
    %cst_36 = arith.constant 0.000000e+00 : f32
    %114 = vector.broadcast %cst_36 : f32 to vector<128x1xf32>
    %115 = arith.subf %114, %113 : vector<128x1xf32>
    %116 = arith.mulf %115, %11 : vector<128x1xf32>
    %cst_37 = arith.constant dense<0.000000e+00> : vector<1xf32>
    %117 = vector.multi_reduction <add>, %116, %cst_37 [0] : vector<128x1xf32> to vector<1xf32>
    %118 = vector.shape_cast %117 : vector<1xf32> to vector<1x1xf32>
    %cst_38 = arith.constant 1.250000e-01 : f32
    %119 = vector.broadcast %cst_38 : f32 to vector<1x1xf32>
    %120 = arith.mulf %118, %119 : vector<1x1xf32>
    %c50_i32_39 = arith.constant 50 : i32
    %121 = vector.broadcast %c50_i32_39 : i32 to vector<1x128xi32>
    %122 = arith.cmpi sge, %18, %121 : vector<1x128xi32>
    %c71_i32 = arith.constant 71 : i32
    %123 = vector.broadcast %c71_i32 : i32 to vector<1x128xi32>
    %124 = arith.cmpi slt, %18, %123 : vector<1x128xi32>
    %125 = arith.andi %122, %124 : vector<1x128xi1>
    %cst_40 = arith.constant -1.000000e+30 : f32
    %126 = vector.shape_cast %125 : vector<1x128xi1> to vector<1x128xi1>
    %127 = vector.broadcast %126 : vector<1x128xi1> to vector<128x128xi1>
    %128 = vector.broadcast %cst_40 : f32 to vector<128x128xf32>
    %129 = arith.select %127, %17, %128 : vector<128x128xi1>, vector<128x128xf32>
    %cst_41 = arith.constant dense<0xFF800000> : vector<128xf32>
    %130 = vector.multi_reduction <maximumf>, %129, %cst_41 [1] : vector<128x128xf32> to vector<128xf32>
    %131 = vector.shape_cast %130 : vector<128xf32> to vector<128x1xf32>
    %132 = vector.broadcast %131 : vector<128x1xf32> to vector<128x128xf32>
    %133 = arith.subf %129, %132 : vector<128x128xf32>
    %134 = math.exp %133 : vector<128x128xf32>
    %cst_42 = arith.constant 0.000000e+00 : f32
    %135 = vector.shape_cast %125 : vector<1x128xi1> to vector<1x128xi1>
    %136 = vector.broadcast %135 : vector<1x128xi1> to vector<128x128xi1>
    %137 = vector.broadcast %cst_42 : f32 to vector<128x128xf32>
    %138 = arith.select %136, %134, %137 : vector<128x128xi1>, vector<128x128xf32>
    %cst_43 = arith.constant dense<0.000000e+00> : vector<128xf32>
    %139 = vector.multi_reduction <add>, %138, %cst_43 [1] : vector<128x128xf32> to vector<128xf32>
    %140 = vector.shape_cast %139 : vector<128xf32> to vector<128x1xf32>
    %141 = math.log %140 : vector<128x1xf32>
    %c50_i32_44 = arith.constant 50 : i32
    %142 = vector.broadcast %c50_i32_44 : i32 to vector<128x1xi32>
    %143 = arith.addi %142, %1 : vector<128x1xi32>
    %144 = vector.broadcast %18 : vector<1x128xi32> to vector<128x128xi32>
    %145 = vector.broadcast %143 : vector<128x1xi32> to vector<128x128xi32>
    %146 = arith.cmpi eq, %144, %145 : vector<128x128xi32>
    %147 = vector.broadcast %131 : vector<128x1xf32> to vector<128x128xf32>
    %148 = arith.subf %129, %147 : vector<128x128xf32>
    %149 = vector.broadcast %141 : vector<128x1xf32> to vector<128x128xf32>
    %150 = arith.subf %148, %149 : vector<128x128xf32>
    %cst_45 = arith.constant 0.000000e+00 : f32
    %151 = vector.broadcast %cst_45 : f32 to vector<128x128xf32>
    %152 = arith.select %146, %150, %151 : vector<128x128xi1>, vector<128x128xf32>
    %cst_46 = arith.constant dense<0.000000e+00> : vector<128xf32>
    %153 = vector.multi_reduction <add>, %152, %cst_46 [1] : vector<128x128xf32> to vector<128xf32>
    %154 = vector.shape_cast %153 : vector<128xf32> to vector<128x1xf32>
    %cst_47 = arith.constant 0.000000e+00 : f32
    %155 = vector.broadcast %cst_47 : f32 to vector<128x1xf32>
    %156 = arith.subf %155, %154 : vector<128x1xf32>
    %157 = arith.mulf %156, %11 : vector<128x1xf32>
    %cst_48 = arith.constant dense<0.000000e+00> : vector<1xf32>
    %158 = vector.multi_reduction <add>, %157, %cst_48 [0] : vector<128x1xf32> to vector<1xf32>
    %159 = vector.shape_cast %158 : vector<1xf32> to vector<1x1xf32>
    %cst_49 = arith.constant 1.250000e-01 : f32
    %160 = vector.broadcast %cst_49 : f32 to vector<1x1xf32>
    %161 = arith.mulf %159, %160 : vector<1x1xf32>
    %c0_i32 = arith.constant 0 : i32
    %162 = vector.broadcast %c0_i32 : i32 to vector<1x128xi32>
    %163 = arith.cmpi eq, %18, %162 : vector<1x128xi32>
    %cst_50 = arith.constant 0.000000e+00 : f32
    %164 = vector.shape_cast %79 : vector<1x1xf32> to vector<1x1xf32>
    %165 = vector.broadcast %164 : vector<1x1xf32> to vector<1x128xf32>
    %166 = vector.broadcast %cst_50 : f32 to vector<1x128xf32>
    %167 = arith.select %163, %165, %166 : vector<1x128xi1>, vector<1x128xf32>
    %c1_i32 = arith.constant 1 : i32
    %168 = vector.broadcast %c1_i32 : i32 to vector<1x128xi32>
    %169 = arith.cmpi eq, %18, %168 : vector<1x128xi32>
    %cst_51 = arith.constant 0.000000e+00 : f32
    %170 = vector.shape_cast %28 : vector<1x1xf32> to vector<1x1xf32>
    %171 = vector.broadcast %170 : vector<1x1xf32> to vector<1x128xf32>
    %172 = vector.broadcast %cst_51 : f32 to vector<1x128xf32>
    %173 = arith.select %169, %171, %172 : vector<1x128xi1>, vector<1x128xf32>
    %174 = arith.addf %167, %173 : vector<1x128xf32>
    %c2_i32 = arith.constant 2 : i32
    %175 = vector.broadcast %c2_i32 : i32 to vector<1x128xi32>
    %176 = arith.cmpi eq, %18, %175 : vector<1x128xi32>
    %cst_52 = arith.constant 0.000000e+00 : f32
    %177 = vector.shape_cast %120 : vector<1x1xf32> to vector<1x1xf32>
    %178 = vector.broadcast %177 : vector<1x1xf32> to vector<1x128xf32>
    %179 = vector.broadcast %cst_52 : f32 to vector<1x128xf32>
    %180 = arith.select %176, %178, %179 : vector<1x128xi1>, vector<1x128xf32>
    %181 = arith.addf %174, %180 : vector<1x128xf32>
    %c3_i32 = arith.constant 3 : i32
    %182 = vector.broadcast %c3_i32 : i32 to vector<1x128xi32>
    %183 = arith.cmpi eq, %18, %182 : vector<1x128xi32>
    %cst_53 = arith.constant 0.000000e+00 : f32
    %184 = vector.shape_cast %161 : vector<1x1xf32> to vector<1x1xf32>
    %185 = vector.broadcast %184 : vector<1x1xf32> to vector<1x128xf32>
    %186 = vector.broadcast %cst_53 : f32 to vector<1x128xf32>
    %187 = arith.select %183, %185, %186 : vector<1x128xi1>, vector<1x128xf32>
    %188 = arith.addf %181, %187 : vector<1x128xf32>
    %c4_i32 = arith.constant 4 : i32
    %189 = vector.broadcast %c4_i32 : i32 to vector<1x128xi32>
    %190 = arith.cmpi eq, %18, %189 : vector<1x128xi32>
    %cst_54 = arith.constant 0.000000e+00 : f32
    %191 = vector.shape_cast %38 : vector<1x1xf32> to vector<1x1xf32>
    %192 = vector.broadcast %191 : vector<1x1xf32> to vector<1x128xf32>
    %193 = vector.broadcast %cst_54 : f32 to vector<1x128xf32>
    %194 = arith.select %190, %192, %193 : vector<1x128xi1>, vector<1x128xf32>
    %195 = arith.addf %188, %194 : vector<1x128xf32>
    %c0_55 = arith.constant 0 : index
    %c0_56 = arith.constant 0 : index
    %c0_57 = arith.constant 0 : index
    %196 = vector.load %arg7[%c0_55, %c0_56, %c0_57] : memref<1x1x128xf32, #tpu.memory_space<vmem>>, vector<1x1x128xf32>
    %197 = vector.shape_cast %196 : vector<1x1x128xf32> to vector<1x128xf32>
    %198 = vector.shape_cast %195 : vector<1x128xf32> to vector<1x1x128xf32>
    tpu.vector_store %arg7[%c0_55, %c0_56, %c0_57], %198 {strides = array<i32>} : memref<1x1x128xf32, #tpu.memory_space<vmem>>, vector<1x1x128xf32>,
    return
  }
  func.func @transform_0(%arg0: i32, %arg1: memref<1xi32, #tpu.memory_space<smem>>) -> (i32, i32) {
    %c0_i32 = arith.constant 0 : i32
    %c0_i32_0 = arith.constant 0 : i32
    return %arg0, %c0_i32 : i32, i32
  }
  func.func @transform_1(%arg0: i32, %arg1: memref<1xi32, #tpu.memory_space<smem>>) -> (i32, i32) {
    %c0_i32 = arith.constant 0 : i32
    %c0_i32_0 = arith.constant 0 : i32
    return %arg0, %c0_i32 : i32, i32
  }
  func.func @transform_2(%arg0: i32, %arg1: memref<1xi32, #tpu.memory_space<smem>>) -> (i32, i32) {
    %c0_i32 = arith.constant 0 : i32
    %c0_i32_0 = arith.constant 0 : i32
    return %arg0, %c0_i32 : i32, i32
  }
  func.func @transform_3(%arg0: i32, %arg1: memref<1xi32, #tpu.memory_space<smem>>) -> (i32, i32) {
    %c0_i32 = arith.constant 0 : i32
    %c0_i32_0 = arith.constant 0 : i32
    %c0_i32_1 = arith.constant 0 : i32
    return %c0_i32, %c0_i32_0 : i32, i32
  }
  func.func @transform_4(%arg0: i32, %arg1: memref<1xi32, #tpu.memory_space<smem>>) -> (i32, i32) {
    %c0_i32 = arith.constant 0 : i32
    %c0_i32_0 = arith.constant 0 : i32
    %c0_i32_1 = arith.constant 0 : i32
    return %c0_i32, %c0_i32_0 : i32, i32
  }
  func.func @transform_5(%arg0: i32, %arg1: memref<1xi32, #tpu.memory_space<smem>>) -> (i32, i32, i32) {
    %c0_i32 = arith.constant 0 : i32
    %c0_i32_0 = arith.constant 0 : i32
    %c0_i32_1 = arith.constant 0 : i32
    return %arg0, %c0_i32, %c0_i32_0 : i32, i32, i32
  }
}

</mosaic_0001>

<bundles_post_ra>
// kernel: tpu_custom_call.1
= control target key start
LH: loop header
LB: loop body
LE: loop exit
PB: predicated region body
PF: predicated region fallthrough
CT: control target
= control target key end

     0   :  { %s5699_s0 = inlined_call_operand.<no memory space> [shape: s32[1], index: 0, kind: input, shape index: {}]   ;;  %s5700_s1 = inlined_call_operand.vmem [shape: bf16[128,768], index: 1, kind: input, shape index: {}]   ;;  %s5701_s2 = inlined_call_operand.vmem [shape: s32[128,1], index: 2, kind: input, shape index: {}]   ;;  %s5702_s3 = inlined_call_operand.vmem [shape: f32[128,4], index: 3, kind: input, shape index: {}]   ;;  %s5703_s4 = inlined_call_operand.vmem [shape: bf16[768,32], index: 4, kind: input, shape index: {}]   ;;  %s5704_s5 = inlined_call_operand.vmem [shape: f32[32,128], index: 5, kind: input, shape index: {}]   ;;  %s5705_s6 = inlined_call_operand.hbm [shape: f32[1,1,128], index: 6, kind: output, shape index: {}]  }
   0x1   :  { %v3254_v0 = vld [vmem:[%s5703_s4 + $0x40] sm:$0xff]   ;;  %v3258_v4 = vld [vmem:[%s5703_s4 + $0x48] sm:$0xff]   ;;  %v3262_v8 = vld [vmem:[%s5703_s4 + $0x50] sm:$0xff]  }
   0x2   :  { %v3255_v1 = vld [vmem:[%s5703_s4 + $0xc0] sm:$0xff]   ;;  %2979 = vmatprep.subr.bf16.mxu0 %v3254_v0  ;;  %v3259_v5 = vld [vmem:[%s5703_s4 + $0xc8] sm:$0xff]   ;;  %v3263_v9 = vld [vmem:[%s5703_s4 + $0xd0] sm:$0xff]  }
   0x3   :  { %v3256_v2 = vld [vmem:[%s5703_s4] sm:$0xff]   ;;  %3043 = vmatprep.subr.bf16.mxu1 %v3255_v1  ;;  %v3260_v6 = vld [vmem:[%s5703_s4 + $0x8] sm:$0xff]   ;;  %v3264_v10 = vld [vmem:[%s5703_s4 + $0x10] sm:$0xff]  }
   0x4   :  { %v3257_v3 = vld [vmem:[%s5703_s4 + $0x80] sm:$0xff]   ;;  %2980 = vmatpush3.bf16.msra.mxu0 %v3256_v2  ;;  %v3261_v7 = vld [vmem:[%s5703_s4 + $0x88] sm:$0xff]   ;;  %v3265_v11 = vld [vmem:[%s5703_s4 + $0x90] sm:$0xff]  }
   0x5   :  { %3044 = vmatpush3.bf16.msra.mxu1 %v3257_v3  ;;  %2981 = vmatprep.subr.bf16.mxu0 %v3258_v4  ;;  %v3266_v12 = vld [vmem:[%s5703_s4 + $0x58] sm:$0xff]   ;;  %v3270_v16 = vld [vmem:[%s5703_s4 + $0x60] sm:$0xff]   ;;  %v3274_v20 = vld [vmem:[%s5703_s4 + $0x68] sm:$0xff]  }
   0x6   :  { %3045 = vmatprep.subr.bf16.mxu1 %v3259_v5  ;;  %v3267_v13 = vld [vmem:[%s5703_s4 + $0xd8] sm:$0xff]   ;;  %v3271_v17 = vld [vmem:[%s5703_s4 + $0xe0] sm:$0xff]   ;;  %v3275_v21 = vld [vmem:[%s5703_s4 + $0xe8] sm:$0xff]  }
   0x7   :  { %v3268_v14 = vld [vmem:[%s5703_s4 + $0x18] sm:$0xff]   ;;  %v3272_v18 = vld [vmem:[%s5703_s4 + $0x20] sm:$0xff]   ;;  %v3276_v22 = vld [vmem:[%s5703_s4 + $0x28] sm:$0xff]  }
   0x8   :  { %2982 = vmatpush3.bf16.msra.mxu0 %v3260_v6  ;;  %v3269_v15 = vld [vmem:[%s5703_s4 + $0x98] sm:$0xff]   ;;  %v3273_v19 = vld [vmem:[%s5703_s4 + $0xa0] sm:$0xff]   ;;  %v3277_v23 = vld [vmem:[%s5703_s4 + $0xa8] sm:$0xff]  }
   0x9   :  { %3046 = vmatpush3.bf16.msra.mxu1 %v3261_v7  ;;  %2983 = vmatprep.subr.bf16.mxu0 %v3262_v8  ;;  %v3278_v24 = vld [vmem:[%s5703_s4 + $0x70] sm:$0xff]   ;;  %v3282_v28 = vld [vmem:[%s5703_s4 + $0x78] sm:$0xff]   ;;  %v3289_v34 = vld [vmem:[%s5700_s1 + $0x8] ss:$24 sps:$4 sm:$0xff]  }
   0xa   :  { %3047 = vmatprep.subr.bf16.mxu1 %v3263_v9  ;;  %v3279_v25 = vld [vmem:[%s5703_s4 + $0xf0] sm:$0xff]   ;;  %v3283_v29 = vld [vmem:[%s5703_s4 + $0xf8] sm:$0xff]   ;;  %v3291_v35 = vld [vmem:[%s5700_s1 + $0xc] ss:$24 sps:$4 sm:$0xff]  }
   0xb   :  { %v3280_v26 = vld [vmem:[%s5703_s4 + $0x30] sm:$0xff]   ;;  %v3284_v30 = vld [vmem:[%s5703_s4 + $0x38] sm:$0xff]   ;;  %v3292_v36 = vld [vmem:[%s5703_s4 + $0x140] sm:$0xff]   ;;  %942 = vmatprep.mubr.bf16.mxu1 %v3291_v35 }
   0xc   :  { %2984 = vmatpush3.bf16.msra.mxu0 %v3264_v10  ;;  %v3281_v27 = vld [vmem:[%s5703_s4 + $0xb0] sm:$0xff]   ;;  %v3285_v31 = vld [vmem:[%s5703_s4 + $0xb8] sm:$0xff]   ;;  %v3293_v37 = vld [vmem:[%s5703_s4 + $0x100] sm:$0xff]  }
   0xd   :  { %3048 = vmatpush3.bf16.msra.mxu1 %v3265_v11  ;;  %2985 = vmatprep.subr.bf16.mxu0 %v3266_v12  ;;  %v3286_v32 = vld [vmem:[%s5700_s1] ss:$24 sps:$4 sm:$0xff]   ;;  %v3288_v33 = vld [vmem:[%s5700_s1 + $0x4] ss:$24 sps:$4 sm:$0xff]   ;;  %v3294_v38 = vld [vmem:[%s5700_s1 + $0x34] ss:$24 sps:$4 sm:$0xff]  }
   0xe   :  { %3049 = vmatprep.subr.bf16.mxu1 %v3267_v13  ;;  %845 = vmatprep.mubr.bf16.mxu0 %v3288_v33  ;;  %v3296_v39 = vld [vmem:[%s5700_s1 + $0x3c] ss:$24 sps:$4 sm:$0xff]   ;;  %v3298_v40 = vld [vmem:[%s5700_s1 + $0x30] ss:$24 sps:$4 sm:$0xff]   ;;  %v3304_v45 = vld [vmem:[%s5700_s1 + $0x6c] ss:$24 sps:$4 sm:$0xff]  }
   0xf   :  { %v3299_v41 = vld [vmem:[%s5700_s1 + $0x38] ss:$24 sps:$4 sm:$0xff]   ;;  %v3300_v42 = vld [vmem:[%s5703_s4 + $0x148] sm:$0xff]   ;;  %v3302_v44 = vld [vmem:[%s5700_s1 + $0x64] ss:$24 sps:$4 sm:$0xff]  }
  0x10   :  { %2986 = vmatpush3.bf16.msra.mxu0 %v3268_v14  ;;  %v3301_v43 = vld [vmem:[%s5703_s4 + $0x108] sm:$0xff]   ;;  %v3308_v46 = vld [vmem:[%s5703_s4 + $0x150] sm:$0xff]   ;;  %v3306_v48 = vld [vmem:[%s5700_s1 + $0x60] ss:$24 sps:$4 sm:$0xff]  }
  0x11   :  { %3050 = vmatpush3.bf16.msra.mxu1 %v3269_v15  ;;  %2987 = vmatprep.subr.bf16.mxu0 %v3270_v16  ;;  %v3309_v47 = vld [vmem:[%s5703_s4 + $0x110] sm:$0xff]   ;;  %v3307_v49 = vld [vmem:[%s5700_s1 + $0x68] ss:$24 sps:$4 sm:$0xff]   ;;  %v3316_v52 = vld [vmem:[%s5703_s4 + $0x158] sm:$0xff]  }
  0x12   :  { %3051 = vmatprep.subr.bf16.mxu1 %v3271_v17  ;;  %v3310_v50 = vld [vmem:[%s5700_s1 + $0x94] ss:$24 sps:$4 sm:$0xff]   ;;  %v3317_v53 = vld [vmem:[%s5703_s4 + $0x118] sm:$0xff]   ;;  %v3324_v54 = vld [vmem:[%s5703_s4 + $0x160] sm:$0xff]  }
  0x13   :  { %v3312_v51 = vld [vmem:[%s5700_s1 + $0x9c] ss:$24 sps:$4 sm:$0xff]   ;;  %v3325_v55 = vld [vmem:[%s5703_s4 + $0x120] sm:$0xff]   ;;  %v3314_v56 = vld [vmem:[%s5700_s1 + $0x90] ss:$24 sps:$4 sm:$0xff]  }
  0x14   :  { %2988 = vmatpush3.bf16.msra.mxu0 %v3272_v18  ;;  %v3315_v57 = vld [vmem:[%s5700_s1 + $0x98] ss:$24 sps:$4 sm:$0xff]   ;;  %v3318_v58 = vld [vmem:[%s5700_s1 + $0xc4] ss:$24 sps:$4 sm:$0xff]   ;;  %v3332_v60 = vld [vmem:[%s5703_s4 + $0x168] sm:$0xff]  }
  0x15   :  { %3052 = vmatpush3.bf16.msra.mxu1 %v3273_v19  ;;  %2989 = vmatprep.subr.bf16.mxu0 %v3274_v20  ;;  %v3320_v59 = vld [vmem:[%s5700_s1 + $0xcc] ss:$24 sps:$4 sm:$0xff]   ;;  %v3322_v62 = vld [vmem:[%s5700_s1 + $0xc0] ss:$24 sps:$4 sm:$0xff]   ;;  %v3340_v0 = vld [vmem:[%s5703_s4 + $0x170] sm:$0xff]  }
  0x16   :  { %3053 = vmatprep.subr.bf16.mxu1 %v3275_v21  ;;  %v3333_v61 = vld [vmem:[%s5703_s4 + $0x128] sm:$0xff]   ;;  %v3341_v1 = vld [vmem:[%s5703_s4 + $0x130] sm:$0xff]   ;;  %v3348_v4 = vld [vmem:[%s5703_s4 + $0x178] sm:$0xff]  }
  0x17   :  { %v3323_v63 = vld [vmem:[%s5700_s1 + $0xc8] ss:$24 sps:$4 sm:$0xff]   ;;  %v3326_v2 = vld [vmem:[%s5700_s1 + $0xf4] ss:$24 sps:$4 sm:$0xff]   ;;  %v3349_v5 = vld [vmem:[%s5703_s4 + $0x138] sm:$0xff]  }
  0x18   :  { %2990 = vmatpush3.bf16.msra.mxu0 %v3276_v22  ;;  %v3328_v3 = vld [vmem:[%s5700_s1 + $0xfc] ss:$24 sps:$4 sm:$0xff]   ;;  %v3330_v6 = vld [vmem:[%s5700_s1 + $0xf0] ss:$24 sps:$4 sm:$0xff]   ;;  %v3336_v9 = vld [vmem:[%s5700_s1 + $0x12c] ss:$24 sps:$4 sm:$0xff]  }
  0x19   :  { %3054 = vmatpush3.bf16.msra.mxu1 %v3277_v23  ;;  %2991 = vmatprep.subr.bf16.mxu0 %v3278_v24  ;;  %v3331_v7 = vld [vmem:[%s5700_s1 + $0xf8] ss:$24 sps:$4 sm:$0xff]   ;;  %v3334_v8 = vld [vmem:[%s5700_s1 + $0x124] ss:$24 sps:$4 sm:$0xff]  }
  0x1a   :  { %3055 = vmatprep.subr.bf16.mxu1 %v3279_v25  ;;  %v3338_v10 = vld [vmem:[%s5700_s1 + $0x120] ss:$24 sps:$4 sm:$0xff]  }
  0x1c   :  { %2992 = vmatpush3.bf16.msra.mxu0 %v3280_v26 }
  0x1d   :  { %3056 = vmatpush3.bf16.msra.mxu1 %v3281_v27  ;;  %2993 = vmatprep.subr.bf16.mxu0 %v3282_v28 }
  0x1e   :  { %3057 = vmatprep.subr.bf16.mxu1 %v3283_v29 }
  0x20   :  { %2994 = vmatpush3.bf16.msra.mxu0 %v3284_v30 }
  0x21   :  { %3058 = vmatpush3.bf16.msra.mxu1 %v3285_v31  ;;  %3107 = vmatprep.subr.bf16.mxu0 %v3292_v36 }
  0x22   :  { %3231 = vmatprep.subr.bf16.mxu1 %v3292_v36 }
  0x23   :  { %846 = vmatmul.mubr.bf16.vlgmr.msra.gmra.mrb[0].mxu0 %v3286_v32 }
  0x24   :  { %943 = vmatmul.mubr.bf16.vlgmr.msra.gmra.mrb[0].mxu1 %v3289_v34  ;;  %3108 = vmatpush3.bf16.msra.mxu0 %v3293_v37 }
  0x25   :  { %853 = vmatprep.mubr.bf16.mxu0 %v3294_v38  ;;  %3239 = vmatpush3.bf16.msra.mxu1 %v3293_v37 }
  0x26   :  { %950 = vmatprep.mubr.bf16.mxu1 %v3296_v39  ;;  %3109 = vmatprep.subr.bf16.mxu0 %v3300_v42 }
  0x27   :  { %3232 = vmatprep.subr.bf16.mxu1 %v3300_v42 }
  0x28   :  { %3110 = vmatpush3.bf16.msra.mxu0 %v3301_v43 }
  0x29   :  { %3240 = vmatpush3.bf16.msra.mxu1 %v3301_v43  ;;  %3111 = vmatprep.subr.bf16.mxu0 %v3308_v46 }
  0x2a   :  { %3233 = vmatprep.subr.bf16.mxu1 %v3308_v46 }
  0x2b   :  { %854 = vmatmul.mubr.bf16.gmra.mrb[4].mxu0 %v3298_v40 }
  0x2c   :  { %951 = vmatmul.mubr.bf16.gmra.mrb[4].mxu1 %v3299_v41  ;;  %861 = vmatprep.mubr.bf16.mxu0 %v3302_v44 }
  0x2d   :  { %958 = vmatprep.mubr.bf16.mxu1 %v3304_v45  ;;  %3112 = vmatpush3.bf16.msra.mxu0 %v3309_v47 }
  0x2e   :  { %3241 = vmatpush3.bf16.msra.mxu1 %v3309_v47  ;;  %3113 = vmatprep.subr.bf16.mxu0 %v3316_v52 }
  0x2f   :  { %3234 = vmatprep.subr.bf16.mxu1 %v3316_v52 }
  0x31   :  { %3114 = vmatpush3.bf16.msra.mxu0 %v3317_v53 }
  0x32   :  { %3242 = vmatpush3.bf16.msra.mxu1 %v3317_v53  ;;  %3115 = vmatprep.subr.bf16.mxu0 %v3324_v54 }
  0x33   :  { %862 = vmatmul.mubr.bf16.gmra.mrb[8].mxu0 %v3306_v48  ;;  %3235 = vmatprep.subr.bf16.mxu1 %v3324_v54 }
  0x34   :  { %959 = vmatmul.mubr.bf16.gmra.mrb[8].mxu1 %v3307_v49  ;;  %869 = vmatprep.mubr.bf16.mxu0 %v3310_v50 }
  0x35   :  { %966 = vmatprep.mubr.bf16.mxu1 %v3312_v51  ;;  %3116 = vmatpush3.bf16.msra.mxu0 %v3325_v55 }
  0x36   :  { %3243 = vmatpush3.bf16.msra.mxu1 %v3325_v55  ;;  %3117 = vmatprep.subr.bf16.mxu0 %v3332_v60 }
  0x37   :  { %3236 = vmatprep.subr.bf16.mxu1 %v3332_v60 }
  0x39   :  { %3118 = vmatpush3.bf16.msra.mxu0 %v3333_v61 }
  0x3a   :  { %3244 = vmatpush3.bf16.msra.mxu1 %v3333_v61  ;;  %3119 = vmatprep.subr.bf16.mxu0 %v3340_v0 }
  0x3b   :  { %870 = vmatmul.mubr.bf16.gmra.mrb[12].mxu0 %v3314_v56  ;;  %3237 = vmatprep.subr.bf16.mxu1 %v3340_v0 }
  0x3c   :  { %967 = vmatmul.mubr.bf16.gmra.mrb[12].mxu1 %v3315_v57  ;;  %877 = vmatprep.mubr.bf16.mxu0 %v3318_v58 }
  0x3d   :  { %974 = vmatprep.mubr.bf16.mxu1 %v3320_v59  ;;  %3120 = vmatpush3.bf16.msra.mxu0 %v3341_v1 }
  0x3e   :  { %3245 = vmatpush3.bf16.msra.mxu1 %v3341_v1  ;;  %3121 = vmatprep.subr.bf16.mxu0 %v3348_v4 }
  0x3f   :  { %3238 = vmatprep.subr.bf16.mxu1 %v3348_v4 }
  0x41   :  { %3122 = vmatpush3.bf16.msra.mxu0 %v3349_v5 }
  0x42   :  { %3246 = vmatpush3.bf16.msra.mxu1 %v3349_v5 }
  0x43   :  { %878 = vmatmul.mubr.bf16.gmra.mrb[16].mxu0 %v3322_v62 }
  0x44   :  { %975 = vmatmul.mubr.bf16.gmra.mrb[16].mxu1 %v3323_v63  ;;  %885 = vmatprep.mubr.bf16.mxu0 %v3326_v2 }
  0x45   :  { %982 = vmatprep.mubr.bf16.mxu1 %v3328_v3 }
  0x4b   :  { %886 = vmatmul.mubr.bf16.gmra.mrb[20].mxu0 %v3330_v6 }
  0x4c   :  { %983 = vmatmul.mubr.bf16.gmra.mrb[20].mxu1 %v3331_v7  ;;  %893 = vmatprep.mubr.bf16.mxu0 %v3334_v8 }
  0x4d   :  { %990 = vmatprep.mubr.bf16.mxu1 %v3336_v9 }
  0x4e   :  { %12 = vsyncpa [#allocation5], 0  ;;  %v3339_v11 = vld [vmem:[%s5700_s1 + $0x128] ss:$24 sps:$4 sm:$0xff]   ;;  %v3342_v12 = vld [vmem:[%s5700_s1 + $0x154] ss:$24 sps:$4 sm:$0xff]  }
  0x4f   :  { %v3344_v13 = vld [vmem:[%s5700_s1 + $0x15c] ss:$24 sps:$4 sm:$0xff]   ;;  %v3346_v14 = vld [vmem:[%s5700_s1 + $0x150] ss:$24 sps:$4 sm:$0xff]   ;;  %v3360_v22 = vld [vmem:[%s5700_s1 + $0x40] ss:$24 sps:$4 sm:$0xff]  }
  0x50   :  { %v3347_v15 = vld [vmem:[%s5700_s1 + $0x158] ss:$24 sps:$4 sm:$0xff]   ;;  %v3352_v16 = vld [vmem:[%s5700_s1 + $0x14] ss:$24 sps:$4 sm:$0xff]   ;;  %v3356_v20 = vld [vmem:[%s5700_s1 + $0x44] ss:$24 sps:$4 sm:$0xff]  }
  0x51   :  { %v3355_v17 = vld [vmem:[%s5700_s1 + $0x134] ss:$24 sps:$4 sm:$0xff]   ;;  %v3350_v18 = vld [vmem:[%s5700_s1 + $0x10] ss:$24 sps:$4 sm:$0xff]   ;;  %v3358_v21 = vld [vmem:[%s5700_s1 + $0x164] ss:$24 sps:$4 sm:$0xff]  }
  0x52   :  { %v3353_v19 = vld [vmem:[%s5700_s1 + $0x130] ss:$24 sps:$4 sm:$0xff]   ;;  %v3361_v23 = vld [vmem:[%s5700_s1 + $0x160] ss:$24 sps:$4 sm:$0xff]   ;;  %v3362_v24 = vld [vmem:[%s5700_s1 + $0x74] ss:$24 sps:$4 sm:$0xff]  }
  0x53   :  { %894 = vmatmul.mubr.bf16.gmra.mrb[24].mxu0 %v3338_v10  ;;  %v3364_v25 = vld [vmem:[%s5700_s1 + $0x70] ss:$24 sps:$4 sm:$0xff]   ;;  %v3365_v26 = vld [vmem:[%s5700_s1 + $0xa4] ss:$24 sps:$4 sm:$0xff]   ;;  %v3367_v27 = vld [vmem:[%s5700_s1 + $0xa0] ss:$24 sps:$4 sm:$0xff]  }
  0x54   :  { %991 = vmatmul.mubr.bf16.gmra.mrb[24].mxu1 %v3339_v11  ;;  %901 = vmatprep.mubr.bf16.mxu0 %v3342_v12  ;;  %v3368_v28 = vld [vmem:[%s5700_s1 + $0xd4] ss:$24 sps:$4 sm:$0xff]   ;;  %v3370_v29 = vld [vmem:[%s5700_s1 + $0xd0] ss:$24 sps:$4 sm:$0xff]   ;;  %v3371_v30 = vld [vmem:[%s5700_s1 + $0x104] ss:$24 sps:$4 sm:$0xff]  }
  0x55   :  { %998 = vmatprep.mubr.bf16.mxu1 %v3344_v13  ;;  %v3373_v31 = vld [vmem:[%s5700_s1 + $0x100] ss:$24 sps:$4 sm:$0xff]   ;;  %v3930_v32 = vld [vmem:[%s5702_s3 + $0x8] sm:$0xff]  ;;  %s3599_s21 = smov 4   ;;  %v3937_v33 = vld [vmem:[%s5702_s3 + $0x10] sm:$0xff]  ;;  %v3600_v51 = vmov 0  }
  0x56   :  { %1457 = vrot.lane.b32.xlu1 %v3930_v32, %s3599_s21  ;;  %v3944_v34 = vld [vmem:[%s5702_s3 + $0x18] sm:$0xff]  ;;  %v3951_v35 = vld [vmem:[%s5702_s3 + $0x28] sm:$0xff]  ;;  %v1120_v36 = vld [vmem:[%s5704_s5] sm:$0xff]  ;;  %3252 = vset.pattern.permute.xlu0 %v3600_v51  ;;  %vm1124_vm0 = vcmask 261120   ;;  %vm1352_vm10 = vcmask 31744  }
  0x57   :  { %v1121_v37 = vld [vmem:[%s5704_s5 + $0x8] sm:$0xff]  ;;  %v95_v39 = vld [vmem:[%s5702_s3 + $0x38] sm:$0xff]  ;;  %v1122_v41 = vld [vmem:[%s5704_s5 + $0x10] sm:$0xff]  ;;  %3253 = vset.pattern.permute.xlu1 %v3600_v51 }
  0x58   :  { %v3223_v38 = vpack.c.bf16 %v1121_v37, %v1120_v36  ;;  %v97_v40 = vld [vmem:[%s5702_s3 + $0x48] sm:$0xff]  ;;  %v1123_v42 = vld [vmem:[%s5704_s5 + $0x18] sm:$0xff]  ;;  %v3986_v46 = vld [vmem:[%s5702_s3] sm:$0xff] }
  0x59   :  { %v3227_v43 = vpack.c.bf16 %v1123_v42, %v1122_v41  ;;  %v99_v44 = vld [vmem:[%s5702_s3 + $0x58] sm:$0xff]  ;;  %v101_v45 = vld [vmem:[%s5702_s3 + $0x68] sm:$0xff]  ;;  %1455 = vrot.lane.b32.xlu0 %v3986_v46, %s3599_s21  ;;  %v3997_v48 = vld [vmem:[%s5702_s3 + $0x20] sm:$0xff] }
  0x5a   :  { %1459 = vrot.lane.b32.xlu1 %v3937_v33, %s3599_s21  ;;  %3224 = vmatprep.subr.bf16.mxu1 %v3223_v38  ;;  %v103_v47 = vld [vmem:[%s5702_s3 + $0x78] sm:$0xff]  ;;  %v4004_v49 = vld [vmem:[%s5701_s2 + $0x8] sm:$0xff]  ;;  %v4010_v52 = vld [vmem:[%s5702_s3 + $0x30] sm:$0xff] }
  0x5b   :  { %902 = vmatmul.mubr.bf16.gmra.mrb[28].mxu0 %v3346_v14  ;;  %v1867_v50 = vadd.s32 8, %v4004_v49  ;;  %v4017_v53 = vld [vmem:[%s5701_s2 + $0x10] sm:$0xff]  ;;  %v96_v55 = vld [vmem:[%s5702_s3 + $0x40] sm:$0xff]  ;;  %v4027_v56 = vld [vmem:[%s5701_s2 + $0x18] sm:$0xff] }
  0x5c   :  { %999 = vmatmul.mubr.bf16.gmra.mrb[28].mxu1 %v3347_v15  ;;  %1039 = vmatprep.mubr.bf16.mxu0 %v3352_v16  ;;  %v1868_v54 = vadd.s32 8, %v4017_v53  ;;  %v1869_v57 = vadd.s32 8, %v4027_v56  ;;  %v98_v58 = vld [vmem:[%s5702_s3 + $0x50] sm:$0xff]  ;;  %v4037_v59 = vld [vmem:[%s5701_s2 + $0x20] sm:$0xff]  ;;  %v4047_v62 = vld [vmem:[%s5701_s2 + $0x28] sm:$0xff] }
  0x5d   :  { %1087 = vmatprep.mubr.bf16.mxu1 %v3355_v17  ;;  %1463 = vrot.lane.b32.xlu0 %v3997_v48, %s3599_s21  ;;  %v1870_v60 = vadd.s32 8, %v4037_v59  ;;  %v100_v61 = vld [vmem:[%s5702_s3 + $0x60] sm:$0xff]  ;;  %v1871_v63 = vadd.s32 8, %v4047_v62  ;;  %v102_v0 = vld [vmem:[%s5702_s3 + $0x70] sm:$0xff]  ;;  %v4066_v5 = vld [vmem:[%s5701_s2 + $0x38] sm:$0xff] }
  0x5e   :  { %1461 = vrot.lane.b32.xlu1 %v3944_v34, %s3599_s21  ;;  %v4057_v1 = vld [vmem:[%s5701_s2 + $0x30] sm:$0xff]  ;;  %v72_v3 = vld [vmem:[%s5701_s2] sm:$0xff]  ;;  %v1873_v6 = vadd.s32 8, %v4066_v5  ;;  %v4072_v7 = vld [vmem:[%s5701_s2 + $0x48] sm:$0xff] }
  0x5f   :  { %v1872_v2 = vadd.s32 8, %v4057_v1  ;;  %v1866_v4 = vadd.s32 8, %v72_v3  ;;  %v1875_v8 = vadd.s32 8, %v4072_v7  ;;  %v4078_v9 = vld [vmem:[%s5701_s2 + $0x40] sm:$0xff]  ;;  %v4084_v11 = vld [vmem:[%s5701_s2 + $0x58] sm:$0xff]  ;;  %v4090_v13 = vld [vmem:[%s5701_s2 + $0x50] sm:$0xff] }
  0x60   :  { %v1874_v10 = vadd.s32 8, %v4078_v9  ;;  %v1877_v12 = vadd.s32 8, %v4084_v11  ;;  %v1876_v14 = vadd.s32 8, %v4090_v13  ;;  %v4096_v15 = vld [vmem:[%s5701_s2 + $0x68] sm:$0xff]  ;;  %v4102_v17 = vld [vmem:[%s5701_s2 + $0x60] sm:$0xff] }
  0x61   :  { %1467 = vrot.lane.b32.xlu0 %v4010_v52, %s3599_s21  ;;  %v1879_v16 = vadd.s32 8, %v4096_v15 }
  0x62   :  { %1465 = vrot.lane.b32.xlu1 %v3951_v35, %s3599_s21 }
  0x63   :  { %1040 = vmatmul.mubr.bf16.vlgmr.msra.gmra.mrb[32].mxu0 %v3350_v18  ;;  %v1878_v18 = vadd.s32 8, %v4102_v17 }
  0x64   :  { %1088 = vmatmul.mubr.bf16.vlgmr.msra.gmra.mrb[32].mxu1 %v3353_v19  ;;  %1047 = vmatprep.mubr.bf16.mxu0 %v3356_v20  ;;  %v4108_v19 = vld [vmem:[%s5701_s2 + $0x78] sm:$0xff] }
  0x65   :  { %1095 = vmatprep.mubr.bf16.mxu1 %v3358_v21  ;;  %3226 = vmatpush3.bf16.msra.mxu1 %v3223_v38  ;;  %v1881_v20 = vadd.s32 8, %v4108_v19  ;;  %v4114_v21 = vld [vmem:[%s5701_s2 + $0x70] sm:$0xff]  ;;  %s3601_s2 = smov 124  }
  0x66   :  { %1469 = vrot.lane.b32.xlu1 %v95_v39, %s3599_s21  ;;  %3228 = vmatprep.subr.bf16.mxu1 %v3227_v43 }
  0x67   :  { %1471 = vrot.lane.b32.xlu0 %v96_v55, %s3599_s21 }
  0x69   :  { %3230 = vmatpush3.bf16.msra.mxu1 %v3227_v43  ;;  %v2250_v43 = vadd.s32 29, %v4047_v62 }
  0x6a   :  { %1473 = vrot.lane.b32.xlu1 %v97_v40, %s3599_s21 }
  0x6b   :  { %1048 = vmatmul.mubr.bf16.gmra.mrb[36].mxu0 %v3360_v22  ;;  %1475 = vrot.lane.b32.xlu0 %v98_v58, %s3599_s21  ;;  %v1880_v22 = vadd.s32 8, %v4114_v21  ;;  %v2626_v58 = vadd.s32 50, %v4017_v53 }
  0x6c   :  { %1096 = vmatmul.mubr.bf16.gmra.mrb[36].mxu1 %v3361_v23  ;;  %1055 = vmatprep.mubr.bf16.mxu0 %v3362_v24  ;;  %v2245_v23 = vadd.s32 29, %v72_v3  ;;  %v2247_v24 = vadd.s32 29, %v4017_v53 }
  0x6e   :  { %1477 = vrot.lane.b32.xlu1 %v99_v44, %s3599_s21 }
  0x6f   :  { %1479 = vrot.lane.b32.xlu0 %v100_v61, %s3599_s21 }
  0x72   :  { %1481 = vrot.lane.b32.xlu1 %v101_v45, %s3599_s21 }
  0x73   :  { %1056 = vmatmul.mubr.bf16.gmra.mrb[40].mxu0 %v3364_v25  ;;  %1483 = vrot.lane.b32.xlu0 %v102_v0, %s3599_s21  ;;  %v2246_v25 = vadd.s32 29, %v4004_v49 }
  0x74   :  { %1063 = vmatprep.mubr.bf16.mxu0 %v3365_v26 }
  0x76   :  { %1485 = vrot.lane.b32.xlu1 %v103_v47, %s3599_s21  ;;  %v2625_v47 = vadd.s32 50, %v4004_v49  ;;  %v2627_v49 = vadd.s32 50, %v4027_v56 }
  0x77   :  { %1883 = vperm.xlu0 %3252, %v1866_v4  }
  0x7a   :  { %1886 = vperm.xlu1 %3253, %v1867_v50  }
  0x7b   :  { %1064 = vmatmul.mubr.bf16.gmra.mrb[44].mxu0 %v3367_v27  ;;  %1910 = vperm.xlu0 %3252, %v1875_v8   ;;  %v2248_v27 = vadd.s32 29, %v4027_v56 }
  0x7c   :  { %1071 = vmatprep.mubr.bf16.mxu0 %v3368_v28 }
  0x7e   :  { %1889 = vperm.xlu1 %3253, %v1868_v54   ;;  %v2624_v54 = vadd.s32 50, %v72_v3  ;;  %v2628_v3 = vadd.s32 50, %v4037_v59 }
  0x7f   :  { %1916 = vperm.xlu0 %3252, %v1877_v12  }
  0x82   :  { %1892 = vperm.xlu1 %3253, %v1869_v57  }
  0x83   :  { %1072 = vmatmul.mubr.bf16.gmra.mrb[48].mxu0 %v3370_v29  ;;  %1922 = vperm.xlu0 %3252, %v1879_v16   ;;  %v2254_v16 = vadd.s32 29, %v4072_v7 }
  0x84   :  { %1079 = vmatprep.mubr.bf16.mxu0 %v3371_v30  ;;  %v2249_v30 = vadd.s32 29, %v4037_v59  ;;  %v2634_v59 = vadd.s32 50, %v4090_v13 }
  0x86   :  { %1895 = vperm.xlu1 %3253, %v1870_v60  }
  0x87   :  { %1928 = vperm.xlu0 %3252, %v1881_v20  }
  0x8a   :  { %1898 = vperm.xlu1 %3253, %v1871_v63  }
  0x8b   :  { %1080 = vmatmul.mubr.bf16.gmra.mrb[52].mxu0 %v3373_v31  ;;  %2262 = vperm.xlu0 %3252, %v2245_v23  }
  0x8e   :  { %1901 = vperm.xlu1 %3253, %v1872_v2  }
  0x8f   :  { %2265 = vperm.xlu0 %3252, %v2246_v25  }
  0x92   :  { %1904 = vperm.xlu1 %3253, %v1873_v6  }
  0x93   :  { %2274 = vperm.xlu0 %3252, %v2249_v30  }
  0x96   :  { %1907 = vperm.xlu1 %3253, %v1874_v10  }
  0x97   :  { %2644 = vperm.xlu0 %3252, %v2625_v47  }
  0x9a   :  { %1913 = vperm.xlu1 %3253, %v1876_v14  }
  0x9b   :  { %2647 = vperm.xlu0 %3252, %v2626_v58  }
  0x9e   :  { %1919 = vperm.xlu1 %3253, %v1878_v18  }
  0x9f   :  { %2653 = vperm.xlu0 %3252, %v2628_v3  }
  0xa2   :  { %1925 = vperm.xlu1 %3253, %v1880_v22   ;;  %v2251_v22 = vadd.s32 29, %v4057_v1 }
  0xa4   :  { %2280 = vperm.xlu0 %3252, %v2251_v22  }
  0xa6   :  { %2268 = vperm.xlu1 %3253, %v2247_v24  }
  0xaa   :  { %2271 = vperm.xlu1 %3253, %v2248_v27  }
  0xae   :  { %2277 = vperm.xlu1 %3253, %v2250_v43  }
  0xb2   :  { %2641 = vperm.xlu1 %3253, %v2624_v54  }
  0xb6   :  { %2650 = vperm.xlu1 %3253, %v2627_v49   ;;  %v2253_v49 = vadd.s32 29, %v4078_v9 }
  0xba   :  { %2289 = vperm.xlu1 %3253, %v2254_v16  }
  0xbe   :  { %2671 = vperm.xlu1 %3253, %v2634_v59   ;;  %v2632_v59 = vadd.s32 50, %v4078_v9  ;;  %v2633_v9 = vadd.s32 50, %v4072_v7  ;;  %v2257_v7 = vadd.s32 29, %v4102_v17 }
  0xf6   :  { %v2995_v26 = vpop.f32.mrb[0].mxu0 }
  0xf7   :  { %v3059_v28 = vpop.f32.mrb[0].mxu1  ;;  %v2996_v29 = vpop.f32.mrb[1].mxu0 }
  0xf8   :  { %v2997_v31 = vadd.f32 %v2996_v29, %v2995_v26  ;;  %v3060_v36 = vpop.f32.mrb[1].mxu1  ;;  %v2998_v37 = vpop.f32.mrb[2].mxu0 }
  0xf9   :  { %v3061_v38 = vadd.f32 %v3060_v36, %v3059_v28  ;;  %v3062_v39 = vpop.f32.mrb[2].mxu1  ;;  %v2999_v40 = vpop.f32.mrb[3].mxu0  ;;  %v2629_v36 = vadd.s32 50, %v4047_v62  ;;  %v2636_v62 = vadd.s32 50, %v4102_v17  ;;  %v2259_v17 = vadd.s32 29, %v4114_v21 }
  0xfa   :  { %v3000_v41 = vadd.f32 %v2999_v40, %v2998_v37  ;;  %v3063_v42 = vpop.f32.mrb[3].mxu1 }
  0xfb   :  { %v4122_v44 = vadd.f32 %v3061_v38, %v2997_v31  ;;  %v3064_v45 = vadd.f32 %v3063_v42, %v3062_v39  ;;  %v2635_v39 = vadd.s32 50, %v4084_v11  ;;  %2656 = vperm.xlu0 %3252, %v2629_v36   ;;  %v2252_v42 = vadd.s32 29, %v4066_v5 }
  0xfd   :  { %v4125_v50 = vadd.f32 %v3064_v45, %v3000_v41  ;;  %2674 = vperm.xlu1 %3253, %v2635_v39  }
  0xfe   :  { %v3001_v51 = vpop.f32.mrb[4].mxu0 }
  0xff   :  { %v3065_v55 = vpop.f32.mrb[4].mxu1  ;;  %v3002_v57 = vpop.f32.mrb[5].mxu0  ;;  %2283 = vperm.xlu0 %3252, %v2252_v42  }
 0x100   :  { %v3003_v60 = vadd.f32 %v3002_v57, %v3001_v51  ;;  %v3066_v61 = vpop.f32.mrb[5].mxu1  ;;  %v3004_v63 = vpop.f32.mrb[6].mxu0 }
 0x101   :  { %v3067_v0 = vadd.f32 %v3066_v61, %v3065_v55  ;;  %v3068_v2 = vpop.f32.mrb[6].mxu1  ;;  %v3005_v4 = vpop.f32.mrb[7].mxu0  ;;  %2677 = vperm.xlu1 %3253, %v2636_v62  }
 0x102   :  { %v3006_v6 = vadd.f32 %v3005_v4, %v3004_v63  ;;  %v3069_v8 = vpop.f32.mrb[7].mxu1  ;;  %v2630_v63 = vadd.s32 50, %v4057_v1  ;;  %v2637_v4 = vadd.s32 50, %v4096_v15  ;;  %v2638_v1 = vadd.s32 50, %v4114_v21 }
 0x103   :  { %v4129_v10 = vadd.f32 %v3067_v0, %v3003_v60  ;;  %v3070_v12 = vadd.f32 %v3069_v8, %v3068_v2 }
 0x104   :  { %2659 = vperm.xlu0 %3252, %v2630_v63  }
 0x105   :  { %v4132_v14 = vadd.f32 %v3070_v12, %v3006_v6  ;;  %2680 = vperm.xlu1 %3253, %v2637_v4  }
 0x106   :  { %v3007_v53 = vpop.f32.mrb[8].mxu0 }
 0x107   :  { %v3071_v18 = vpop.f32.mrb[8].mxu1  ;;  %v3008_v20 = vpop.f32.mrb[9].mxu0 }
 0x108   :  { %v3009_v23 = vadd.f32 %v3008_v20, %v3007_v53  ;;  %v3072_v24 = vpop.f32.mrb[9].mxu1  ;;  %v3010_v56 = vpop.f32.mrb[10].mxu0  ;;  %2286 = vperm.xlu0 %3252, %v2253_v49  }
 0x109   :  { %v3073_v25 = vadd.f32 %v3072_v24, %v3071_v18  ;;  %v3074_v26 = vpop.f32.mrb[10].mxu1  ;;  %v3011_v27 = vpop.f32.mrb[11].mxu0  ;;  %2683 = vperm.xlu1 %3253, %v2638_v1  }
 0x10a   :  { %v3012_v28 = vadd.f32 %v3011_v27, %v3010_v56  ;;  %v3075_v29 = vpop.f32.mrb[11].mxu1 }
 0x10b   :  { %v4137_v30 = vadd.f32 %v3073_v25, %v3009_v23  ;;  %v3076_v31 = vadd.f32 %v3075_v29, %v3074_v26  ;;  %v2631_v25 = vadd.s32 50, %v4066_v5 }
 0x10d   :  { %v4140_v37 = vadd.f32 %v3076_v31, %v3012_v28  ;;  %2662 = vperm.xlu0 %3252, %v2631_v25  }
 0x10e   :  { %v3013_v38 = vpop.f32.mrb[12].mxu0 }
 0x10f   :  { %v3077_v40 = vpop.f32.mrb[12].mxu1  ;;  %v3014_v41 = vpop.f32.mrb[13].mxu0 }
 0x110   :  { %v3015_v43 = vadd.f32 %v3014_v41, %v3013_v38  ;;  %v3078_v45 = vpop.f32.mrb[13].mxu1  ;;  %v3016_v47 = vpop.f32.mrb[14].mxu0 }
 0x111   :  { %v3079_v51 = vadd.f32 %v3078_v45, %v3077_v40  ;;  %v3080_v54 = vpop.f32.mrb[14].mxu1  ;;  %v3017_v55 = vpop.f32.mrb[15].mxu0  ;;  %2665 = vperm.xlu0 %3252, %v2632_v59  }
 0x112   :  { %v3018_v57 = vadd.f32 %v3017_v55, %v3016_v47  ;;  %v3081_v58 = vpop.f32.mrb[15].mxu1  ;;  %v2255_v47 = vadd.s32 29, %v4090_v13  ;;  %v2256_v13 = vadd.s32 29, %v4084_v11  ;;  %v2258_v11 = vadd.s32 29, %v4096_v15 }
 0x113   :  { %v4145_v60 = vadd.f32 %v3079_v51, %v3015_v43  ;;  %v3082_v61 = vadd.f32 %v3081_v58, %v3080_v54 }
 0x115   :  { %v4148_v0 = vadd.f32 %v3082_v61, %v3018_v57  ;;  %2292 = vperm.xlu0 %3252, %v2255_v47  }
 0x116   :  { %v3019_v2 = vpop.f32.mrb[16].mxu0 }
 0x117   :  { %v3083_v6 = vpop.f32.mrb[16].mxu1  ;;  %v3020_v8 = vpop.f32.mrb[17].mxu0 }
 0x118   :  { %v3021_v12 = vadd.f32 %v3020_v8, %v3019_v2  ;;  %v3084_v3 = vpop.f32.mrb[17].mxu1  ;;  %v3022_v53 = vpop.f32.mrb[18].mxu0 }
 0x119   :  { %v3085_v16 = vadd.f32 %v3084_v3, %v3083_v6  ;;  %v3086_v18 = vpop.f32.mrb[18].mxu1  ;;  %v3023_v20 = vpop.f32.mrb[19].mxu0  ;;  %2668 = vperm.xlu0 %3252, %v2633_v9  }
 0x11a   :  { %v3024_v22 = vadd.f32 %v3023_v20, %v3022_v53  ;;  %v3087_v23 = vpop.f32.mrb[19].mxu1 }
 0x11b   :  { %v4153_v24 = vadd.f32 %v3085_v16, %v3021_v12  ;;  %v3088_v56 = vadd.f32 %v3087_v23, %v3086_v18 }
 0x11d   :  { %v4156_v26 = vadd.f32 %v3088_v56, %v3024_v22  ;;  %2295 = vperm.xlu0 %3252, %v2256_v13  }
 0x11e   :  { %v3025_v27 = vpop.f32.mrb[20].mxu0 }
 0x11f   :  { %v3089_v28 = vpop.f32.mrb[20].mxu1  ;;  %v3026_v29 = vpop.f32.mrb[21].mxu0 }
 0x120   :  { %v3027_v31 = vadd.f32 %v3026_v29, %v3025_v27  ;;  %v3090_v36 = vpop.f32.mrb[21].mxu1  ;;  %v3028_v38 = vpop.f32.mrb[22].mxu0 }
 0x121   :  { %v3091_v39 = vadd.f32 %v3090_v36, %v3089_v28  ;;  %v3092_v40 = vpop.f32.mrb[22].mxu1  ;;  %v3029_v41 = vpop.f32.mrb[23].mxu0  ;;  %2298 = vperm.xlu0 %3252, %v2257_v7  }
 0x122   :  { %v3030_v42 = vadd.f32 %v3029_v41, %v3028_v38  ;;  %v3093_v43 = vpop.f32.mrb[23].mxu1 }
 0x123   :  { %v4159_v45 = vadd.f32 %v3091_v39, %v3027_v31  ;;  %v3094_v5 = vadd.f32 %v3093_v43, %v3092_v40 }
 0x125   :  { %v4162_v51 = vadd.f32 %v3094_v5, %v3030_v42  ;;  %2301 = vperm.xlu0 %3252, %v2258_v11  }
 0x126   :  { %v3031_v54 = vpop.f32.mrb[24].mxu0 }
 0x127   :  { %v3095_v55 = vpop.f32.mrb[24].mxu1  ;;  %v3032_v57 = vpop.f32.mrb[25].mxu0 }
 0x128   :  { %v3033_v58 = vadd.f32 %v3032_v57, %v3031_v54  ;;  %v3096_v62 = vpop.f32.mrb[25].mxu1  ;;  %v3034_v61 = vpop.f32.mrb[26].mxu0 }
 0x129   :  { %v3097_v63 = vadd.f32 %v3096_v62, %v3095_v55  ;;  %v3098_v2 = vpop.f32.mrb[26].mxu1  ;;  %v3035_v4 = vpop.f32.mrb[27].mxu0  ;;  %2304 = vperm.xlu0 %3252, %v2259_v17  }
 0x12a   :  { %v3036_v6 = vadd.f32 %v3035_v4, %v3034_v61  ;;  %v3099_v8 = vpop.f32.mrb[27].mxu1 }
 0x12b   :  { %v993_v49 = vadd.f32 %v3097_v63, %v3033_v58  ;;  %v3100_v12 = vadd.f32 %v3099_v8, %v3098_v2  ;;  %v2260_v58 = vadd.s32 29, %v4108_v19 }
 0x12d   :  { %v996_v3 = vadd.f32 %v3100_v12, %v3036_v6  ;;  %2307 = vperm.xlu0 %3252, %v2260_v58   ;;  %v2639_v6 = vadd.s32 50, %v4108_v19 }
 0x12e   :  { %v3037_v53 = vpop.f32.mrb[28].mxu0 }
 0x12f   :  { %v3101_v16 = vpop.f32.mrb[28].mxu1  ;;  %v3038_v18 = vpop.f32.mrb[29].mxu0 }
 0x130   :  { %v3039_v20 = vadd.f32 %v3038_v18, %v3037_v53  ;;  %v3102_v22 = vpop.f32.mrb[29].mxu1  ;;  %v3040_v23 = vpop.f32.mrb[30].mxu0 }
 0x131   :  { %v3103_v1 = vadd.f32 %v3102_v22, %v3101_v16  ;;  %v3104_v56 = vpop.f32.mrb[30].mxu1  ;;  %v3041_v25 = vpop.f32.mrb[31].mxu0  ;;  %2686 = vperm.xlu0 %3252, %v2639_v6  }
 0x132   :  { %v3042_v27 = vadd.f32 %v3041_v25, %v3040_v23  ;;  %v3105_v28 = vpop.f32.mrb[31].mxu1 }
 0x133   :  { %v1001_v29 = vadd.f32 %v3103_v1, %v3039_v20  ;;  %v3106_v59 = vadd.f32 %v3105_v28, %v3104_v56 }
 0x135   :  { %v1004_v31 = vadd.f32 %v3106_v59, %v3042_v27 }
 0x136   :  { %v3123_v36 = vpop.f32.mrb[32].mxu0 }
 0x137   :  { %v3159_v38 = vpop.f32.mrb[32].mxu1  ;;  %v3124_v39 = vpop.f32.mrb[33].mxu0 }
 0x138   :  { %v3125_v40 = vadd.f32 %v3124_v39, %v3123_v36  ;;  %v3160_v41 = vpop.f32.mrb[33].mxu1  ;;  %v3126_v42 = vpop.f32.mrb[34].mxu0 }
 0x139   :  { %v3161_v43 = vadd.f32 %v3160_v41, %v3159_v38  ;;  %v3162_v5 = vpop.f32.mrb[34].mxu1  ;;  %v3127_v47 = vpop.f32.mrb[35].mxu0 }
 0x13a   :  { %v1042_v54 = vadd.f32 %v3125_v40, %v4122_v44  ;;  %v3128_v55 = vadd.f32 %v3127_v47, %v3126_v42  ;;  %v3163_v57 = vpop.f32.mrb[35].mxu1 }
 0x13b   :  { %v4170_v9 = vadd.f32 %v3161_v43, %v993_v49  ;;  %v3164_v15 = vadd.f32 %v3163_v57, %v3162_v5 }
 0x13c   :  { %v1104_v62 = vmax.f32 %v1042_v54, 0.0  ;;  %v1045_v21 = vadd.f32 %v3128_v55, %v4125_v50 }
 0x13d   :  { %v4174_v61 = vadd.f32 %v3164_v15, %v996_v3 }
 0x13e   :  { %v1105_v63 = vmax.f32 %v1045_v21, 0.0  ;;  %v3129_v2 = vpop.f32.mrb[36].mxu0  ;;  %3199 = vmatprep.mubr.msk.f32.mxu1 %vm1124_vm0, %v1104_v62 }
 0x13f   :  { %v3165_v4 = vpop.f32.mrb[36].mxu1  ;;  %v3130_v44 = vpop.f32.mrb[37].mxu0 }
 0x140   :  { %v3131_v8 = vadd.f32 %v3130_v44, %v3129_v2  ;;  %v3166_v49 = vpop.f32.mrb[37].mxu1  ;;  %v3132_v12 = vpop.f32.mrb[38].mxu0  ;;  %3200 = vmatmul.mubr.msk.f32.vlgmr.msra.gmra.mrb[40].mxu1 %vm1124_vm0, %v1105_v63 }
 0x141   :  { %v3167_v13 = vadd.f32 %v3166_v49, %v3165_v4  ;;  %v3168_v53 = vpop.f32.mrb[38].mxu1  ;;  %v3133_v16 = vpop.f32.mrb[39].mxu0 }
 0x142   :  { %v1050_v50 = vadd.f32 %v3131_v8, %v4129_v10  ;;  %v3134_v3 = vadd.f32 %v3133_v16, %v3132_v12  ;;  %v3169_v18 = vpop.f32.mrb[39].mxu1 }
 0x143   :  { %v4180_v7 = vadd.f32 %v3167_v13, %v1001_v29  ;;  %v3170_v20 = vadd.f32 %v3169_v18, %v3168_v53  ;;  %v1117_v13 = vmax.f32 %v4174_v61, 0.0 }
 0x144   :  { %v1106_v22 = vmax.f32 %v1050_v50, 0.0  ;;  %v1053_v23 = vadd.f32 %v3134_v3, %v4132_v14 }
 0x145   :  { %v1101_v19 = vadd.f32 %v3170_v20, %v1004_v31  ;;  %v1118_v53 = vmax.f32 %v4180_v7, 0.0 }
 0x146   :  { %v1107_v1 = vmax.f32 %v1053_v23, 0.0  ;;  %v3135_v56 = vpop.f32.mrb[40].mxu0  ;;  %3202 = vmatprep.mubr.msk.f32.mxu1 %vm1124_vm0, %v1106_v22 }
 0x147   :  { %v3136_v25 = vpop.f32.mrb[41].mxu0 }
 0x148   :  { %v3137_v27 = vadd.f32 %v3136_v25, %v3135_v56  ;;  %v3138_v28 = vpop.f32.mrb[42].mxu0  ;;  %3203 = vmatmul.mubr.msk.f32.gmra.mrb[42].mxu1 %vm1124_vm0, %v1107_v1 }
 0x149   :  { %v3139_v10 = vpop.f32.mrb[43].mxu0 }
 0x14a   :  { %v1058_v59 = vadd.f32 %v3137_v27, %v4137_v30  ;;  %v3140_v29 = vadd.f32 %v3139_v10, %v3138_v28 }
 0x14c   :  { %v1108_v11 = vmax.f32 %v1058_v59, 0.0  ;;  %v1061_v36 = vadd.f32 %v3140_v29, %v4140_v37  ;;  %v1458_v29 = vpop.permute.xlu1 %1457 }
 0x14e   :  { %v1109_v38 = vmax.f32 %v1061_v36, 0.0  ;;  %v3141_v39 = vpop.f32.mrb[44].mxu0  ;;  %3205 = vmatprep.mubr.msk.f32.mxu1 %vm1124_vm0, %v1108_v11 }
 0x14f   :  { %v3142_v14 = vpop.f32.mrb[45].mxu0 }
 0x150   :  { %v3143_v31 = vadd.f32 %v3142_v14, %v3141_v39  ;;  %v3144_v17 = vpop.f32.mrb[46].mxu0  ;;  %3206 = vmatmul.mubr.msk.f32.gmra.mrb[44].mxu1 %vm1124_vm0, %v1109_v38  ;;  %v1456_v39 = vpop.permute.xlu0 %1455 }
 0x151   :  { %v3145_v40 = vpop.f32.mrb[47].mxu0 }
 0x152   :  { %v1066_v41 = vadd.f32 %v3143_v31, %v4145_v60  ;;  %v3146_v42 = vadd.f32 %v3145_v40, %v3144_v17 }
 0x154   :  { %v1110_v43 = vmax.f32 %v1066_v41, 0.0  ;;  %v1069_v30 = vadd.f32 %v3146_v42, %v4148_v0 }
 0x156   :  { %v1111_v5 = vmax.f32 %v1069_v30, 0.0  ;;  %v3147_v47 = vpop.f32.mrb[48].mxu0  ;;  %3208 = vmatprep.mubr.msk.f32.mxu1 %vm1124_vm0, %v1110_v43 }
 0x157   :  { %v3148_v37 = vpop.f32.mrb[49].mxu0 }
 0x158   :  { %v3149_v54 = vadd.f32 %v3148_v37, %v3147_v47  ;;  %v3150_v55 = vpop.f32.mrb[50].mxu0  ;;  %3209 = vmatmul.mubr.msk.f32.gmra.mrb[46].mxu1 %vm1124_vm0, %v1111_v5 }
 0x159   :  { %v3151_v57 = vpop.f32.mrb[51].mxu0 }
 0x15a   :  { %v1074_v15 = vadd.f32 %v3149_v54, %v4153_v24  ;;  %v3152_v58 = vadd.f32 %v3151_v57, %v3150_v55 }
 0x15c   :  { %v1112_v62 = vmax.f32 %v1074_v15, 0.0  ;;  %v1077_v60 = vadd.f32 %v3152_v58, %v4156_v26  ;;  %v1116_v26 = vmax.f32 %v4170_v9, 0.0 }
 0x15e   :  { %v1113_v21 = vmax.f32 %v1077_v60, 0.0  ;;  %v3153_v63 = vpop.f32.mrb[52].mxu0  ;;  %3211 = vmatprep.mubr.msk.f32.mxu1 %vm1124_vm0, %v1112_v62 }
 0x15f   :  { %v3154_v0 = vpop.f32.mrb[53].mxu0 }
 0x160   :  { %v3155_v2 = vadd.f32 %v3154_v0, %v3153_v63  ;;  %v3156_v4 = vpop.f32.mrb[54].mxu0  ;;  %3212 = vmatmul.mubr.msk.f32.gmra.mrb[48].mxu1 %vm1124_vm0, %v1113_v21  ;;  %v1460_v63 = vpop.permute.xlu1 %1459 }
 0x161   :  { %v3157_v44 = vpop.f32.mrb[55].mxu0 }
 0x162   :  { %v1082_v6 = vadd.f32 %v3155_v2, %v4159_v45  ;;  %v3158_v8 = vadd.f32 %v3157_v44, %v3156_v4  ;;  %v1119_v45 = vmax.f32 %v1101_v19, 0.0 }
 0x164   :  { %v1114_v49 = vmax.f32 %v1082_v6, 0.0  ;;  %v1085_v24 = vadd.f32 %v3158_v8, %v4162_v51  ;;  %v5706_v51 = vlaneseq  ;;  %v1462_v2 = vpop.permute.xlu1 %1461 }
 0x166   :  { %v1115_v12 = vmax.f32 %v1085_v24, 0.0  ;;  %3214 = vmatprep.mubr.msk.f32.mxu1 %vm1124_vm0, %v1114_v49  ;;  %v4209_v16 = vand.u32 127, %v5706_v51 }
 0x168   :  { %3215 = vmatmul.mubr.msk.f32.gmra.mrb[50].mxu1 %vm1124_vm0, %v1115_v12  ;;  %5759 = vst [vmem:[#allocation7_spill] sm:$0xff] %v4209_v16  ;;  %vm1685_vm1 = vcmp.ge.s32.totalorder %v4209_v16, 8  ;;  %vm1686_vm2 = vcmp.lt.s32.totalorder %v4209_v16, 29  ;;  %vm2064_vm4 = vcmp.ge.s32.totalorder %v4209_v16, 29  ;;  %vm2065_vm5 = vcmp.lt.s32.totalorder %v4209_v16, 50 }
 0x169   :  { %3217 = vmatprep.mubr.msk.f32.mxu1 %vm1124_vm0, %v1116_v26  ;;  %vm4213_vm3 = vmand %vm1685_vm1, %vm1686_vm2  ;;  %vm2443_vm7 = vcmp.ge.s32.totalorder %v4209_v16, 50  ;;  %vm2444_vm8 = vcmp.lt.s32.totalorder %v4209_v16, 71 }
 0x16a   :  { %vm4228_vm6 = vmand %vm2064_vm4, %vm2065_vm5 }
 0x16b   :  { %vm4245_vm9 = vmand %vm2443_vm7, %vm2444_vm8 }
 0x16c   :  { %3218 = vmatmul.mubr.msk.f32.gmra.mrb[52].mxu1 %vm1124_vm0, %v1117_v13 }
 0x16d   :  { %3220 = vmatprep.mubr.msk.f32.mxu1 %vm1124_vm0, %v1118_v53 }
 0x170   :  { %3221 = vmatmul.mubr.msk.f32.gmra.mrb[54].mxu1 %vm1124_vm0, %v1119_v45 }
 0x213   :  { %v3201_v61 = vpop.f32.mrb[40].mxu1 }
 0x214   :  { %v1239_v50 = vpop.f32.mrb[41].mxu1  ;;  %v4221_v3 = vsel %vm4213_vm3, %v3201_v61, -1e+30  ;;  %v1321_v20 = vsub.f32 %v3201_v61, %v3930_v32  ;;  %v4238_v22 = vsel %vm4228_vm6, %v3201_v61, -1e+30  ;;  %v1504_v38 = vsub.f32 %v3201_v61, %v1458_v29 }
 0x215   :  { %1708 = vmax.xlane.f32.xlu1 %v4221_v3  ;;  %v4226_v18 = vsel %vm4213_vm3, %v1239_v50, -1e+30  ;;  %v4243_v23 = vsel %vm4228_vm6, %v1239_v50, -1e+30  ;;  %v4252_v25 = vsel %vm4245_vm9, %v3201_v61, -1e+30  ;;  %v1503_v14 = vsub.f32 %v1239_v50, %v1456_v39 }
 0x216   :  { %1706 = vmax.xlane.f32.xlu0 %v4226_v18  ;;  %v1337_v32 = vmul.f32 %v1321_v20, %v1321_v20  ;;  %v4258_v28 = vsel %vm4245_vm9, %v1239_v50, -1e+30  ;;  %v1520_v31 = vmul.f32 %v1504_v38, %v1504_v38  ;;  %v1320_v54 = vsub.f32 %v1239_v50, %v3986_v46  ;;  %v1464_v20 = vpop.permute.xlu0 %1463 }
 0x217   :  { %v1519_v17 = vmul.f32 %v1503_v14, %v1503_v14 }
 0x218   :  { %v1356_v27 = vsel %vm1352_vm10, %v1337_v32, 0.0  ;;  %v1336_v55 = vmul.f32 %v1320_v54, %v1320_v54 }
 0x219   :  { %2087 = vmax.xlane.f32.xlu1 %v4238_v22 }
 0x21a   :  { %2085 = vmax.xlane.f32.xlu0 %v4243_v23  ;;  %v1353_v57 = vsel %vm1352_vm10, %v1336_v55, 0.0 }
 0x21b   :  { %v3204_v1 = vpop.f32.mrb[42].mxu1 }
 0x21c   :  { %v1249_v56 = vpop.f32.mrb[43].mxu1  ;;  %v4291_v15 = vsel %vm4213_vm3, %v3204_v1, -1e+30  ;;  %v4301_v62 = vsel %vm4228_vm6, %v3204_v1, -1e+30  ;;  %v1506_v4 = vsub.f32 %v3204_v1, %v1462_v2  ;;  %v1323_v8 = vsub.f32 %v3204_v1, %v3944_v34 }
 0x21d   :  { %2466 = vmax.xlane.f32.xlu1 %v4252_v25  ;;  %v4296_v58 = vsel %vm4213_vm3, %v1249_v56, -1e+30  ;;  %v4306_v46 = vsel %vm4228_vm6, %v1249_v56, -1e+30  ;;  %v4311_v60 = vsel %vm4245_vm9, %v3204_v1, -1e+30  ;;  %v1505_v0 = vsub.f32 %v1249_v56, %v1460_v63 }
 0x21e   :  { %1357 = vadd.xlane.f32.xlu0 %v1356_v27  ;;  %v4316_v21 = vsel %vm4245_vm9, %v1249_v56, -1e+30  ;;  %v1522_v6 = vmul.f32 %v1506_v4, %v1506_v4  ;;  %v1339_v24 = vmul.f32 %v1323_v8, %v1323_v8  ;;  %v1322_v12 = vsub.f32 %v1249_v56, %v3937_v33  ;;  %v1466_v56 = vpop.permute.xlu1 %1465 }
 0x21f   :  { %v1521_v44 = vmul.f32 %v1505_v0, %v1505_v0 }
 0x220   :  { %v1362_v13 = vsel %vm1352_vm10, %v1339_v24, 0.0  ;;  %v1338_v34 = vmul.f32 %v1322_v12, %v1322_v12 }
 0x221   :  { %2464 = vmax.xlane.f32.xlu1 %v4258_v28 }
 0x222   :  { %v1359_v33 = vsel %vm1352_vm10, %v1338_v34, 0.0 }
 0x223   :  { %v4261_v10 = vpop.f32.mrb[44].mxu1 }
 0x224   :  { %v4263_v59 = vpop.f32.mrb[45].mxu1  ;;  %v4325_v49 = vsel %vm4245_vm9, %v4261_v10, -1e+30  ;;  %v4346_v45 = vsel %vm4213_vm3, %v4261_v10, -1e+30  ;;  %v1508_v27 = vsub.f32 %v4261_v10, %v1466_v56 }
 0x225   :  { %v4332_v26 = vsel %vm4213_vm3, %v4263_v59, -1e+30  ;;  %v4339_v53 = vsel %vm4228_vm6, %v4263_v59, -1e+30  ;;  %5766 = vst [vmem:[#allocation8_spill] sm:$0xff] %v4346_v45  ;;  %v1507_v32 = vsub.f32 %v4263_v59, %v1464_v20  ;;  %v1324_v38 = vsub.f32 %v4263_v59, %v3997_v48 }
 0x226   :  { %v4352_v61 = vsel %vm4228_vm6, %v4261_v10, -1e+30  ;;  %v4358_v50 = vsel %vm4245_vm9, %v4263_v59, -1e+30  ;;  %v1524_v29 = vmul.f32 %v1508_v27, %v1508_v27  ;;  %v1470_v59 = vpop.permute.xlu1 %1469 }
 0x227   :  { %5767 = vst [vmem:[#allocation9_spill] sm:$0xff] %v4352_v61  ;;  %5768 = vst [vmem:[#allocation10_spill] sm:$0xff] %v4358_v50  ;;  %v1523_v1 = vmul.f32 %v1507_v32, %v1507_v32  ;;  %v1340_v39 = vmul.f32 %v1324_v38, %v1324_v38 }
 0x229   :  { %v1365_v14 = vsel %vm1352_vm10, %v1340_v39, 0.0 }
 0x22a   :  { %v4383_v63 = vpop.permute.xlu1 %1473 }
 0x22b   :  { %v4265_v11 = vpop.f32.mrb[46].mxu1 }
 0x22c   :  { %v4267_v36 = vpop.f32.mrb[47].mxu1  ;;  %v4388_v0 = vsel %vm4213_vm3, %v4265_v11, -1e+30  ;;  %v1510_v32 = vsub.f32 %v4265_v11, %v1470_v59 }
 0x22d   :  { %v4379_v54 = vsel %vm4228_vm6, %v4267_v36, -1e+30  ;;  %5769 = vst [vmem:[#allocation11_spill] sm:$0xff] %v4388_v0  ;;  %v4414_v12 = vsel %vm4245_vm9, %v4267_v36, -1e+30  ;;  %v1326_v38 = vsub.f32 %v4267_v36, %v4010_v52 }
 0x22e   :  { %v4396_v2 = vpop.permute.xlu1 %1477  ;;  %5771 = vst [vmem:[#allocation13_spill] sm:$0xff] %v4414_v12  ;;  %v1526_v56 = vmul.f32 %v1510_v32, %v1510_v32 }
 0x232   :  { %1553 = vrot.lane.b32.xlu1 %v1520_v31, %s3601_s2  ;;  %v4371_v31 = vsel %vm4213_vm3, %v4267_v36, -1e+30  ;;  %v4408_v24 = vpop.permute.xlu1 %1481 }
 0x233   :  { %v4270_v40 = vpop.f32.mrb[48].mxu1 }
 0x234   :  { %1551 = vrot.lane.b32.xlu0 %v1519_v17, %s3601_s2  ;;  %v4273_v41 = vpop.f32.mrb[49].mxu1  ;;  %v1325_v17 = vsub.f32 %v4261_v10, %v3951_v35  ;;  %v4394_v10 = vsel %vm4228_vm6, %v4265_v11, -1e+30 }
 0x235   :  { %5770 = vst [vmem:[#allocation12_spill] sm:$0xff] %v4394_v10  ;;  %v4455_v52 = vsel %vm4228_vm6, %v4273_v41, -1e+30 }
 0x236   :  { %v1341_v48 = vmul.f32 %v1325_v17, %v1325_v17  ;;  %v4419_v34 = vpop.permute.xlu1 %1485 }
 0x238   :  { %v1368_v55 = vsel %vm1352_vm10, %v1341_v48, 0.0 }
 0x23a   :  { %v4423_v20 = vpop.permute.xlu1 %1886 }
 0x23b   :  { %v4275_v42 = vpop.f32.mrb[50].mxu1  ;;  %5772 = vst [vmem:[#allocation14_spill] sm:$0xff] %v4423_v20 }
 0x23c   :  { %v4277_v43 = vpop.f32.mrb[51].mxu1 }
 0x23e   :  { %v4428_v27 = vpop.permute.xlu1 %1889 }
 0x23f   :  { %v4279_v30 = vpop.f32.mrb[52].mxu1  ;;  %5774 = vst [vmem:[#allocation16_spill] sm:$0xff] %v4428_v27 }
 0x240   :  { %v4281_v5 = vpop.f32.mrb[53].mxu1 }
 0x242   :  { %v4435_v39 = vpop.permute.xlu1 %1892 }
 0x243   :  { %v4283_v47 = vpop.f32.mrb[54].mxu1  ;;  %5776 = vst [vmem:[#allocation18_spill] sm:$0xff] %v4435_v39 }
 0x244   :  { %v4285_v37 = vpop.f32.mrb[55].mxu1 }
 0x246   :  { %v4439_v48 = vpop.permute.xlu1 %1895 }
 0x247   :  { %5778 = vst [vmem:[#allocation20_spill] sm:$0xff] %v4439_v48  ;;  %v3567_v48 = vld [vmem:[%s5702_s3 + $0x40] sm:$0xff] }
 0x253   :  { %1354 = vadd.xlane.f32.xlu0 %v1353_v57  ;;  %v1468_v57 = vpop.permute.xlu0 %1467 }
 0x254   :  { %v1509_v4 = vsub.f32 %v4267_v36, %v1468_v57  ;;  %v4447_v57 = vsel %vm4213_vm3, %v4273_v41, -1e+30 }
 0x256   :  { %1712 = vmax.xlane.f32.xlu1 %v4291_v15  ;;  %v1525_v8 = vmul.f32 %v1509_v4, %v1509_v4  ;;  %v4449_v4 = vpop.permute.xlu1 %1898 }
 0x257   :  { %1710 = vmax.xlane.f32.xlu0 %v4296_v58  ;;  %v1472_v35 = vpop.permute.xlu0 %1471  ;;  %5780 = vst [vmem:[#allocation22_spill] sm:$0xff] %v4449_v4 }
 0x25a   :  { %2091 = vmax.xlane.f32.xlu1 %v4301_v62 }
 0x25b   :  { %2089 = vmax.xlane.f32.xlu0 %v4306_v46 }
 0x25e   :  { %2470 = vmax.xlane.f32.xlu1 %v4311_v60 }
 0x262   :  { %2468 = vmax.xlane.f32.xlu1 %v4316_v21 }
 0x271   :  { %1555 = vrot.lane.b32.xlu0 %v1521_v44, %s3601_s2  ;;  %v4403_v44 = vsel %vm4245_vm9, %v4265_v11, -1e+30 }
 0x273   :  { %1557 = vrot.lane.b32.xlu1 %v1522_v6, %s3601_s2  ;;  %v4405_v6 = vpop.permute.xlu0 %1475 }
 0x290   :  { %2474 = vmax.xlane.f32.xlu0 %v4325_v49 }
 0x294   :  { %1714 = vmax.xlane.f32.xlu0 %v4332_v26 }
 0x297   :  { %1363 = vadd.xlane.f32.xlu1 %v1362_v13  ;;  %v4417_v13 = vpop.permute.xlu0 %1479 }
 0x298   :  { %2093 = vmax.xlane.f32.xlu0 %v4339_v53 }
 0x29b   :  { %1360 = vadd.xlane.f32.xlu1 %v1359_v33  ;;  %v4421_v33 = vpop.permute.xlu0 %1483 }
 0x29f   :  { %1716 = vmax.xlane.f32.xlu1 %v4346_v45 }
 0x2a3   :  { %2095 = vmax.xlane.f32.xlu1 %v4352_v61 }
 0x2a7   :  { %2472 = vmax.xlane.f32.xlu1 %v4358_v50 }
 0x2ae   :  { %1559 = vrot.lane.b32.xlu0 %v1523_v1, %s3601_s2  ;;  %v4426_v1 = vpop.permute.xlu0 %1883 }
 0x2af   :  { %5773 = vst [vmem:[#allocation15_spill] sm:$0xff] %v4426_v1 }
 0x2b8   :  { %1561 = vrot.lane.b32.xlu1 %v1524_v29, %s3601_s2  ;;  %v4431_v29 = vpop.permute.xlu0 %1910 }
 0x2b9   :  { %5775 = vst [vmem:[#allocation17_spill] sm:$0xff] %v4431_v29 }
 0x2bc   :  { %v4437_v17 = vpop.permute.xlu0 %1916 }
 0x2bd   :  { %5777 = vst [vmem:[#allocation19_spill] sm:$0xff] %v4437_v17  ;;  %v1511_v17 = vsub.f32 %v4273_v41, %v1472_v35 }
 0x2cd   :  { %1366 = vadd.xlane.f32.xlu0 %v1365_v14  ;;  %v1342_v14 = vmul.f32 %v1326_v38, %v1326_v38 }
 0x2cf   :  { %v1371_v59 = vsel %vm1352_vm10, %v1342_v14, 0.0 }
 0x2d1   :  { %1718 = vmax.xlane.f32.xlu0 %v4371_v31 }
 0x2d5   :  { %2097 = vmax.xlane.f32.xlu0 %v4379_v54 }
 0x2dc   :  { %1369 = vadd.xlane.f32.xlu1 %v1368_v55  ;;  %v4442_v55 = vpop.permute.xlu0 %1922 }
 0x2dd   :  { %5779 = vst [vmem:[#allocation21_spill] sm:$0xff] %v4442_v55 }
 0x2e0   :  { %1720 = vmax.xlane.f32.xlu1 %v4388_v0  ;;  %v4457_v36 = vpop.permute.xlu0 %1928 }
 0x2e1   :  { %5781 = vst [vmem:[#allocation23_spill] sm:$0xff] %v4457_v36 }
 0x2e4   :  { %2099 = vmax.xlane.f32.xlu1 %v4394_v10  ;;  %v4462_v32 = vpop.permute.xlu0 %2262 }
 0x2e5   :  { %5783 = vst [vmem:[#allocation25_spill] sm:$0xff] %v4462_v32 }
 0x2e8   :  { %2478 = vmax.xlane.f32.xlu1 %v4403_v44  ;;  %v4470_v51 = vpop.permute.xlu0 %2265 }
 0x2e9   :  { %5785 = vst [vmem:[#allocation27_spill] sm:$0xff] %v4470_v51 }
 0x2eb   :  { %1563 = vrot.lane.b32.xlu0 %v1525_v8, %s3601_s2  ;;  %v4460_v8 = vpop.permute.xlu1 %1901 }
 0x2ec   :  { %2476 = vmax.xlane.f32.xlu1 %v4414_v12  ;;  %5782 = vst [vmem:[#allocation24_spill] sm:$0xff] %v4460_v8  ;;  %v4476_v29 = vpop.permute.xlu0 %2274  ;;  %v4481_v8 = vsel %vm4213_vm3, %v4270_v40, -1e+30 }
 0x2ed   :  { %5787 = vst [vmem:[#allocation29_spill] sm:$0xff] %v4476_v29  ;;  %5788 = vst [vmem:[#allocation30_spill] sm:$0xff] %v4481_v8  ;;  %v1512_v29 = vsub.f32 %v4270_v40, %v4383_v63 }
 0x2ef   :  { %v4468_v14 = vpop.permute.xlu1 %1904  ;;  %v1528_v39 = vmul.f32 %v1512_v29, %v1512_v29  ;;  %v4548_v29 = vsel %vm4228_vm6, %v4277_v43, -1e+30 }
 0x2f0   :  { %5784 = vst [vmem:[#allocation26_spill] sm:$0xff] %v4468_v14  ;;  %v4493_v35 = vpop.permute.xlu0 %2644  ;;  %5806 = vst [vmem:[#allocation48_spill] sm:$0xff] %v4548_v29 }
 0x2f1   :  { %5791 = vst [vmem:[#allocation33_spill] sm:$0xff] %v4493_v35 }
 0x2f3   :  { %v4472_v55 = vpop.permute.xlu1 %1907 }
 0x2f4   :  { %5786 = vst [vmem:[#allocation28_spill] sm:$0xff] %v4472_v55 }
 0x2fd   :  { %1565 = vrot.lane.b32.xlu1 %v1526_v56, %s3601_s2  ;;  %v3566_v56 = vld [vmem:[%s5702_s3 + $0x38] sm:$0xff] }
 0x2fe   :  { %v1327_v38 = vsub.f32 %v4265_v11, %v3566_v56  ;;  %v4484_v11 = vpop.permute.xlu1 %1913  ;;  %v1527_v56 = vmul.f32 %v1511_v17, %v1511_v17  ;;  %v4503_v17 = vpop.permute.xlu0 %2647 }
 0x2ff   :  { %5789 = vst [vmem:[#allocation31_spill] sm:$0xff] %v4484_v11  ;;  %5793 = vst [vmem:[#allocation35_spill] sm:$0xff] %v4503_v17  ;;  %v1328_v17 = vsub.f32 %v4273_v41, %v3567_v48 }
 0x302   :  { %v4513_v55 = vpop.permute.xlu0 %2653 }
 0x303   :  { %5796 = vst [vmem:[#allocation38_spill] sm:$0xff] %v4513_v55 }
 0x306   :  { %v4517_v14 = vpop.permute.xlu0 %2280 }
 0x307   :  { %5798 = vst [vmem:[#allocation40_spill] sm:$0xff] %v4517_v14 }
 0x30a   :  { %1372 = vadd.xlane.f32.xlu0 %v1371_v59  ;;  %v1343_v59 = vmul.f32 %v1327_v38, %v1327_v38  ;;  %v4495_v38 = vpop.permute.xlu1 %1919  ;;  %v4527_v27 = vpop.permute.xlu0 %2656 }
 0x30b   :  { %5792 = vst [vmem:[#allocation34_spill] sm:$0xff] %v4495_v38  ;;  %5800 = vst [vmem:[#allocation42_spill] sm:$0xff] %v4527_v27 }
 0x30c   :  { %v1374_v36 = vsel %vm1352_vm10, %v1343_v59, 0.0  ;;  %v4500_v59 = vsel %vm4245_vm9, %v4270_v40, -1e+30 }
 0x30e   :  { %1722 = vmax.xlane.f32.xlu0 %v4447_v57  ;;  %v4511_v11 = vpop.permute.xlu1 %1925  ;;  %v4533_v63 = vpop.permute.xlu0 %2283 }
 0x30f   :  { %5795 = vst [vmem:[#allocation37_spill] sm:$0xff] %v4511_v11  ;;  %v1344_v11 = vmul.f32 %v1328_v17, %v1328_v17  ;;  %5802 = vst [vmem:[#allocation44_spill] sm:$0xff] %v4533_v63 }
 0x311   :  { %v1377_v14 = vsel %vm1352_vm10, %v1344_v11, 0.0 }
 0x312   :  { %2101 = vmax.xlane.f32.xlu0 %v4455_v52  ;;  %v4515_v38 = vpop.permute.xlu1 %2268 }
 0x313   :  { %5797 = vst [vmem:[#allocation39_spill] sm:$0xff] %v4515_v38  ;;  %v4540_v38 = vsel %vm4213_vm3, %v4277_v43, -1e+30 }
 0x314   :  { %5804 = vst [vmem:[#allocation46_spill] sm:$0xff] %v4540_v38 }
 0x316   :  { %v4521_v4 = vpop.permute.xlu1 %2271 }
 0x317   :  { %5799 = vst [vmem:[#allocation41_spill] sm:$0xff] %v4521_v4 }
 0x31a   :  { %v4530_v55 = vpop.permute.xlu1 %2277 }
 0x31b   :  { %5801 = vst [vmem:[#allocation43_spill] sm:$0xff] %v4530_v55  ;;  %v1513_v55 = vsub.f32 %v4277_v43, %v4405_v6 }
 0x31e   :  { %v4535_v4 = vpop.permute.xlu1 %2641 }
 0x31f   :  { %5803 = vst [vmem:[#allocation45_spill] sm:$0xff] %v4535_v4 }
 0x321   :  { %1375 = vadd.xlane.f32.xlu1 %v1374_v36  ;;  %v4490_v36 = vsel %vm4228_vm6, %v4270_v40, -1e+30 }
 0x322   :  { %5790 = vst [vmem:[#allocation32_spill] sm:$0xff] %v4490_v36 }
 0x325   :  { %1724 = vmax.xlane.f32.xlu1 %v4481_v8 }
 0x328   :  { %1567 = vrot.lane.b32.xlu0 %v1527_v56, %s3601_s2  ;;  %v4508_v56 = vsel %vm4245_vm9, %v4273_v41, -1e+30  ;;  %v4543_v41 = vpop.permute.xlu0 %2659 }
 0x329   :  { %2103 = vmax.xlane.f32.xlu1 %v4490_v36  ;;  %5794 = vst [vmem:[#allocation36_spill] sm:$0xff] %v4508_v56  ;;  %5805 = vst [vmem:[#allocation47_spill] sm:$0xff] %v4543_v41  ;;  %v3568_v41 = vld [vmem:[%s5702_s3 + $0x48] sm:$0xff] }
 0x32a   :  { %v1329_v63 = vsub.f32 %v4270_v40, %v3568_v41  ;;  %v4580_v40 = vsel %vm4213_vm3, %v4275_v42, -1e+30  ;;  %v4596_v41 = vsel %vm4245_vm9, %v4275_v42, -1e+30 }
 0x32b   :  { %5816 = vst [vmem:[#allocation58_spill] sm:$0xff] %v4580_v40  ;;  %5820 = vst [vmem:[#allocation62_spill] sm:$0xff] %v4596_v41 }
 0x32c   :  { %v4553_v48 = vpop.permute.xlu0 %2286 }
 0x32d   :  { %2482 = vmax.xlane.f32.xlu1 %v4500_v59  ;;  %5808 = vst [vmem:[#allocation50_spill] sm:$0xff] %v4553_v48  ;;  %v1529_v48 = vmul.f32 %v1513_v55, %v1513_v55  ;;  %v4588_v55 = vsel %vm4228_vm6, %v4275_v42, -1e+30 }
 0x32e   :  { %5818 = vst [vmem:[#allocation60_spill] sm:$0xff] %v4588_v55 }
 0x330   :  { %v4557_v11 = vpop.permute.xlu0 %2662 }
 0x331   :  { %2480 = vmax.xlane.f32.xlu1 %v4508_v56  ;;  %5810 = vst [vmem:[#allocation52_spill] sm:$0xff] %v4557_v11 }
 0x334   :  { %v4567_v27 = vpop.permute.xlu0 %2665 }
 0x335   :  { %5812 = vst [vmem:[#allocation54_spill] sm:$0xff] %v4567_v27 }
 0x342   :  { %1569 = vrot.lane.b32.xlu1 %v1528_v39, %s3601_s2  ;;  %v4551_v39 = vpop.permute.xlu1 %2650 }
 0x343   :  { %5807 = vst [vmem:[#allocation49_spill] sm:$0xff] %v4551_v39  ;;  %v1345_v39 = vmul.f32 %v1329_v63, %v1329_v63 }
 0x347   :  { %1378 = vadd.xlane.f32.xlu0 %v1377_v14  ;;  %v4555_v14 = vpop.permute.xlu1 %2289 }
 0x348   :  { %5809 = vst [vmem:[#allocation51_spill] sm:$0xff] %v4555_v14  ;;  %v1380_v14 = vsel %vm1352_vm10, %v1345_v39, 0.0 }
 0x34b   :  { %1726 = vmax.xlane.f32.xlu0 %v4540_v38  ;;  %v4559_v17 = vpop.permute.xlu1 %2671 }
 0x34c   :  { %5811 = vst [vmem:[#allocation53_spill] sm:$0xff] %v4559_v17  ;;  %v4573_v17 = vpop.permute.xlu0 %2292 }
 0x34d   :  { %5814 = vst [vmem:[#allocation56_spill] sm:$0xff] %v4573_v17  ;;  %v3569_v17 = vld [vmem:[%s5702_s3 + $0x50] sm:$0xff] }
 0x34f   :  { %2105 = vmax.xlane.f32.xlu0 %v4548_v29  ;;  %v4569_v35 = vpop.permute.xlu1 %2674  ;;  %v4784_v29 = vsel %vm4213_vm3, %v4283_v47, -1e+30 }
 0x350   :  { %5813 = vst [vmem:[#allocation55_spill] sm:$0xff] %v4569_v35  ;;  %v4583_v6 = vpop.permute.xlu0 %2668  ;;  %5851 = vst [vmem:[#allocation93_spill] sm:$0xff] %v4784_v29 }
 0x351   :  { %5817 = vst [vmem:[#allocation59_spill] sm:$0xff] %v4583_v6  ;;  %v1514_v6 = vsub.f32 %v4275_v42, %v4396_v2 }
 0x353   :  { %v4575_v11 = vpop.permute.xlu1 %2677  ;;  %v1530_v20 = vmul.f32 %v1514_v6, %v1514_v6 }
 0x354   :  { %5815 = vst [vmem:[#allocation57_spill] sm:$0xff] %v4575_v11  ;;  %v4598_v39 = vpop.permute.xlu0 %2295 }
 0x355   :  { %5821 = vst [vmem:[#allocation63_spill] sm:$0xff] %v4598_v39  ;;  %v1330_v39 = vsub.f32 %v4277_v43, %v3569_v17 }
 0x357   :  { %v4590_v63 = vpop.permute.xlu1 %2680  ;;  %v1346_v27 = vmul.f32 %v1330_v39, %v1330_v39 }
 0x358   :  { %5819 = vst [vmem:[#allocation61_spill] sm:$0xff] %v4590_v63  ;;  %v4609_v11 = vpop.permute.xlu0 %2298 }
 0x359   :  { %5824 = vst [vmem:[#allocation66_spill] sm:$0xff] %v4609_v11  ;;  %v1383_v51 = vsel %vm1352_vm10, %v1346_v27, 0.0  ;;  %v4642_v27 = vsel %vm4228_vm6, %v4281_v5, -1e+30 }
 0x35a   :  { %5829 = vst [vmem:[#allocation71_spill] sm:$0xff] %v4642_v27 }
 0x35c   :  { %v4617_v35 = vpop.permute.xlu0 %2301 }
 0x35d   :  { %5825 = vst [vmem:[#allocation67_spill] sm:$0xff] %v4617_v35  ;;  %v1515_v35 = vsub.f32 %v4281_v5, %v4417_v13 }
 0x35f   :  { %v1531_v1 = vmul.f32 %v1515_v35, %v1515_v35 }
 0x360   :  { %v4624_v4 = vpop.permute.xlu0 %2304 }
 0x361   :  { %5826 = vst [vmem:[#allocation68_spill] sm:$0xff] %v4624_v4 }
 0x364   :  { %v4635_v17 = vpop.permute.xlu0 %2307 }
 0x365   :  { %1571 = vrot.lane.b32.xlu0 %v1529_v48, %s3601_s2  ;;  %v4601_v48 = vpop.permute.xlu1 %2683  ;;  %5828 = vst [vmem:[#allocation70_spill] sm:$0xff] %v4635_v17 }
 0x366   :  { %1381 = vadd.xlane.f32.xlu1 %v1380_v14  ;;  %5822 = vst [vmem:[#allocation64_spill] sm:$0xff] %v4601_v48  ;;  %v4606_v14 = vsel %vm4245_vm9, %v4277_v43, -1e+30  ;;  %v4632_v43 = vsel %vm4213_vm3, %v4281_v5, -1e+30 }
 0x367   :  { %5823 = vst [vmem:[#allocation65_spill] sm:$0xff] %v4606_v14  ;;  %5827 = vst [vmem:[#allocation69_spill] sm:$0xff] %v4632_v43 }
 0x369   :  { %v4611_v63 = vpop.xlane.xlu1 %1708 }
 0x36a   :  { %1728 = vmax.xlane.f32.xlu1 %v4580_v40 }
 0x36d   :  { %v4619_v48 = vpop.xlane.xlu1 %2087 }
 0x36e   :  { %2107 = vmax.xlane.f32.xlu1 %v4588_v55 }
 0x371   :  { %v4626_v11 = vpop.xlane.xlu1 %2466 }
 0x372   :  { %2486 = vmax.xlane.f32.xlu1 %v4596_v41 }
 0x375   :  { %v4637_v2 = vpop.xlane.xlu1 %2464 }
 0x376   :  { %2484 = vmax.xlane.f32.xlu1 %v4606_v14 }
 0x384   :  { %1384 = vadd.xlane.f32.xlu0 %v1383_v51  ;;  %v4645_v51 = vpop.permute.xlu0 %2686 }
 0x385   :  { %5830 = vst [vmem:[#allocation72_spill] sm:$0xff] %v4645_v51  ;;  %v3570_v51 = vld [vmem:[%s5702_s3 + $0x58] sm:$0xff] }
 0x386   :  { %v1331_v14 = vsub.f32 %v4275_v42, %v3570_v51 }
 0x387   :  { %1573 = vrot.lane.b32.xlu1 %v1530_v20, %s3601_s2  ;;  %v4647_v20 = vpop.permute.xlu1 %1553 }
 0x388   :  { %1730 = vmax.xlane.f32.xlu0 %v4632_v43  ;;  %v4649_v6 = vpop.xlane.xlu0 %1706  ;;  %v1347_v56 = vmul.f32 %v1331_v14, %v1331_v14  ;;  %v4690_v14 = vsel %vm4228_vm6, %v4279_v30, -1e+30 }
 0x389   :  { %5835 = vst [vmem:[#allocation77_spill] sm:$0xff] %v4690_v14 }
 0x38a   :  { %v1386_v13 = vsel %vm1352_vm10, %v1347_v56, 0.0 }
 0x38b   :  { %v4651_v39 = vpop.xlane.xlu1 %1712 }
 0x38c   :  { %2109 = vmax.xlane.f32.xlu0 %v4642_v27  ;;  %v4653_v4 = vpop.xlane.xlu0 %2085 }
 0x38f   :  { %v4655_v17 = vpop.xlane.xlu1 %2091 }
 0x390   :  { %v4659_v32 = vpop.xlane.xlu0 %1357 }
 0x391   :  { %5831 = vst [vmem:[#allocation73_spill] sm:$0xff] %v4659_v32 }
 0x393   :  { %v4661_v16 = vpop.xlane.xlu1 %2470 }
 0x394   :  { %v4668_v55 = vpop.permute.xlu0 %1551 }
 0x397   :  { %v4670_v40 = vpop.xlane.xlu1 %2468 }
 0x398   :  { %v4672_v36 = vpop.xlane.xlu0 %1354 }
 0x399   :  { %5832 = vst [vmem:[#allocation74_spill] sm:$0xff] %v4672_v36 }
 0x39b   :  { %v4675_v32 = vpop.permute.xlu1 %1557 }
 0x39c   :  { %v4683_v42 = vpop.xlane.xlu0 %1710 }
 0x39f   :  { %v4685_v35 = vpop.xlane.xlu1 %1363 }
 0x3a0   :  { %5834 = vst [vmem:[#allocation76_spill] sm:$0xff] %v4685_v35  ;;  %v4693_v56 = vpop.xlane.xlu0 %2089  ;;  %v3571_v35 = vld [vmem:[%s5702_s3 + $0x60] sm:$0xff] }
 0x3a1   :  { %v1332_v36 = vsub.f32 %v4281_v5, %v3571_v35  ;;  %v4725_v35 = vsel %vm4213_vm3, %v4285_v37, -1e+30 }
 0x3a2   :  { %1575 = vrot.lane.b32.xlu0 %v1531_v1, %s3601_s2  ;;  %v4680_v1 = vsel %vm4213_vm3, %v4279_v30, -1e+30  ;;  %5841 = vst [vmem:[#allocation83_spill] sm:$0xff] %v4725_v35 }
 0x3a3   :  { %5833 = vst [vmem:[#allocation75_spill] sm:$0xff] %v4680_v1  ;;  %v4695_v51 = vpop.xlane.xlu1 %1360  ;;  %v1348_v8 = vmul.f32 %v1332_v36, %v1332_v36 }
 0x3a4   :  { %5836 = vst [vmem:[#allocation78_spill] sm:$0xff] %v4695_v51  ;;  %v4713_v51 = vpop.permute.xlu0 %1555 }
 0x3a5   :  { %v1389_v10 = vsel %vm1352_vm10, %v1348_v8, 0.0 }
 0x3a8   :  { %v4717_v12 = vpop.xlane.xlu0 %2474 }
 0x3ab   :  { %1387 = vadd.xlane.f32.xlu1 %v1386_v13  ;;  %v4700_v13 = vsel %vm4245_vm9, %v4279_v30, -1e+30 }
 0x3ac   :  { %5837 = vst [vmem:[#allocation79_spill] sm:$0xff] %v4700_v13 }
 0x3af   :  { %1732 = vmax.xlane.f32.xlu1 %v4680_v1  ;;  %v4715_v1 = vpop.xlane.xlu1 %1716 }
 0x3b0   :  { %5839 = vst [vmem:[#allocation81_spill] sm:$0xff] %v4715_v1 }
 0x3b3   :  { %2111 = vmax.xlane.f32.xlu1 %v4690_v14  ;;  %v4710_v14 = vsel %vm4245_vm9, %v4281_v5, -1e+30  ;;  %v4720_v0 = vpop.xlane.xlu1 %2095  ;;  %v4728_v5 = vpop.xlane.xlu0 %1714 }
 0x3b4   :  { %5838 = vst [vmem:[#allocation80_spill] sm:$0xff] %v4710_v14  ;;  %5840 = vst [vmem:[#allocation82_spill] sm:$0xff] %v4720_v0 }
 0x3b7   :  { %2490 = vmax.xlane.f32.xlu1 %v4700_v13  ;;  %v4732_v36 = vpop.xlane.xlu1 %2472  ;;  %v4740_v27 = vpop.xlane.xlu0 %2093 }
 0x3b8   :  { %5842 = vst [vmem:[#allocation84_spill] sm:$0xff] %v4732_v36 }
 0x3bb   :  { %2488 = vmax.xlane.f32.xlu1 %v4710_v14  ;;  %v1516_v14 = vsub.f32 %v4279_v30, %v4408_v24  ;;  %v4749_v24 = vpop.permute.xlu1 %1561  ;;  %v1560_v50 = vpop.permute.xlu0 %1559 }
 0x3bd   :  { %v1532_v8 = vmul.f32 %v1516_v14, %v1516_v14 }
 0x3bf   :  { %v4751_v36 = vpop.xlane.xlu1 %1369  ;;  %v4753_v43 = vpop.xlane.xlu0 %1366 }
 0x3c0   :  { %5845 = vst [vmem:[#allocation87_spill] sm:$0xff] %v4751_v36  ;;  %5846 = vst [vmem:[#allocation88_spill] sm:$0xff] %v4753_v43  ;;  %v3572_v36 = vld [vmem:[%s5702_s3 + $0x68] sm:$0xff] }
 0x3c1   :  { %1390 = vadd.xlane.f32.xlu0 %v1389_v10  ;;  %v4737_v10 = vsel %vm4228_vm6, %v4285_v37, -1e+30  ;;  %v1333_v43 = vsub.f32 %v4279_v30, %v3572_v36  ;;  %v4792_v30 = vsel %vm4228_vm6, %v4283_v47, -1e+30 }
 0x3c2   :  { %5843 = vst [vmem:[#allocation85_spill] sm:$0xff] %v4737_v10  ;;  %5853 = vst [vmem:[#allocation95_spill] sm:$0xff] %v4792_v30 }
 0x3c3   :  { %v4757_v14 = vpop.xlane.xlu0 %1718  ;;  %v1349_v1 = vmul.f32 %v1333_v43, %v1333_v43 }
 0x3c5   :  { %1734 = vmax.xlane.f32.xlu0 %v4725_v35  ;;  %v4746_v35 = vsel %vm4245_vm9, %v4285_v37, -1e+30 }
 0x3c6   :  { %5844 = vst [vmem:[#allocation86_spill] sm:$0xff] %v4746_v35 }
 0x3c7   :  { %v4763_v13 = vpop.xlane.xlu0 %2097 }
 0x3c9   :  { %2113 = vmax.xlane.f32.xlu0 %v4737_v10  ;;  %v4755_v10 = vpop.xlane.xlu1 %1720 }
 0x3ca   :  { %5847 = vst [vmem:[#allocation89_spill] sm:$0xff] %v4755_v10 }
 0x3cb   :  { %v1564_v10 = vpop.permute.xlu0 %1563 }
 0x3cc   :  { %1577 = vrot.lane.b32.xlu1 %v1532_v8, %s3601_s2  ;;  %v1517_v8 = vsub.f32 %v4285_v37, %v4421_v33 }
 0x3cd   :  { %2492 = vmax.xlane.f32.xlu0 %v4746_v35  ;;  %v4761_v61 = vpop.xlane.xlu1 %2099 }
 0x3ce   :  { %5848 = vst [vmem:[#allocation90_spill] sm:$0xff] %v4761_v61  ;;  %v1533_v0 = vmul.f32 %v1517_v8, %v1517_v8  ;;  %v1392_v8 = vsel %vm1352_vm10, %v1349_v1, 0.0  ;;  %v3573_v1 = vld [vmem:[%s5702_s3 + $0x70] sm:$0xff] }
 0x3cf   :  { %v4774_v33 = vpop.xlane.xlu0 %1372  ;;  %v1334_v36 = vsub.f32 %v4285_v37, %v3573_v1  ;;  %v1599_v37 = vsel %vm1352_vm10, %v4668_v55, 0.0  ;;  %v4831_v55 = vsub.f32 %v4243_v23, %v4653_v4  ;;  %v1611_v23 = vsel %vm1352_vm10, %v1560_v50, 0.0 }
 0x3d0   :  { %5850 = vst [vmem:[#allocation92_spill] sm:$0xff] %v4774_v33  ;;  %v4857_v50 = vsub.f32 %v4311_v60, %v4661_v16 }
 0x3d1   :  { %v4766_v35 = vpop.xlane.xlu1 %2478  ;;  %v1350_v33 = vmul.f32 %v1334_v36, %v1334_v36  ;;  %v4822_v36 = vsub.f32 %v4226_v18, %v4649_v6  ;;  %v1605_v18 = vsel %vm1352_vm10, %v4713_v51, 0.0  ;;  %v4843_v6 = vsub.f32 %v4258_v28, %v4637_v2 }
 0x3d2   :  { %v1617_v51 = vsel %vm1352_vm10, %v1564_v10, 0.0 }
 0x3d5   :  { %v4772_v45 = vpop.xlane.xlu1 %2476 }
 0x3d6   :  { %5849 = vst [vmem:[#allocation91_spill] sm:$0xff] %v4772_v45 }
 0x3d9   :  { %v4777_v61 = vpop.permute.xlu1 %1565 }
 0x3dd   :  { %v4786_v38 = vpop.xlane.xlu1 %1375 }
 0x3de   :  { %5852 = vst [vmem:[#allocation94_spill] sm:$0xff] %v4786_v38  ;;  %v4806_v38 = vsel %vm4245_vm9, %v4283_v47, -1e+30 }
 0x3df   :  { %5855 = vst [vmem:[#allocation97_spill] sm:$0xff] %v4806_v38 }
 0x3e3   :  { %1579 = vrot.lane.b32.xlu0 %v1533_v0, %s3601_s2  ;;  %v4779_v0 = vpop.xlane.xlu0 %1722 }
 0x3e7   :  { %v4794_v43 = vpop.xlane.xlu0 %2101 }
 0x3f0   :  { %1393 = vadd.xlane.f32.xlu1 %v1392_v8  ;;  %v4801_v8 = vpop.xlane.xlu1 %1724 }
 0x3f1   :  { %5854 = vst [vmem:[#allocation96_spill] sm:$0xff] %v4801_v8  ;;  %v1518_v8 = vsub.f32 %v4283_v47, %v4419_v34 }
 0x3f4   :  { %1736 = vmax.xlane.f32.xlu1 %v4784_v29  ;;  %v1568_v29 = vpop.permute.xlu0 %1567  ;;  %v4809_v45 = vpop.xlane.xlu1 %2103 }
 0x3f5   :  { %v1623_v28 = vsel %vm1352_vm10, %v1568_v29, 0.0  ;;  %v2518_v29 = vmul.f32 1.442695, %v4857_v50 }
 0x3f8   :  { %2115 = vmax.xlane.f32.xlu1 %v4792_v30  ;;  %v1395_v30 = vsel %vm1352_vm10, %v1350_v33, 0.0  ;;  %v4812_v41 = vpop.xlane.xlu0 %1378  ;;  %v4816_v1 = vpop.xlane.xlu1 %2482  ;;  %v1608_v33 = vsel %vm1352_vm10, %v4675_v32, 0.0  ;;  %v2133_v32 = vmul.f32 1.442695, %v4831_v55 }
 0x3f9   :  { %5856 = vst [vmem:[#allocation98_spill] sm:$0xff] %v4812_v41  ;;  %v1754_v41 = vmul.f32 1.442695, %v4822_v36 }
 0x3fb   :  { %3374 = vpow2.f32 %v1754_v41 }
 0x3fc   :  { %2494 = vmax.xlane.f32.xlu1 %v4806_v38  ;;  %v4824_v38 = vpop.xlane.xlu0 %1726  ;;  %3376 = vpow2.f32 %v2133_v32 }
 0x400   :  { %v4838_v34 = vpop.xlane.xlu0 %2105 }
 0x402   :  { %1396 = vadd.xlane.f32.xlu0 %v1395_v30  ;;  %v1534_v30 = vmul.f32 %v1518_v8, %v1518_v8  ;;  %v2512_v8 = vmul.f32 1.442695, %v4843_v6 }
 0x404   :  { %3378 = vpow2.f32 %v2512_v8  ;;  %v4867_v8 = vsub.f32 %v4296_v58, %v4683_v42 }
 0x405   :  { %v3375_v2 = vpop.eup %3374  ;;  %3380 = vpow2.f32 %v2518_v29 }
 0x406   :  { %1600 = vadd.xlane.f32.xlu0 %v1599_v37  ;;  %v4833_v37 = vpop.xlane.xlu1 %2480  ;;  %v1786_v32 = vsel %vm4213_vm3, %v3375_v2, 0.0  ;;  %v3377_v10 = vpop.eup %3376  ;;  %v4877_v2 = vsub.f32 %v4306_v46, %v4693_v56  ;;  %v3574_v46 = vld [vmem:[%s5702_s3 + $0x78] sm:$0xff] }
 0x407   :  { %v1335_v56 = vsub.f32 %v4283_v47, %v3574_v46 }
 0x408   :  { %v2137_v42 = vmul.f32 1.442695, %v4877_v2 }
 0x40a   :  { %1609 = vadd.xlane.f32.xlu0 %v1608_v33  ;;  %v4846_v4 = vpop.permute.xlu1 %1569  ;;  %v1572_v33 = vpop.permute.xlu0 %1571 }
 0x40b   :  { %v1629_v29 = vsel %vm1352_vm10, %v1572_v33, 0.0 }
 0x40d   :  { %1581 = vrot.lane.b32.xlu1 %v1534_v30, %s3601_s2 }
 0x40e   :  { %1606 = vadd.xlane.f32.xlu0 %v1605_v18  ;;  %v4850_v30 = vpop.xlane.xlu1 %1381  ;;  %v3379_v16 = vpop.eup %3378 }
 0x40f   :  { %5857 = vst [vmem:[#allocation99_spill] sm:$0xff] %v4850_v30  ;;  %v2544_v58 = vsel %vm4245_vm9, %v3379_v16, 0.0  ;;  %v4901_v30 = vsub.f32 %v4221_v3, %v4611_v63  ;;  %v1602_v3 = vsel %vm1352_vm10, %v4647_v20, 0.0 }
 0x411   :  { %v4852_v41 = vpop.xlane.xlu0 %1384  ;;  %v1756_v46 = vmul.f32 1.442695, %v4901_v30 }
 0x412   :  { %1612 = vadd.xlane.f32.xlu0 %v1611_v23  ;;  %5858 = vst [vmem:[#allocation100_spill] sm:$0xff] %v4852_v41  ;;  %v4859_v18 = vpop.xlane.xlu1 %1728 }
 0x415   :  { %v4863_v23 = vpop.xlane.xlu0 %1730 }
 0x416   :  { %1618 = vadd.xlane.f32.xlu0 %v1617_v51  ;;  %v2165_v51 = vsel %vm4228_vm6, %v3377_v10, 0.0  ;;  %v4872_v60 = vpop.xlane.xlu1 %2107  ;;  %v4886_v10 = vsub.f32 %v4316_v21, %v4670_v40  ;;  %v3381_v21 = vpop.eup %3380 }
 0x417   :  { %v2547_v33 = vsel %vm4245_vm9, %v3381_v21, 0.0 }
 0x418   :  { %v2516_v16 = vmul.f32 1.442695, %v4886_v10 }
 0x41a   :  { %1624 = vadd.xlane.f32.xlu0 %v1623_v28  ;;  %v1758_v28 = vmul.f32 1.442695, %v4867_v8 }
 0x41c   :  { %3382 = vpow2.f32 %v1758_v28  ;;  %v1351_v28 = vmul.f32 %v1335_v56, %v1335_v56 }
 0x41d   :  { %3384 = vpow2.f32 %v2137_v42 }
 0x41e   :  { %1802 = vadd.xlane.f32.xlu0 %v1786_v32  ;;  %v4879_v32 = vpop.xlane.xlu0 %2109  ;;  %3386 = vpow2.f32 %v2516_v16  ;;  %v1398_v47 = vsel %vm1352_vm10, %v1351_v28, 0.0  ;;  %v4918_v28 = vsub.f32 %v4252_v25, %v4626_v11  ;;  %v1620_v25 = vsel %vm1352_vm10, %v4777_v61, 0.0 }
 0x41f   :  { %3388 = vpow2.f32 %v1756_v46  ;;  %v4939_v46 = vsub.f32 %v4291_v15, %v4651_v39 }
 0x420   :  { %v2514_v21 = vmul.f32 1.442695, %v4918_v28 }
 0x422   :  { %2181 = vadd.xlane.f32.xlu0 %v2165_v51  ;;  %v4888_v51 = vpop.xlane.xlu1 %2486  ;;  %v1576_v41 = vpop.permute.xlu0 %1575 }
 0x426   :  { %2560 = vadd.xlane.f32.xlu0 %v2544_v58  ;;  %v1635_v58 = vsel %vm1352_vm10, %v1576_v41, 0.0  ;;  %v4897_v40 = vpop.xlane.xlu1 %2484  ;;  %v3383_v42 = vpop.eup %3382  ;;  %v4909_v41 = vsub.f32 %v4238_v22, %v4619_v48  ;;  %v1614_v22 = vsel %vm1352_vm10, %v4749_v24, 0.0 }
 0x427   :  { %v1788_v63 = vsel %vm4213_vm3, %v3383_v42, 0.0 }
 0x428   :  { %v2135_v16 = vmul.f32 1.442695, %v4909_v41 }
 0x42a   :  { %1630 = vadd.xlane.f32.xlu0 %v1629_v29  ;;  %v1574_v56 = vpop.permute.xlu1 %1573  ;;  %v3385_v29 = vpop.eup %3384  ;;  %3390 = vpow2.f32 %v2135_v16  ;;  %v4948_v16 = vsub.f32 %v4301_v62, %v4655_v17 }
 0x42b   :  { %v2167_v48 = vsel %vm4228_vm6, %v3385_v29, 0.0  ;;  %v3387_v20 = vpop.eup %3386  ;;  %3392 = vpow2.f32 %v2514_v21  ;;  %v1760_v29 = vmul.f32 1.442695, %v4939_v46  ;;  %v1632_v17 = vsel %vm1352_vm10, %v1574_v56, 0.0 }
 0x42c   :  { %v2546_v11 = vsel %vm4245_vm9, %v3387_v20, 0.0  ;;  %v3389_v42 = vpop.eup %3388  ;;  %v2139_v15 = vmul.f32 1.442695, %v4948_v16  ;;  %v4959_v20 = vsub.f32 %v4325_v49, %v4717_v12  ;;  %v4975_v12 = vsub.f32 %v4339_v53, %v4740_v27 }
 0x42d   :  { %v1787_v61 = vsel %vm4213_vm3, %v3389_v42, 0.0  ;;  %3394 = vpow2.f32 %v1760_v29  ;;  %v4984_v29 = vsub.f32 %v4403_v44, %v4766_v35  ;;  %v4992_v27 = vsub.f32 %v4371_v31, %v4757_v14 }
 0x42e   :  { %1636 = vadd.xlane.f32.xlu0 %v1635_v58  ;;  %3396 = vpow2.f32 %v2139_v15  ;;  %v4999_v35 = vsub.f32 %v4379_v54, %v4763_v13  ;;  %v5006_v14 = vsub.f32 %v4500_v59, %v4816_v1  ;;  %v5012_v54 = vsub.f32 %v4447_v57, %v4779_v0  ;;  %v5861_v0 = vld [vmem:[#allocation62_spill] sm:$0xff] }
 0x42f   :  { %v1766_v44 = vmul.f32 1.442695, %v4992_v27  ;;  %v5020_v1 = vsub.f32 %v4455_v52, %v4794_v43  ;;  %v5862_v52 = vld [vmem:[#allocation46_spill] sm:$0xff] }
 0x430   :  { %v2145_v31 = vmul.f32 1.442695, %v4999_v35  ;;  %v2530_v13 = vmul.f32 1.442695, %v5006_v14  ;;  %v1770_v59 = vmul.f32 1.442695, %v5012_v54  ;;  %v5033_v43 = vsub.f32 %v5862_v52, %v4824_v38 }
 0x431   :  { %1399 = vadd.xlane.f32.xlu1 %v1398_v47  ;;  %v2149_v57 = vmul.f32 1.442695, %v5020_v1  ;;  %v5865_v38 = vld [vmem:[#allocation81_spill] sm:$0xff] }
 0x432   :  { %2566 = vadd.xlane.f32.xlu0 %v2547_v33  ;;  %v1626_v33 = vsel %vm1352_vm10, %v4846_v4, 0.0 }
 0x435   :  { %1603 = vadd.xlane.f32.xlu1 %v1602_v3  ;;  %v3391_v3 = vpop.eup %3390 }
 0x436   :  { %1806 = vadd.xlane.f32.xlu0 %v1788_v63  ;;  %v2166_v4 = vsel %vm4228_vm6, %v3391_v3, 0.0 }
 0x438   :  { %v4920_v58 = vpop.xlane.xlu1 %1387 }
 0x439   :  { %5859 = vst [vmem:[#allocation101_spill] sm:$0xff] %v4920_v58  ;;  %1615 = vadd.xlane.f32.xlu1 %v1614_v22  ;;  %v3393_v22 = vpop.eup %3392 }
 0x43a   :  { %2185 = vadd.xlane.f32.xlu0 %v2167_v48  ;;  %v2545_v48 = vsel %vm4245_vm9, %v3393_v22, 0.0  ;;  %v2526_v22 = vmul.f32 1.442695, %v4984_v29 }
 0x43c   :  { %v4927_v47 = vpop.xlane.xlu1 %1732 }
 0x43d   :  { %1621 = vadd.xlane.f32.xlu1 %v1620_v25  ;;  %v2522_v25 = vmul.f32 1.442695, %v4959_v20 }
 0x43e   :  { %2564 = vadd.xlane.f32.xlu0 %v2546_v11  ;;  %v4967_v11 = vsub.f32 %v4332_v26, %v4728_v5  ;;  %v2141_v5 = vmul.f32 1.442695, %v4975_v12 }
 0x43f   :  { %3398 = vpow2.f32 %v2522_v25 }
 0x440   :  { %v4933_v24 = vpop.xlane.xlu1 %2111  ;;  %v1762_v49 = vmul.f32 1.442695, %v4967_v11 }
 0x441   :  { %1627 = vadd.xlane.f32.xlu1 %v1626_v33 }
 0x442   :  { %3400 = vpow2.f32 %v1762_v49 }
 0x443   :  { %3402 = vpow2.f32 %v2141_v5 }
 0x444   :  { %v4943_v63 = vpop.xlane.xlu1 %2490  ;;  %3404 = vpow2.f32 %v2526_v22 }
 0x445   :  { %1804 = vadd.xlane.f32.xlu1 %v1787_v61  ;;  %v3395_v61 = vpop.eup %3394  ;;  %3406 = vpow2.f32 %v1766_v44 }
 0x446   :  { %v1789_v3 = vsel %vm4213_vm3, %v3395_v61, 0.0  ;;  %v3397_v26 = vpop.eup %3396  ;;  %3408 = vpow2.f32 %v2145_v31 }
 0x447   :  { %v2168_v53 = vsel %vm4228_vm6, %v3397_v26, 0.0  ;;  %3410 = vpow2.f32 %v2530_v13 }
 0x448   :  { %v4953_v39 = vpop.xlane.xlu1 %2488  ;;  %3412 = vpow2.f32 %v1770_v59  ;;  %v5868_v59 = vld [vmem:[#allocation79_spill] sm:$0xff] }
 0x449   :  { %2183 = vadd.xlane.f32.xlu1 %v2166_v4  ;;  %3414 = vpow2.f32 %v2149_v57 }
 0x44c   :  { %v1578_v21 = vpop.permute.xlu1 %1577 }
 0x44d   :  { %2562 = vadd.xlane.f32.xlu1 %v2545_v48  ;;  %v1638_v42 = vsel %vm1352_vm10, %v1578_v21, 0.0 }
 0x44e   :  { %v4961_v62 = vpop.xlane.xlu0 %1390 }
 0x44f   :  { %5860 = vst [vmem:[#allocation102_spill] sm:$0xff] %v4961_v62 }
 0x451   :  { %1633 = vadd.xlane.f32.xlu1 %v1632_v17  ;;  %v3399_v17 = vpop.eup %3398 }
 0x452   :  { %v4969_v33 = vpop.xlane.xlu0 %1734  ;;  %v2549_v21 = vsel %vm4245_vm9, %v3399_v17, 0.0  ;;  %v3401_v25 = vpop.eup %3400 }
 0x453   :  { %v3403_v61 = vpop.eup %3402 }
 0x454   :  { %v2169_v49 = vsel %vm4228_vm6, %v3403_v61, 0.0  ;;  %v5866_v61 = vld [vmem:[#allocation8_spill] sm:$0xff] }
 0x455   :  { %1639 = vadd.xlane.f32.xlu1 %v1638_v42  ;;  %v1790_v42 = vsel %vm4213_vm3, %v3401_v25, 0.0  ;;  %v5047_v13 = vsub.f32 %v5866_v61, %v5865_v38 }
 0x456   :  { %v4977_v56 = vpop.xlane.xlu0 %2113 }
 0x457   :  { %v1764_v57 = vmul.f32 1.442695, %v5047_v13 }
 0x459   :  { %1808 = vadd.xlane.f32.xlu1 %v1789_v3  ;;  %v3405_v3 = vpop.eup %3404 }
 0x45a   :  { %v4986_v4 = vpop.xlane.xlu0 %2492  ;;  %v2551_v26 = vsel %vm4245_vm9, %v3405_v3, 0.0  ;;  %v3407_v5 = vpop.eup %3406 }
 0x45b   :  { %v1792_v22 = vsel %vm4213_vm3, %v3407_v5, 0.0 }
 0x45d   :  { %2187 = vadd.xlane.f32.xlu1 %v2168_v53  ;;  %v5027_v53 = vsub.f32 %v5861_v0, %v4888_v51  ;;  %v1774_v51 = vmul.f32 1.442695, %v5033_v43  ;;  %v5870_v0 = vld [vmem:[#allocation82_spill] sm:$0xff] }
 0x45e   :  { %v1580_v15 = vpop.permute.xlu0 %1579 }
 0x45f   :  { %v1641_v48 = vsel %vm1352_vm10, %v1580_v15, 0.0  ;;  %v3409_v15 = vpop.eup %3408 }
 0x460   :  { %1642 = vadd.xlane.f32.xlu0 %v1641_v48  ;;  %v2534_v48 = vmul.f32 1.442695, %v5027_v53  ;;  %v2171_v17 = vsel %vm4228_vm6, %v3409_v15, 0.0  ;;  %v3411_v44 = vpop.eup %3410 }
 0x461   :  { %v2553_v31 = vsel %vm4245_vm9, %v3411_v44, 0.0 }
 0x462   :  { %3416 = vpow2.f32 %v2534_v48  ;;  %v5872_v48 = vld [vmem:[#allocation69_spill] sm:$0xff] }
 0x463   :  { %3418 = vpow2.f32 %v1774_v51 }
 0x464   :  { %2570 = vadd.xlane.f32.xlu0 %v2549_v21  ;;  %v5863_v21 = vld [vmem:[#allocation48_spill] sm:$0xff] }
 0x465   :  { %v5041_v25 = vsub.f32 %v5863_v21, %v4838_v34 }
 0x467   :  { %5864 = vst [vmem:[#allocation62_spill] sm:$0xff] %v5041_v25  ;;  %v2153_v3 = vmul.f32 1.442695, %v5041_v25 }
 0x468   :  { %1810 = vadd.xlane.f32.xlu0 %v1790_v42  ;;  %v3413_v42 = vpop.eup %3412 }
 0x469   :  { %v1794_v34 = vsel %vm4213_vm3, %v3413_v42, 0.0  ;;  %v3415_v5 = vpop.eup %3414  ;;  %3420 = vpow2.f32 %v2153_v3  ;;  %v5875_v42 = vld [vmem:[#allocation10_spill] sm:$0xff] }
 0x46a   :  { %v2173_v44 = vsel %vm4228_vm6, %v3415_v5, 0.0  ;;  %3422 = vpow2.f32 %v1764_v57 }
 0x46c   :  { %2189 = vadd.xlane.f32.xlu0 %v2169_v49  ;;  %v3417_v51 = vpop.eup %3416 }
 0x46d   :  { %v3419_v5 = vpop.eup %3418 }
 0x470   :  { %2574 = vadd.xlane.f32.xlu0 %v2551_v26  ;;  %v5054_v26 = vsub.f32 %v5868_v59, %v4943_v63 }
 0x472   :  { %5869 = vst [vmem:[#allocation48_spill] sm:$0xff] %v5054_v26  ;;  %v2538_v63 = vmul.f32 1.442695, %v5054_v26 }
 0x474   :  { %1814 = vadd.xlane.f32.xlu0 %v1792_v22  ;;  %v5871_v22 = vld [vmem:[#allocation9_spill] sm:$0xff]  ;;  %3424 = vpow2.f32 %v2538_v63 }
 0x475   :  { %v5061_v15 = vsub.f32 %v5871_v22, %v5870_v0  ;;  %v5878_v0 = vld [vmem:[#allocation89_spill] sm:$0xff]  ;;  %v5879_v22 = vld [vmem:[#allocation11_spill] sm:$0xff] }
 0x477   :  { %v2143_v21 = vmul.f32 1.442695, %v5061_v15 }
 0x478   :  { %2193 = vadd.xlane.f32.xlu0 %v2171_v17  ;;  %v5067_v17 = vsub.f32 %v5872_v48, %v4863_v23  ;;  %v5876_v23 = vld [vmem:[#allocation71_spill] sm:$0xff]  ;;  %v5089_v48 = vsub.f32 %v5879_v22, %v5878_v0 }
 0x479   :  { %v5082_v59 = vsub.f32 %v5876_v23, %v4879_v32  ;;  %3426 = vpow2.f32 %v2143_v21  ;;  %v5880_v32 = vld [vmem:[#allocation83_spill] sm:$0xff]  ;;  %v5882_v23 = vld [vmem:[#allocation90_spill] sm:$0xff] }
 0x47a   :  { %5873 = vst [vmem:[#allocation81_spill] sm:$0xff] %v5067_v17  ;;  %v1778_v3 = vmul.f32 1.442695, %v5067_v17  ;;  %v5096_v63 = vsub.f32 %v5880_v32, %v4969_v33  ;;  %v1768_v21 = vmul.f32 1.442695, %v5089_v48 }
 0x47b   :  { %5877 = vst [vmem:[#allocation8_spill] sm:$0xff] %v5082_v59 }
 0x47c   :  { %2578 = vadd.xlane.f32.xlu0 %v2553_v31  ;;  %v5874_v31 = vld [vmem:[#allocation84_spill] sm:$0xff]  ;;  %3428 = vpow2.f32 %v1778_v3  ;;  %5881 = vst [vmem:[#allocation79_spill] sm:$0xff] %v5096_v63  ;;  %v1782_v3 = vmul.f32 1.442695, %v5096_v63 }
 0x47d   :  { %v5049_v49 = vpop.xlane.xlu1 %1393  ;;  %v5075_v38 = vsub.f32 %v5875_v42, %v5874_v31  ;;  %v2157_v31 = vmul.f32 1.442695, %v5082_v59  ;;  %v3421_v42 = vpop.eup %3420 }
 0x47e   :  { %5867 = vst [vmem:[#allocation46_spill] sm:$0xff] %v5049_v49  ;;  %v5884_v49 = vld [vmem:[#allocation85_spill] sm:$0xff] }
 0x47f   :  { %v2520_v57 = vmul.f32 1.442695, %v5075_v38  ;;  %v5108_v33 = vsub.f32 %v5884_v49, %v4977_v56  ;;  %v5889_v49 = vld [vmem:[#allocation86_spill] sm:$0xff] }
 0x480   :  { %1818 = vadd.xlane.f32.xlu0 %v1794_v34  ;;  %v2555_v34 = vsel %vm4245_vm9, %v3417_v51, 0.0  ;;  %v1796_v51 = vsel %vm4213_vm3, %v3419_v5, 0.0  ;;  %v3423_v5 = vpop.eup %3422 }
 0x481   :  { %v5063_v52 = vpop.xlane.xlu1 %1736  ;;  %3430 = vpow2.f32 %v2520_v57  ;;  %5885 = vst [vmem:[#allocation82_spill] sm:$0xff] %v5108_v33  ;;  %v2175_v57 = vsel %vm4228_vm6, %v3421_v42, 0.0  ;;  %v3425_v62 = vpop.eup %3424  ;;  %v2161_v56 = vmul.f32 1.442695, %v5108_v33 }
 0x482   :  { %3432 = vpow2.f32 %v2157_v31 }
 0x483   :  { %3434 = vpow2.f32 %v1768_v21  ;;  %v3427_v42 = vpop.eup %3426  ;;  %v2557_v21 = vsel %vm4245_vm9, %v3425_v62, 0.0 }
 0x484   :  { %2197 = vadd.xlane.f32.xlu0 %v2173_v44  ;;  %3436 = vpow2.f32 %v1782_v3 }
 0x485   :  { %v5077_v61 = vpop.xlane.xlu1 %2115 }
 0x488   :  { %2582 = vadd.xlane.f32.xlu0 %v2555_v34  ;;  %v5883_v34 = vld [vmem:[#allocation12_spill] sm:$0xff] }
 0x489   :  { %v5091_v44 = vpop.xlane.xlu1 %2494  ;;  %v5103_v0 = vsub.f32 %v5883_v34, %v5882_v23  ;;  %v5887_v23 = vld [vmem:[#allocation91_spill] sm:$0xff]  ;;  %v5888_v34 = vld [vmem:[#allocation13_spill] sm:$0xff] }
 0x48a   :  { %v5118_v58 = vsub.f32 %v5888_v34, %v5887_v23  ;;  %v5891_v23 = vld [vmem:[#allocation96_spill] sm:$0xff]  ;;  %v5892_v34 = vld [vmem:[#allocation30_spill] sm:$0xff] }
 0x48b   :  { %v2147_v31 = vmul.f32 1.442695, %v5103_v0  ;;  %v5134_v33 = vsub.f32 %v5892_v34, %v5891_v23  ;;  %v5893_v23 = vld [vmem:[#allocation32_spill] sm:$0xff] }
 0x48c   :  { %1822 = vadd.xlane.f32.xlu0 %v1796_v51  ;;  %v2524_v3 = vmul.f32 1.442695, %v5118_v58 }
 0x48d   :  { %v1582_v22 = vpop.permute.xlu1 %1581  ;;  %3438 = vpow2.f32 %v2147_v31 }
 0x48e   :  { %v1644_v32 = vsel %vm1352_vm10, %v1582_v22, 0.0  ;;  %v5123_v22 = vsub.f32 %v5889_v49, %v4986_v4  ;;  %3440 = vpow2.f32 %v2161_v56  ;;  %v5146_v56 = vsub.f32 %v5893_v23, %v4809_v45 }
 0x48f   :  { %1645 = vadd.xlane.f32.xlu1 %v1644_v32  ;;  %v5111_v51 = vpop.xlane.xlu0 %1396  ;;  %v1791_v32 = vsel %vm4213_vm3, %v3423_v5, 0.0  ;;  %v2170_v5 = vsel %vm4228_vm6, %v3427_v42, 0.0  ;;  %3442 = vpow2.f32 %v2524_v3 }
 0x490   :  { %5886 = vst [vmem:[#allocation9_spill] sm:$0xff] %v5111_v51  ;;  %2201 = vadd.xlane.f32.xlu0 %v2175_v57  ;;  %5890 = vst [vmem:[#allocation69_spill] sm:$0xff] %v5123_v22  ;;  %v3429_v51 = vpop.eup %3428  ;;  %v2540_v4 = vmul.f32 1.442695, %v5123_v22  ;;  %v2151_v3 = vmul.f32 1.442695, %v5146_v56 }
 0x491   :  { %v3431_v49 = vpop.eup %3430  ;;  %v1798_v62 = vsel %vm4213_vm3, %v3429_v51, 0.0 }
 0x492   :  { %v3433_v31 = vpop.eup %3432  ;;  %3444 = vpow2.f32 %v2540_v4  ;;  %v2548_v42 = vsel %vm4245_vm9, %v3431_v49, 0.0 }
 0x493   :  { %1812 = vadd.xlane.f32.xlu1 %v1791_v32  ;;  %v5127_v57 = vpop.xlane.xlu0 %1600  ;;  %v3435_v34 = vpop.eup %3434  ;;  %v2177_v51 = vsel %vm4228_vm6, %v3433_v31, 0.0 }
 0x494   :  { %2586 = vadd.xlane.f32.xlu0 %v2557_v21  ;;  %v1772_v21 = vmul.f32 1.442695, %v5134_v33  ;;  %v3437_v22 = vpop.eup %3436  ;;  %v1793_v4 = vsel %vm4213_vm3, %v3435_v34, 0.0 }
 0x495   :  { %v1800_v23 = vsel %vm4213_vm3, %v3437_v22, 0.0 }
 0x496   :  { %3446 = vpow2.f32 %v1772_v21  ;;  %v5895_v21 = vld [vmem:[#allocation58_spill] sm:$0xff] }
 0x497   :  { %2191 = vadd.xlane.f32.xlu1 %v2170_v5  ;;  %v5139_v32 = vpop.xlane.xlu0 %1609  ;;  %v3439_v49 = vpop.eup %3438  ;;  %3448 = vpow2.f32 %v2151_v3  ;;  %v5896_v3 = vld [vmem:[#allocation60_spill] sm:$0xff] }
 0x498   :  { %1826 = vadd.xlane.f32.xlu0 %v1798_v62  ;;  %v5894_v62 = vld [vmem:[#allocation36_spill] sm:$0xff] }
 0x499   :  { %v5157_v45 = vsub.f32 %v5894_v62, %v4833_v37  ;;  %v2172_v37 = vsel %vm4228_vm6, %v3439_v49, 0.0 }
 0x49b   :  { %2568 = vadd.xlane.f32.xlu1 %v2548_v42  ;;  %v5150_v5 = vpop.xlane.xlu0 %1606  ;;  %v3441_v42 = vpop.eup %3440  ;;  %v2528_v31 = vmul.f32 1.442695, %v5157_v45 }
 0x49c   :  { %2205 = vadd.xlane.f32.xlu0 %v2177_v51  ;;  %v5168_v51 = vsub.f32 %v5895_v21, %v4859_v18  ;;  %v3443_v34 = vpop.eup %3442  ;;  %v2179_v62 = vsel %vm4228_vm6, %v3441_v42, 0.0 }
 0x49d   :  { %v3445_v22 = vpop.eup %3444  ;;  %3450 = vpow2.f32 %v2528_v31  ;;  %v2550_v18 = vsel %vm4245_vm9, %v3443_v34, 0.0  ;;  %v5898_v31 = vld [vmem:[#allocation65_spill] sm:$0xff] }
 0x49e   :  { %v2558_v21 = vsel %vm4245_vm9, %v3445_v22, 0.0  ;;  %v5900_v22 = vld [vmem:[#allocation75_spill] sm:$0xff] }
 0x49f   :  { %1816 = vadd.xlane.f32.xlu1 %v1793_v4  ;;  %v5163_v63 = vpop.xlane.xlu0 %1612  ;;  %v1776_v4 = vmul.f32 1.442695, %v5168_v51 }
 0x4a0   :  { %1830 = vadd.xlane.f32.xlu0 %v1800_v23  ;;  %v5177_v23 = vsub.f32 %v5896_v3, %v4872_v60  ;;  %v3447_v49 = vpop.eup %3446 }
 0x4a1   :  { %3452 = vpow2.f32 %v1776_v4  ;;  %v1795_v60 = vsel %vm4213_vm3, %v3447_v49, 0.0  ;;  %v5902_v49 = vld [vmem:[#allocation77_spill] sm:$0xff] }
 0x4a2   :  { %5897 = vst [vmem:[#allocation84_spill] sm:$0xff] %v5177_v23  ;;  %v2155_v42 = vmul.f32 1.442695, %v5177_v23 }
 0x4a3   :  { %2195 = vadd.xlane.f32.xlu1 %v2172_v37  ;;  %v5179_v59 = vpop.xlane.xlu0 %1618  ;;  %v5188_v37 = vsub.f32 %v5898_v31, %v4897_v40  ;;  %v5204_v31 = vsub.f32 %v5902_v49, %v4933_v24 }
 0x4a4   :  { %2209 = vadd.xlane.f32.xlu0 %v2179_v62  ;;  %v3449_v62 = vpop.eup %3448  ;;  %3454 = vpow2.f32 %v2155_v42 }
 0x4a5   :  { %5899 = vst [vmem:[#allocation10_spill] sm:$0xff] %v5188_v37  ;;  %v2532_v34 = vmul.f32 1.442695, %v5188_v37  ;;  %v2174_v4 = vsel %vm4228_vm6, %v3449_v62, 0.0  ;;  %5903 = vst [vmem:[#allocation89_spill] sm:$0xff] %v5204_v31  ;;  %v5904_v62 = vld [vmem:[#allocation80_spill] sm:$0xff] }
 0x4a7   :  { %2572 = vadd.xlane.f32.xlu1 %v2550_v18  ;;  %v5192_v3 = vpop.xlane.xlu0 %1624  ;;  %v5197_v18 = vsub.f32 %v5900_v22, %v4927_v47  ;;  %3456 = vpow2.f32 %v2532_v34  ;;  %v2159_v47 = vmul.f32 1.442695, %v5204_v31  ;;  %v5211_v22 = vsub.f32 %v5904_v62, %v4953_v39 }
 0x4a8   :  { %2588 = vadd.xlane.f32.xlu0 %v2558_v21  ;;  %v3451_v21 = vpop.eup %3450 }
 0x4a9   :  { %5901 = vst [vmem:[#allocation71_spill] sm:$0xff] %v5197_v18  ;;  %v1780_v40 = vmul.f32 1.442695, %v5197_v18  ;;  %v2552_v42 = vsel %vm4245_vm9, %v3451_v21, 0.0  ;;  %5905 = vst [vmem:[#allocation11_spill] sm:$0xff] %v5211_v22  ;;  %v5906_v18 = vlaneseq }
 0x4aa   :  { %v2536_v21 = vmul.f32 1.442695, %v5211_v22 }
 0x4ab   :  { %1820 = vadd.xlane.f32.xlu1 %v1795_v60  ;;  %v1803_v60 = vpop.xlane.xlu0 %1802  ;;  %v3453_v17 = vpop.eup %3452  ;;  %3458 = vpow2.f32 %v1780_v40  ;;  %v5216_v24 = vshrl.u32 %v5906_v18, 7  ;;  %v5907_v40 = vld [vmem:[#allocation93_spill] sm:$0xff]  ;;  %v5909_v18 = vld [vmem:[#allocation95_spill] sm:$0xff] }
 0x4ac   :  { %v1797_v34 = vsel %vm4213_vm3, %v3453_v17, 0.0  ;;  %3460 = vpow2.f32 %v2159_v47  ;;  %v5229_v17 = vstv %s5699_s0  ;;  %v5233_v47 = vsub.f32 %v5909_v18, %v5077_v61  ;;  %s3603_s0 = smov [#allocation4]  }
 0x4ad   :  { %v106_v31 = vadd.s32 8, %v5216_v24  ;;  %3462 = vpow2.f32 %v2536_v21  ;;  %vm141_vm12 = vcmp.lt.s32.totalorder %v5216_v24, %v5229_v17  ;;  %v108_v61 = vadd.s32 24, %v5216_v24  ;;  %s2843_s29 = sshll.u32 %s3603_s0, 4  ;;  %s2844_s29 = int_to_ptr.vmem [resolvable:$true] %s2843_s29 }
 0x4ae   :  { %5910 = vst [vmem:[#allocation90_spill] sm:$0xff] %v5233_v47  ;;  %v109_v18 = vadd.s32 32, %v5216_v24  ;;  %v2163_v21 = vmul.f32 1.442695, %v5233_v47  ;;  %s3575_s30 = scalar_lea.vmem %s2844_s29, 16  ;;  %s3579_s7 = scalar_lea.vmem %s2844_s29, 32 }
 0x4af   :  { %2199 = vadd.xlane.f32.xlu1 %v2174_v4  ;;  %v3455_v4 = vpop.eup %3454  ;;  %v2182_v49 = vpop.xlane.xlu0 %2181  ;;  %vm142_vm11 = vcmp.lt.s32.totalorder %v106_v31, %v5229_v17  ;;  %vm144_vm14 = vcmp.lt.s32.totalorder %v108_v61, %v5229_v17  ;;  %v111_v61 = vadd.s32 48, %v5216_v24  ;;  %p3576_p0 = scmp.ne.s32.totalorder %s2844_s29, %s3575_s30  ;;  %p3580_p1 = scmp.lt.s32.totalorder %s2844_s29, %s2844_s29 }
 0x4b0   :  { %v2176_v39 = vsel %vm4228_vm6, %v3455_v4, 0.0  ;;  %vm145_vm15 = vcmp.lt.s32.totalorder %v109_v18, %v5229_v17  ;;  %p3581_p2 = scmp.lt.s32.totalorder %s3579_s7, %s3575_s30 }
 0x4b1   :  { %v3457_v62 = vpop.eup %3456  ;;  %vm147_vm1 = vcmp.lt.s32.totalorder %v111_v61, %v5229_v17 }
 0x4b2   :  { %p3582_p3 = por %p3581_p2, %p3580_p1 }
 0x4b3   :  { %2576 = vadd.xlane.f32.xlu1 %v2552_v42  ;;  %v5221_v42 = vsub.f32 %v5907_v40, %v5063_v52  ;;  %v2561_v40 = vpop.xlane.xlu0 %2560 }
 0x4b4   :  { %p3583_p4 = pnand %p3582_p3, %p3576_p0 }
 0x4b5   :  { %5908 = vst [vmem:[#allocation83_spill] sm:$0xff] %v5221_v42  ;;  %v1784_v52 = vmul.f32 1.442695, %v5221_v42  ;;  %v3459_v22 = vpop.eup %3458  ;;  %v5912_v42 = vld [vmem:[#allocation97_spill] sm:$0xff] }
 0x4b6   :  { %v5249_v26 = vsub.f32 %v5912_v42, %v5091_v44  ;;  %v3461_v25 = vpop.eup %3460  ;;  %v110_v44 = vadd.s32 40, %v5216_v24 }
 0x4b7   :  { %1824 = vadd.xlane.f32.xlu1 %v1797_v34  ;;  %v107_v34 = vadd.s32 16, %v5216_v24  ;;  %3464 = vpow2.f32 %v1784_v52 }
 0x4b8   :  { %5913 = vst [vmem:[#allocation85_spill] sm:$0xff] %v5249_v26  ;;  %3466 = vpow2.f32 %v2163_v21  ;;  %v2542_v47 = vmul.f32 1.442695, %v5249_v26  ;;  %vm146_vm0 = vcmp.lt.s32.totalorder %v110_v44, %v5229_v17 }
 0x4b9   :  { %vm143_vm13 = vcmp.lt.s32.totalorder %v107_v34, %v5229_v17  ;;  %3468 = vlog2.f32 %v1803_v60  ;;  %v112_v60 = vadd.s32 56, %v5216_v24 }
 0x4ba   :  { %3470 = vpow2.f32 %v2542_v47 }
 0x4bb   :  { %2203 = vadd.xlane.f32.xlu1 %v2176_v39  ;;  %v2554_v39 = vsel %vm4245_vm9, %v3457_v62, 0.0  ;;  %v3602_v62 = vmov 0.0   ;;  %3472 = vlog2.f32 %v2182_v49  ;;  %vm148_vm2 = vcmp.lt.s32.totalorder %v112_v60, %v5229_v17 }
 0x4bc   :  { %v5253_v31 = vsel %vm142_vm11, 1.0, %v3602_v62  ;;  %v5266_v52 = vsel %vm143_vm13, 1.0, %v3602_v62  ;;  %v5301_v61 = vsel %vm147_vm1, 1.0, %v3602_v62  ;;  %3474 = vlog2.f32 %v2561_v40 }
 0x4bd   :  { %5914 = vst [vmem:[#allocation91_spill] sm:$0xff] %v5253_v31  ;;  %v1649_v23 = vmul.f32 %v5266_v52, %v5150_v5  ;;  %v5286_v5 = vsel %vm145_vm15, 1.0, %v3602_v62  ;;  %5916 = vst [vmem:[#allocation86_spill] sm:$0xff] %v5301_v61  ;;  %v114_v60 = vadd.s32 72, %v5216_v24 }
 0x4be   :  { %v5237_v4 = vpop.xlane.xlu1 %1399 }
 0x4bf   :  { %5911 = vst [vmem:[#allocation12_spill] sm:$0xff] %v5237_v4  ;;  %2580 = vadd.xlane.f32.xlu1 %v2554_v39  ;;  %v5256_v4 = vsel %vm141_vm12, 1.0, %v3602_v62  ;;  %v1799_v39 = vsel %vm4213_vm3, %v3459_v22, 0.0  ;;  %v5270_v22 = vpop.xlane.xlu0 %1630 }
 0x4c0   :  { %5915 = vst [vmem:[#allocation13_spill] sm:$0xff] %v5256_v4  ;;  %v1647_v42 = vmul.f32 %v5256_v4, %v5127_v57  ;;  %v3463_v4 = vpop.eup %3462 }
 0x4c1   :  { %v2556_v18 = vsel %vm4245_vm9, %v3463_v4, 0.0 }
 0x4c2   :  { %v1604_v37 = vpop.xlane.xlu1 %1603 }
 0x4c3   :  { %v1648_v34 = vmul.f32 %v5253_v31, %v1604_v37  ;;  %1828 = vadd.xlane.f32.xlu1 %v1799_v39  ;;  %v5276_v37 = vsel %vm144_vm14, 1.0, %v3602_v62  ;;  %v2178_v31 = vsel %vm4228_vm6, %v3461_v25, 0.0  ;;  %v1651_v25 = vmul.f32 %v5286_v5, %v5163_v63 }
 0x4c4   :  { %v1650_v21 = vmul.f32 %v5276_v37, %v5139_v32  ;;  %v5295_v32 = vpop.xlane.xlu0 %1636  ;;  %v1653_v63 = vmul.f32 %v5301_v61, %v5179_v59 }
 0x4c5   :  { %v1663_v57 = vadd.f32 %v1648_v34, %v1647_v42  ;;  %v5293_v42 = vsel %vm146_vm0, 1.0, %v3602_v62 }
 0x4c6   :  { %v1616_v39 = vpop.xlane.xlu1 %1615 }
 0x4c7   :  { %v1664_v26 = vadd.f32 %v1663_v57, %v1649_v23  ;;  %2207 = vadd.xlane.f32.xlu1 %v2178_v31  ;;  %v3465_v31 = vpop.eup %3464  ;;  %v1652_v34 = vmul.f32 %v5293_v42, %v1616_v39 }
 0x4c8   :  { %v3467_v57 = vpop.eup %3466  ;;  %v1801_v4 = vsel %vm4213_vm3, %v3465_v31, 0.0  ;;  %vm150_vm3 = vcmp.lt.s32.totalorder %v114_v60, %v5229_v17  ;;  %v5918_v60 = vld [vmem:[#allocation15_spill] sm:$0xff] }
 0x4c9   :  { %v1665_v44 = vadd.f32 %v1664_v26, %v1650_v21  ;;  %v113_v26 = vadd.s32 64, %v5216_v24  ;;  %v3469_v39 = vpop.eup %3468  ;;  %v2180_v9 = vsel %vm4228_vm6, %v3467_v57, 0.0 }
 0x4ca   :  { %v1622_v23 = vpop.xlane.xlu1 %1621  ;;  %v3471_v40 = vpop.eup %3470 }
 0x4cb   :  { %v1666_v47 = vadd.f32 %v1665_v44, %v1651_v25  ;;  %2584 = vadd.xlane.f32.xlu1 %v2556_v18  ;;  %v5310_v44 = vsel %vm148_vm2, 1.0, %v3602_v62  ;;  %v2567_v18 = vpop.xlane.xlu0 %2566  ;;  %vm149_vm4 = vcmp.lt.s32.totalorder %v113_v26, %v5229_v17  ;;  %v3473_v31 = vpop.eup %3472  ;;  %v115_v26 = vadd.s32 80, %v5216_v24 }
 0x4cc   :  { %5917 = vst [vmem:[#allocation96_spill] sm:$0xff] %v5310_v44  ;;  %v1654_v59 = vmul.f32 %v5310_v44, %v1622_v23  ;;  %v2559_v7 = vsel %vm4245_vm9, %v3471_v40, 0.0  ;;  %v5331_v44 = vsel %vm150_vm3, 1.0, %v3602_v62 }
 0x4cd   :  { %v1667_v49 = vadd.f32 %v1666_v47, %v1652_v34  ;;  %v1835_v34 = vmul.f32 0.6931472, %v3469_v39  ;;  %vm151_vm6 = vcmp.lt.s32.totalorder %v115_v26, %v5229_v17 }
 0x4ce   :  { %v1628_v21 = vpop.xlane.xlu1 %1627 }
 0x4cf   :  { %v1668_v25 = vadd.f32 %v1667_v49, %v1653_v63  ;;  %1832 = vadd.xlane.f32.xlu1 %v1801_v4  ;;  %v5318_v63 = vsel %vm149_vm4, 1.0, %v3602_v62  ;;  %v2214_v49 = vmul.f32 0.6931472, %v3473_v31  ;;  %v1807_v4 = vpop.xlane.xlu0 %1806  ;;  %v1946_v57 = vsub.f32 %v4822_v36, %v1835_v34 }
 0x4d0   :  { %v1655_v23 = vmul.f32 %v5318_v63, %v5192_v3  ;;  %v117_v3 = vadd.s32 96, %v5216_v24  ;;  %v1656_v19 = vmul.f32 %v5331_v44, %v1628_v21  ;;  %v118_v31 = vadd.s32 104, %v5216_v24 }
 0x4d1   :  { %v1669_v61 = vadd.f32 %v1668_v25, %v1654_v59  ;;  %v3475_v25 = vpop.eup %3474  ;;  %v116_v59 = vadd.s32 88, %v5216_v24 }
 0x4d2   :  { %v1805_v47 = vpop.xlane.xlu1 %1804  ;;  %v2593_v36 = vmul.f32 0.6931472, %v3475_v25  ;;  %vm153_vm9 = vcmp.lt.s32.totalorder %v117_v3, %v5229_v17  ;;  %vm154_vm10 = vcmp.lt.s32.totalorder %v118_v31, %v5229_v17 }
 0x4d3   :  { %3476 = vlog2.f32 %v1805_v47  ;;  %2211 = vadd.xlane.f32.xlu1 %v2180_v9  ;;  %v1670_v47 = vadd.f32 %v1669_v61, %v1655_v23  ;;  %v5919_v9 = vld [vmem:[#allocation7_spill] sm:$0xff]  ;;  %v2325_v61 = vsub.f32 %v4831_v55, %v2214_v49  ;;  %vm152_vm7 = vcmp.lt.s32.totalorder %v116_v59, %v5229_v17  ;;  %v2186_v26 = vpop.xlane.xlu0 %2185 }
 0x4d4   :  { %vm1930_vm5 = vcmp.eq.s32.totalorder %v5919_v9, %v5918_v60  ;;  %v5348_v21 = vsel %vm152_vm7, 1.0, %v3602_v62  ;;  %v2704_v59 = vsub.f32 %v4843_v6, %v2593_v36  ;;  %v5354_v3 = vsel %vm153_vm9, 1.0, %v3602_v62 }
 0x4d5   :  { %v1962_v34 = vsel %vm1930_vm5, %v1946_v57, 0.0  ;;  %v1671_v23 = vadd.f32 %v1670_v47, %v1656_v19  ;;  %v5921_v19 = vld [vmem:[#allocation14_spill] sm:$0xff]  ;;  %v1659_v6 = vmul.f32 %v5354_v3, %v5295_v32 }
 0x4d6   :  { %v2184_v39 = vpop.xlane.xlu1 %2183  ;;  %vm1931_vm11 = vcmp.eq.s32.totalorder %v5919_v9, %v5921_v19 }
 0x4d7   :  { %3478 = vlog2.f32 %v2184_v39  ;;  %2590 = vadd.xlane.f32.xlu1 %v2559_v7  ;;  %v5340_v39 = vsel %vm151_vm6, 1.0, %v3602_v62 }
 0x4d8   :  { %3480 = vlog2.f32 %v2567_v18  ;;  %v5920_v18 = vld [vmem:[#allocation25_spill] sm:$0xff]  ;;  %v1657_v55 = vmul.f32 %v5340_v39, %v5270_v22 }
 0x4d9   :  { %vm2309_vm8 = vcmp.eq.s32.totalorder %v5919_v9, %v5920_v18 }
 0x4da   :  { %v2563_v40 = vpop.xlane.xlu1 %2562  ;;  %v2341_v25 = vsel %vm2309_vm8, %v2325_v61, 0.0  ;;  %v1672_v60 = vadd.f32 %v1671_v23, %v1657_v55  ;;  %v2565_v61 = vpop.xlane.xlu0 %2564 }
 0x4db   :  { %3482 = vlog2.f32 %v2563_v40  ;;  %1978 = vadd.xlane.f32.xlu1 %v1962_v34  ;;  %v5922_v40 = vld [vmem:[#allocation45_spill] sm:$0xff]  ;;  %v5364_v34 = vsel %vm154_vm10, 1.0, %v3602_v62 }
 0x4dc   :  { %3484 = vlog2.f32 %v1807_v4  ;;  %vm2688_vm12 = vcmp.eq.s32.totalorder %v5919_v9, %v5922_v40 }
 0x4dd   :  { %v3477_v7 = vpop.eup %3476  ;;  %3486 = vlog2.f32 %v2186_v26 }
 0x4de   :  { %v1837_v49 = vmul.f32 0.6931472, %v3477_v7  ;;  %v1634_v57 = vpop.xlane.xlu1 %1633  ;;  %v2720_v7 = vsel %vm2688_vm12, %v2704_v59, 0.0  ;;  %3488 = vlog2.f32 %v2565_v61 }
 0x4df   :  { %v1658_v47 = vmul.f32 %v5348_v21, %v1634_v57  ;;  %2357 = vadd.xlane.f32.xlu1 %v2341_v25  ;;  %v5923_v25 = vld [vmem:[#allocation27_spill] sm:$0xff] }
 0x4e0   :  { %v1947_v22 = vsub.f32 %v4901_v30, %v1837_v49  ;;  %vm2310_vm13 = vcmp.eq.s32.totalorder %v5919_v9, %v5923_v25 }
 0x4e1   :  { %v3479_v4 = vpop.eup %3478  ;;  %v1673_v36 = vadd.f32 %v1672_v60, %v1658_v47  ;;  %v119_v47 = vadd.s32 112, %v5216_v24 }
 0x4e2   :  { %v2216_v31 = vmul.f32 0.6931472, %v3479_v4  ;;  %v1640_v23 = vpop.xlane.xlu1 %1639  ;;  %v1963_v26 = vsel %vm1931_vm11, %v1947_v22, 0.0  ;;  %v3481_v30 = vpop.eup %3480 }
 0x4e3   :  { %v1660_v18 = vmul.f32 %v5364_v34, %v1640_v23  ;;  %v1674_v55 = vadd.f32 %v1673_v36, %v1659_v6  ;;  %1980 = vadd.xlane.f32.xlu0 %v1963_v26  ;;  %2736 = vadd.xlane.f32.xlu1 %v2720_v7  ;;  %v2599_v60 = vmul.f32 0.6931472, %v3481_v30  ;;  %v5924_v6 = vld [vmem:[#allocation33_spill] sm:$0xff]  ;;  %vm155_vm15 = vcmp.lt.s32.totalorder %v119_v47, %v5229_v17 }
 0x4e4   :  { %v2326_v49 = vsub.f32 %v4909_v41, %v2216_v31  ;;  %vm2689_vm14 = vcmp.eq.s32.totalorder %v5919_v9, %v5924_v6  ;;  %v5925_v26 = vld [vmem:[#allocation49_spill] sm:$0xff]  ;;  %v5379_v7 = vsel %vm155_vm15, 1.0, %v3602_v62 }
 0x4e5   :  { %v3483_v57 = vpop.eup %3482  ;;  %v1675_v32 = vadd.f32 %v1674_v55, %v1660_v18  ;;  %v2707_v23 = vsub.f32 %v4857_v50, %v2599_v60  ;;  %vm2691_vm0 = vcmp.eq.s32.totalorder %v5919_v9, %v5925_v26  ;;  %v5926_v50 = vld [vmem:[#allocation16_spill] sm:$0xff]  ;;  %v5929_v26 = vld [vmem:[#allocation41_spill] sm:$0xff] }
 0x4e6   :  { %v2595_v4 = vmul.f32 0.6931472, %v3483_v57  ;;  %v1809_v22 = vpop.xlane.xlu1 %1808  ;;  %v2342_v59 = vsel %vm2310_vm13, %v2326_v49, 0.0  ;;  %v3485_v19 = vpop.eup %3484  ;;  %vm1932_vm1 = vcmp.eq.s32.totalorder %v5919_v9, %v5926_v50  ;;  %vm2312_vm3 = vcmp.eq.s32.totalorder %v5919_v9, %v5929_v26 }
 0x4e7   :  { %3490 = vlog2.f32 %v1809_v22  ;;  %2359 = vadd.xlane.f32.xlu0 %v2342_v59  ;;  %v3487_v41 = vpop.eup %3486  ;;  %v1839_v36 = vmul.f32 0.6931472, %v3485_v19  ;;  %v2723_v55 = vsel %vm2691_vm0, %v2707_v23, 0.0 }
 0x4e8   :  { %v2705_v40 = vsub.f32 %v4918_v28, %v2595_v4  ;;  %v2218_v28 = vmul.f32 0.6931472, %v3487_v41  ;;  %v3489_v57 = vpop.eup %3488  ;;  %v5928_v41 = vld [vmem:[#allocation18_spill] sm:$0xff] }
 0x4e9   :  { %v1948_v49 = vsub.f32 %v4867_v8, %v1839_v36  ;;  %v2597_v22 = vmul.f32 0.6931472, %v3489_v57  ;;  %vm1933_vm4 = vcmp.eq.s32.totalorder %v5919_v9, %v5928_v41 }
 0x4ea   :  { %v2188_v61 = vpop.xlane.xlu1 %2187  ;;  %v2721_v31 = vsel %vm2689_vm14, %v2705_v40, 0.0  ;;  %v2327_v4 = vsub.f32 %v4877_v2, %v2218_v28  ;;  %v5927_v40 = vld [vmem:[#allocation39_spill] sm:$0xff] }
 0x4eb   :  { %3492 = vlog2.f32 %v2188_v61  ;;  %2738 = vadd.xlane.f32.xlu0 %v2721_v31  ;;  %v1964_v19 = vsel %vm1932_vm1, %v1948_v49, 0.0  ;;  %vm2311_vm2 = vcmp.eq.s32.totalorder %v5919_v9, %v5927_v40  ;;  %v2706_v2 = vsub.f32 %v4886_v10, %v2597_v22  ;;  %v5930_v28 = vld [vmem:[#allocation35_spill] sm:$0xff] }
 0x4ec   :  { %v2343_v36 = vsel %vm2311_vm2, %v2327_v4, 0.0  ;;  %vm2690_vm5 = vcmp.eq.s32.totalorder %v5919_v9, %v5930_v28  ;;  %v5932_v4 = vld [vmem:[#allocation20_spill] sm:$0xff] }
 0x4ed   :  { %v1643_v30 = vpop.xlane.xlu0 %1642  ;;  %vm1934_vm7 = vcmp.eq.s32.totalorder %v5919_v9, %v5932_v4 }
 0x4ee   :  { %v1661_v18 = vmul.f32 %v5379_v7, %v1643_v30  ;;  %v2722_v30 = vsel %vm2690_vm5, %v2706_v2, 0.0 }
 0x4ef   :  { %2742 = vadd.xlane.f32.xlu0 %v2723_v55 }
 0x4f0   :  { %v1676_v25 = vadd.f32 %v1675_v32, %v1661_v18 }
 0x4f1   :  { %v3491_v47 = vpop.eup %3490  ;;  %v2571_v60 = vpop.xlane.xlu0 %2570 }
 0x4f2   :  { %v1841_v59 = vmul.f32 0.6931472, %v3491_v47  ;;  %3494 = vlog2.f32 %v2571_v60  ;;  %v5931_v47 = vld [vmem:[#allocation42_spill] sm:$0xff] }
 0x4f3   :  { %1982 = vadd.xlane.f32.xlu0 %v1964_v19  ;;  %vm2693_vm6 = vcmp.eq.s32.totalorder %v5919_v9, %v5931_v47 }
 0x4f4   :  { %v1949_v8 = vsub.f32 %v4939_v46, %v1841_v59 }
 0x4f5   :  { %v3493_v6 = vpop.eup %3492  ;;  %v1811_v32 = vpop.xlane.xlu0 %1810 }
 0x4f6   :  { %v2220_v61 = vmul.f32 0.6931472, %v3493_v6  ;;  %3496 = vlog2.f32 %v1811_v32  ;;  %v1965_v31 = vsel %vm1933_vm4, %v1949_v8, 0.0  ;;  %v120_v8 = vadd.s32 120, %v5216_v24 }
 0x4f7   :  { %1984 = vadd.xlane.f32.xlu1 %v1965_v31  ;;  %2361 = vadd.xlane.f32.xlu0 %v2343_v36 }
 0x4f8   :  { %v2328_v23 = vsub.f32 %v4948_v16, %v2220_v61  ;;  %vm156_vm8 = vcmp.lt.s32.totalorder %v120_v8, %v5229_v17 }
 0x4f9   :  { %v2190_v49 = vpop.xlane.xlu0 %2189  ;;  %v5406_v6 = vsel %vm156_vm8, 1.0, %v3602_v62 }
 0x4fa   :  { %v2344_v46 = vsel %vm2312_vm3, %v2328_v23, 0.0 }
 0x4fb   :  { %2363 = vadd.xlane.f32.xlu1 %v2344_v46  ;;  %2740 = vadd.xlane.f32.xlu0 %v2722_v30 }
 0x4fc   :  { %v3495_v18 = vpop.eup %3494 }
 0x4fd   :  { %v2603_v55 = vmul.f32 0.6931472, %v3495_v18  ;;  %v2575_v22 = vpop.xlane.xlu0 %2574  ;;  %v5933_v18 = vld [vmem:[#allocation22_spill] sm:$0xff] }
 0x4fe   :  { %vm1935_vm9 = vcmp.eq.s32.totalorder %v5919_v9, %v5933_v18 }
 0x4ff   :  { %v2709_v57 = vsub.f32 %v4959_v20, %v2603_v55 }
 0x500   :  { %v3497_v10 = vpop.eup %3496 }
 0x501   :  { %v1843_v16 = vmul.f32 0.6931472, %v3497_v10  ;;  %v2725_v50 = vsel %vm2693_vm6, %v2709_v57, 0.0  ;;  %v1815_v19 = vpop.xlane.xlu0 %1814 }
 0x502   :  { %2746 = vadd.xlane.f32.xlu0 %v2725_v50 }
 0x503   :  { %v1950_v60 = vsub.f32 %v4967_v11, %v1843_v16 }
 0x505   :  { %v1966_v59 = vsel %vm1934_vm7, %v1950_v60, 0.0  ;;  %v2194_v40 = vpop.xlane.xlu0 %2193  ;;  %v5934_v60 = vld [vmem:[#allocation43_spill] sm:$0xff] }
 0x506   :  { %1986 = vadd.xlane.f32.xlu0 %v1966_v59  ;;  %vm2314_vm10 = vcmp.eq.s32.totalorder %v5919_v9, %v5934_v60 }
 0x509   :  { %v2579_v20 = vpop.xlane.xlu0 %2578 }
 0x50d   :  { %v1819_v41 = vpop.xlane.xlu0 %1818 }
 0x511   :  { %v2198_v31 = vpop.xlane.xlu0 %2197 }
 0x515   :  { %v5411_v24 = vpop.xlane.xlu0 %2582 }
 0x51c   :  { %v1646_v32 = vpop.xlane.xlu1 %1645 }
 0x51d   :  { %v1662_v11 = vmul.f32 %v5406_v6, %v1646_v32  ;;  %v5935_v32 = vld [vmem:[#allocation29_spill] sm:$0xff] }
 0x51e   :  { %vm2313_vm11 = vcmp.eq.s32.totalorder %v5919_v9, %v5935_v32 }
 0x51f   :  { %v5409_v36 = vadd.f32 %v1676_v25, %v1662_v11  ;;  %v5413_v25 = vpop.xlane.xlu0 %1822 }
 0x520   :  { %v1813_v61 = vpop.xlane.xlu1 %1812 }
 0x521   :  { %3498 = vlog2.f32 %v1813_v61  ;;  %v5936_v61 = vld [vmem:[#allocation38_spill] sm:$0xff] }
 0x522   :  { %3500 = vlog2.f32 %v2190_v49  ;;  %vm2692_vm12 = vcmp.eq.s32.totalorder %v5919_v9, %v5936_v61 }
 0x524   :  { %v2192_v2 = vpop.xlane.xlu1 %2191 }
 0x525   :  { %3502 = vlog2.f32 %v2192_v2 }
 0x526   :  { %3504 = vlog2.f32 %v2575_v22  ;;  %v5422_v22 = vpop.xlane.xlu0 %2201 }
 0x528   :  { %v2569_v23 = vpop.xlane.xlu1 %2568 }
 0x529   :  { %3506 = vlog2.f32 %v2569_v23 }
 0x52a   :  { %3508 = vlog2.f32 %v1815_v19 }
 0x52b   :  { %v3499_v17 = vpop.eup %3498 }
 0x52c   :  { %v3501_v62 = vpop.eup %3500  ;;  %v1845_v26 = vmul.f32 0.6931472, %v3499_v17  ;;  %v1817_v28 = vpop.xlane.xlu1 %1816 }
 0x52d   :  { %3510 = vlog2.f32 %v1817_v28  ;;  %v2222_v55 = vmul.f32 0.6931472, %v3501_v62  ;;  %v5430_v28 = vpop.xlane.xlu0 %2586 }
 0x52e   :  { %3512 = vlog2.f32 %v2194_v40  ;;  %v1951_v46 = vsub.f32 %v5047_v13, %v1845_v26 }
 0x52f   :  { %v3503_v30 = vpop.eup %3502  ;;  %v2329_v13 = vsub.f32 %v4975_v12, %v2222_v55 }
 0x530   :  { %v2224_v49 = vmul.f32 0.6931472, %v3503_v30  ;;  %v2196_v57 = vpop.xlane.xlu1 %2195  ;;  %v1967_v10 = vsel %vm1935_vm9, %v1951_v46, 0.0  ;;  %v3505_v47 = vpop.eup %3504  ;;  %v5937_v30 = vld [vmem:[#allocation26_spill] sm:$0xff] }
 0x531   :  { %3514 = vlog2.f32 %v2196_v57  ;;  %1988 = vadd.xlane.f32.xlu1 %v1967_v10  ;;  %v2607_v4 = vmul.f32 0.6931472, %v3505_v47  ;;  %v2345_v12 = vsel %vm2313_vm11, %v2329_v13, 0.0  ;;  %vm1937_vm13 = vcmp.eq.s32.totalorder %v5919_v9, %v5937_v30 }
 0x532   :  { %v2330_v16 = vsub.f32 %v5061_v15, %v2224_v49  ;;  %3516 = vlog2.f32 %v2579_v20 }
 0x533   :  { %v3507_v50 = vpop.eup %3506  ;;  %v2711_v26 = vsub.f32 %v4984_v29, %v2607_v4  ;;  %v1827_v4 = vpop.xlane.xlu0 %1826 }
 0x534   :  { %v2601_v59 = vmul.f32 0.6931472, %v3507_v50  ;;  %v2573_v19 = vpop.xlane.xlu1 %2572  ;;  %v2346_v40 = vsel %vm2314_vm10, %v2330_v16, 0.0  ;;  %v3509_v8 = vpop.eup %3508  ;;  %v5939_v16 = vld [vmem:[#allocation24_spill] sm:$0xff] }
 0x535   :  { %3518 = vlog2.f32 %v2573_v19  ;;  %2367 = vadd.xlane.f32.xlu1 %v2346_v40  ;;  %v1847_v2 = vmul.f32 0.6931472, %v3509_v8  ;;  %vm1936_vm15 = vcmp.eq.s32.totalorder %v5919_v9, %v5939_v16  ;;  %v5940_v50 = vld [vmem:[#allocation44_spill] sm:$0xff] }
 0x536   :  { %v2708_v15 = vsub.f32 %v5075_v38, %v2601_v59  ;;  %3520 = vlog2.f32 %v1819_v41  ;;  %v5938_v41 = vld [vmem:[#allocation52_spill] sm:$0xff]  ;;  %vm2316_vm0 = vcmp.eq.s32.totalorder %v5919_v9, %v5940_v50 }
 0x537   :  { %v3511_v11 = vpop.eup %3510  ;;  %vm2695_vm14 = vcmp.eq.s32.totalorder %v5919_v9, %v5938_v41  ;;  %v1952_v10 = vsub.f32 %v4992_v27, %v1847_v2 }
 0x538   :  { %v3513_v20 = vpop.eup %3512  ;;  %v1849_v23 = vmul.f32 0.6931472, %v3511_v11  ;;  %v1821_v17 = vpop.xlane.xlu1 %1820  ;;  %v2724_v62 = vsel %vm2692_vm12, %v2708_v15, 0.0  ;;  %v2727_v29 = vsel %vm2695_vm14, %v2711_v26, 0.0  ;;  %v5942_v11 = vld [vmem:[#allocation47_spill] sm:$0xff]  ;;  %v5943_v26 = vld [vmem:[#allocation17_spill] sm:$0xff] }
 0x539   :  { %3522 = vlog2.f32 %v1821_v17  ;;  %2744 = vadd.xlane.f32.xlu0 %v2724_v62  ;;  %2365 = vadd.xlane.f32.xlu1 %v2345_v12  ;;  %v2226_v18 = vmul.f32 0.6931472, %v3513_v20  ;;  %v1968_v40 = vsel %vm1936_vm15, %v1952_v10, 0.0  ;;  %vm2694_vm2 = vcmp.eq.s32.totalorder %v5919_v9, %v5942_v11  ;;  %v5949_v11 = vld [vmem:[#allocation19_spill] sm:$0xff] }
 0x53a   :  { %3524 = vlog2.f32 %v2198_v31  ;;  %v1953_v38 = vsub.f32 %v5089_v48, %v1849_v23  ;;  %vm1939_vm4 = vcmp.eq.s32.totalorder %v5919_v9, %v5943_v26  ;;  %vm1941_vm9 = vcmp.eq.s32.totalorder %v5919_v9, %v5949_v11  ;;  %v5954_v26 = vld [vmem:[#allocation62_spill] sm:$0xff] }
 0x53b   :  { %v3515_v46 = vpop.eup %3514  ;;  %v2331_v60 = vsub.f32 %v4999_v35, %v2226_v18 }
 0x53c   :  { %v2228_v55 = vmul.f32 0.6931472, %v3515_v46  ;;  %v2200_v49 = vpop.xlane.xlu1 %2199  ;;  %v1969_v57 = vsel %vm1937_vm13, %v1953_v38, 0.0  ;;  %v3517_v47 = vpop.eup %3516 }
 0x53d   :  { %3526 = vlog2.f32 %v2200_v49  ;;  %1992 = vadd.xlane.f32.xlu1 %v1969_v57  ;;  %2750 = vadd.xlane.f32.xlu0 %v2727_v29  ;;  %v2611_v13 = vmul.f32 0.6931472, %v3517_v47  ;;  %v5945_v49 = vld [vmem:[#allocation28_spill] sm:$0xff]  ;;  %v5946_v57 = vld [vmem:[#allocation51_spill] sm:$0xff] }
 0x53e   :  { %v2332_v48 = vsub.f32 %v5103_v0, %v2228_v55  ;;  %3528 = vlog2.f32 %v5411_v24  ;;  %v5941_v0 = vld [vmem:[#allocation40_spill] sm:$0xff]  ;;  %vm1938_vm5 = vcmp.eq.s32.totalorder %v5919_v9, %v5945_v49  ;;  %vm2318_vm6 = vcmp.eq.s32.totalorder %v5919_v9, %v5946_v57  ;;  %v5957_v57 = vld [vmem:[#allocation53_spill] sm:$0xff] }
 0x53f   :  { %v3519_v31 = vpop.eup %3518  ;;  %vm2315_vm1 = vcmp.eq.s32.totalorder %v5919_v9, %v5941_v0  ;;  %v2713_v23 = vsub.f32 %v5006_v14, %v2611_v13  ;;  %vm2698_vm14 = vcmp.eq.s32.totalorder %v5919_v9, %v5957_v57  ;;  %v5972_v57 = vld [vmem:[#allocation23_spill] sm:$0xff] }
 0x540   :  { %v2605_v27 = vmul.f32 0.6931472, %v3519_v31  ;;  %v2577_v59 = vpop.xlane.xlu1 %2576  ;;  %v2348_v19 = vsel %vm2316_vm0, %v2332_v48, 0.0  ;;  %v3521_v8 = vpop.eup %3520  ;;  %v2347_v35 = vsel %vm2315_vm1, %v2331_v60, 0.0 }
 0x541   :  { %3530 = vlog2.f32 %v2577_v59  ;;  %2371 = vadd.xlane.f32.xlu1 %v2348_v19  ;;  %1990 = vadd.xlane.f32.xlu0 %v1968_v40  ;;  %v1851_v61 = vmul.f32 0.6931472, %v3521_v8 }
 0x542   :  { %v2710_v32 = vsub.f32 %v5118_v58, %v2605_v27  ;;  %3532 = vlog2.f32 %v5413_v25  ;;  %v2206_v58 = vpop.xlane.xlu0 %2205  ;;  %v5944_v25 = vld [vmem:[#allocation59_spill] sm:$0xff]  ;;  %v5948_v27 = vld [vmem:[#allocation54_spill] sm:$0xff] }
 0x543   :  { %v3523_v15 = vpop.eup %3522  ;;  %vm2697_vm3 = vcmp.eq.s32.totalorder %v5919_v9, %v5944_v25  ;;  %v1954_v18 = vsub.f32 %v5012_v54, %v1851_v61  ;;  %vm2696_vm8 = vcmp.eq.s32.totalorder %v5919_v9, %v5948_v27  ;;  %v5960_v27 = vld [vmem:[#allocation21_spill] sm:$0xff] }
 0x544   :  { %v3525_v24 = vpop.eup %3524  ;;  %v1853_v12 = vmul.f32 0.6931472, %v3523_v15  ;;  %v1825_v20 = vpop.xlane.xlu1 %1824  ;;  %v2726_v2 = vsel %vm2694_vm2, %v2710_v32, 0.0  ;;  %v2729_v14 = vsel %vm2697_vm3, %v2713_v23, 0.0  ;;  %v5951_v23 = vld [vmem:[#allocation84_spill] sm:$0xff]  ;;  %vm1943_vm15 = vcmp.eq.s32.totalorder %v5919_v9, %v5960_v27  ;;  %v5977_v27 = vld [vmem:[#allocation70_spill] sm:$0xff] }
 0x545   :  { %3534 = vlog2.f32 %v1825_v20  ;;  %2748 = vadd.xlane.f32.xlu0 %v2726_v2  ;;  %2369 = vadd.xlane.f32.xlu1 %v2347_v35  ;;  %v2230_v38 = vmul.f32 0.6931472, %v3525_v24  ;;  %v1970_v16 = vsel %vm1938_vm5, %v1954_v18, 0.0  ;;  %vm1945_vm5 = vcmp.eq.s32.totalorder %v5919_v9, %v5972_v57  ;;  %v5986_v57 = vld [vmem:[#allocation78_spill] sm:$0xff] }
 0x546   :  { %3536 = vlog2.f32 %v5422_v22  ;;  %v1955_v17 = vsub.f32 %v5134_v33, %v1853_v12  ;;  %v1831_v47 = vpop.xlane.xlu0 %1830 }
 0x547   :  { %v3527_v62 = vpop.eup %3526  ;;  %v2333_v29 = vsub.f32 %v5020_v1, %v2230_v38 }
 0x548   :  { %v2232_v46 = vmul.f32 0.6931472, %v3527_v62  ;;  %v2204_v30 = vpop.xlane.xlu1 %2203  ;;  %v1971_v41 = vsel %vm1939_vm4, %v1955_v17, 0.0  ;;  %v3529_v55 = vpop.eup %3528  ;;  %v5952_v17 = vld [vmem:[#allocation31_spill] sm:$0xff] }
 0x549   :  { %3538 = vlog2.f32 %v2204_v30  ;;  %1996 = vadd.xlane.f32.xlu1 %v1971_v41  ;;  %2754 = vadd.xlane.f32.xlu0 %v2729_v14  ;;  %v2615_v10 = vmul.f32 0.6931472, %v3529_v55  ;;  %vm1940_vm11 = vcmp.eq.s32.totalorder %v5919_v9, %v5952_v17  ;;  %v5953_v62 = vld [vmem:[#allocation63_spill] sm:$0xff]  ;;  %v5955_v55 = vld [vmem:[#allocation56_spill] sm:$0xff]  ;;  %v5967_v17 = vld [vmem:[#allocation66_spill] sm:$0xff] }
 0x54a   :  { %v2334_v33 = vsub.f32 %v5146_v56, %v2232_v46  ;;  %3540 = vlog2.f32 %v5430_v28  ;;  %v5947_v56 = vld [vmem:[#allocation50_spill] sm:$0xff]  ;;  %v2210_v32 = vpop.xlane.xlu0 %2209  ;;  %vm2320_vm12 = vcmp.eq.s32.totalorder %v5919_v9, %v5953_v62  ;;  %vm2319_vm13 = vcmp.eq.s32.totalorder %v5919_v9, %v5955_v55  ;;  %v5968_v62 = vld [vmem:[#allocation11_spill] sm:$0xff] }
 0x54b   :  { %v3531_v22 = vpop.eup %3530  ;;  %vm2317_vm7 = vcmp.eq.s32.totalorder %v5919_v9, %v5947_v56  ;;  %v2715_v0 = vsub.f32 %v5027_v53, %v2615_v10  ;;  %v5959_v56 = vld [vmem:[#allocation71_spill] sm:$0xff]  ;;  %vm2321_vm4 = vcmp.eq.s32.totalorder %v5919_v9, %v5967_v17 }
 0x54c   :  { %v2609_v54 = vmul.f32 0.6931472, %v3531_v22  ;;  %v2581_v48 = vpop.xlane.xlu1 %2580  ;;  %v2350_v31 = vsel %vm2318_vm6, %v2334_v33, 0.0  ;;  %v3533_v50 = vpop.eup %3532  ;;  %v2349_v1 = vsel %vm2317_vm7, %v2333_v29, 0.0  ;;  %v5956_v33 = vld [vmem:[#allocation10_spill] sm:$0xff] }
 0x54d   :  { %3542 = vlog2.f32 %v2581_v48  ;;  %2375 = vadd.xlane.f32.xlu1 %v2350_v31  ;;  %1994 = vadd.xlane.f32.xlu0 %v1970_v16  ;;  %v1855_v59 = vmul.f32 0.6931472, %v3533_v50  ;;  %v5958_v16 = vld [vmem:[#allocation48_spill] sm:$0xff] }
 0x54e   :  { %v2712_v60 = vsub.f32 %v5157_v45, %v2609_v54  ;;  %3544 = vlog2.f32 %v1827_v4  ;;  %v5950_v4 = vld [vmem:[#allocation55_spill] sm:$0xff]  ;;  %v2589_v46 = vpop.xlane.xlu0 %2588 }
 0x54f   :  { %v3535_v13 = vpop.eup %3534  ;;  %vm2699_vm10 = vcmp.eq.s32.totalorder %v5919_v9, %v5950_v4  ;;  %v1956_v53 = vsub.f32 %v5033_v43, %v1855_v59 }
 0x550   :  { %v3537_v28 = vpop.eup %3536  ;;  %v1857_v19 = vmul.f32 0.6931472, %v3535_v13  ;;  %v1829_v40 = vpop.xlane.xlu1 %1828  ;;  %v2728_v8 = vsel %vm2696_vm8, %v2712_v60, 0.0  ;;  %v2731_v20 = vsel %vm2699_vm10, %v2715_v0, 0.0  ;;  %v5962_v0 = vld [vmem:[#allocation81_spill] sm:$0xff]  ;;  %vm2324_vm8 = vcmp.eq.s32.totalorder %v5919_v9, %v5977_v27 }
 0x551   :  { %3546 = vlog2.f32 %v1829_v40  ;;  %2752 = vadd.xlane.f32.xlu0 %v2728_v8  ;;  %2373 = vadd.xlane.f32.xlu1 %v2349_v1  ;;  %v2234_v35 = vmul.f32 0.6931472, %v3537_v28  ;;  %v1972_v14 = vsel %vm1940_vm11, %v1956_v53, 0.0  ;;  %v5961_v1 = vld [vmem:[#allocation61_spill] sm:$0xff]  ;;  %vm2822_vm11 = vcmp.eq.s32.totalorder %v5919_v9, 0 }
 0x552   :  { %3548 = vlog2.f32 %v2206_v58  ;;  %v1957_v45 = vsub.f32 %v5168_v51, %v1857_v19  ;;  %vm2701_vm0 = vcmp.eq.s32.totalorder %v5919_v9, %v5961_v1 }
 0x553   :  { %v3539_v15 = vpop.eup %3538  ;;  %v2335_v25 = vsub.f32 %v5954_v26, %v2234_v35  ;;  %v5964_v35 = vld [vmem:[#allocation34_spill] sm:$0xff] }
 0x554   :  { %v2236_v24 = vmul.f32 0.6931472, %v3539_v15  ;;  %v2208_v61 = vpop.xlane.xlu1 %2207  ;;  %v1973_v12 = vsel %vm1941_vm9, %v1957_v45, 0.0  ;;  %v3541_v2 = vpop.eup %3540  ;;  %vm1942_vm1 = vcmp.eq.s32.totalorder %v5919_v9, %v5964_v35 }
 0x555   :  { %3550 = vlog2.f32 %v2208_v61  ;;  %2000 = vadd.xlane.f32.xlu1 %v1973_v12  ;;  %2758 = vadd.xlane.f32.xlu0 %v2731_v20  ;;  %v2619_v38 = vmul.f32 0.6931472, %v3541_v2  ;;  %v2351_v29 = vsel %vm2319_vm13, %v2335_v25, 0.0  ;;  %v5966_v61 = vld [vmem:[#allocation8_spill] sm:$0xff]  ;;  %vm2827_vm13 = vcmp.eq.s32.totalorder %v5919_v9, 2 }
 0x556   :  { %v2336_v51 = vsub.f32 %v5951_v23, %v2236_v24  ;;  %3552 = vlog2.f32 %v1831_v47  ;;  %v5965_v24 = vld [vmem:[#allocation67_spill] sm:$0xff] }
 0x557   :  { %v3543_v58 = vpop.eup %3542  ;;  %v2717_v50 = vsub.f32 %v5958_v16, %v2619_v38  ;;  %vm2322_vm2 = vcmp.eq.s32.totalorder %v5919_v9, %v5965_v24  ;;  %v5969_v38 = vld [vmem:[#allocation57_spill] sm:$0xff] }
 0x558   :  { %v2613_v30 = vmul.f32 0.6931472, %v3543_v58  ;;  %v2585_v43 = vpop.xlane.xlu1 %2584  ;;  %v2352_v41 = vsel %vm2320_vm12, %v2336_v51, 0.0  ;;  %v3545_v18 = vpop.eup %3544  ;;  %vm2700_vm3 = vcmp.eq.s32.totalorder %v5919_v9, %v5969_v38  ;;  %vm2824_vm12 = vcmp.eq.s32.totalorder %v5919_v9, 1 }
 0x559   :  { %3554 = vlog2.f32 %v2585_v43  ;;  %2379 = vadd.xlane.f32.xlu1 %v2352_v41  ;;  %1998 = vadd.xlane.f32.xlu0 %v1972_v14  ;;  %v1859_v47 = vmul.f32 0.6931472, %v3545_v18  ;;  %v2733_v8 = vsel %vm2701_vm0, %v2717_v50, 0.0  ;;  %v5970_v18 = vld [vmem:[#allocation79_spill] sm:$0xff]  ;;  %v5975_v50 = vld [vmem:[#allocation90_spill] sm:$0xff] }
 0x55a   :  { %v2714_v22 = vsub.f32 %v5956_v33, %v2613_v30  ;;  %3556 = vlog2.f32 %v2589_v46  ;;  %v5971_v33 = vld [vmem:[#allocation83_spill] sm:$0xff] }
 0x55b   :  { %v3547_v49 = vpop.eup %3546  ;;  %v1958_v45 = vsub.f32 %v5962_v0, %v1859_v47 }
 0x55c   :  { %v3549_v10 = vpop.eup %3548  ;;  %v1861_v54 = vmul.f32 0.6931472, %v3547_v49  ;;  %v1833_v48 = vpop.xlane.xlu1 %1832  ;;  %v2730_v31 = vsel %vm2698_vm14, %v2714_v22, 0.0  ;;  %vm2830_vm14 = vcmp.eq.s32.totalorder %v5919_v9, 3 }
 0x55d   :  { %3558 = vlog2.f32 %v1833_v48  ;;  %2756 = vadd.xlane.f32.xlu0 %v2730_v31  ;;  %2377 = vadd.xlane.f32.xlu1 %v2351_v29  ;;  %v2238_v28 = vmul.f32 0.6931472, %v3549_v10  ;;  %v1974_v51 = vsel %vm1942_vm1, %v1958_v45, 0.0  ;;  %v5973_v29 = vld [vmem:[#allocation37_spill] sm:$0xff] }
 0x55e   :  { %3560 = vlog2.f32 %v2210_v32  ;;  %v1959_v60 = vsub.f32 %v5959_v56, %v1861_v54  ;;  %v5963_v32 = vld [vmem:[#allocation89_spill] sm:$0xff]  ;;  %vm1944_vm6 = vcmp.eq.s32.totalorder %v5919_v9, %v5973_v29  ;;  %v1403_v29 = vmul.f32 %v5266_v52, %v5986_v57 }
 0x55f   :  { %v3551_v13 = vpop.eup %3550  ;;  %v2337_v12 = vsub.f32 %v5966_v61, %v2238_v28  ;;  %v5974_v31 = vld [vmem:[#allocation69_spill] sm:$0xff] }
 0x560   :  { %v2240_v59 = vmul.f32 0.6931472, %v3551_v13  ;;  %v2212_v19 = vpop.xlane.xlu1 %2211  ;;  %v1975_v40 = vsel %vm1943_vm15, %v1959_v60, 0.0  ;;  %v3553_v15 = vpop.eup %3552  ;;  %v5976_v13 = vld [vmem:[#allocation64_spill] sm:$0xff]  ;;  %v5980_v45 = vld [vmem:[#allocation85_spill] sm:$0xff]  ;;  %vm2833_vm15 = vcmp.eq.s32.totalorder %v5919_v9, 4 }
 0x561   :  { %3562 = vlog2.f32 %v2212_v19  ;;  %2004 = vadd.xlane.f32.xlu1 %v1975_v40  ;;  %2762 = vadd.xlane.f32.xlu0 %v2733_v8  ;;  %v1863_v20 = vmul.f32 0.6931472, %v3553_v15  ;;  %v2353_v46 = vsel %vm2321_vm4, %v2337_v12, 0.0  ;;  %vm2702_vm7 = vcmp.eq.s32.totalorder %v5919_v9, %v5976_v13  ;;  %v5978_v19 = vld [vmem:[#allocation82_spill] sm:$0xff]  ;;  %v5979_v8 = vld [vmem:[#allocation68_spill] sm:$0xff] }
 0x562   :  { %v2338_v11 = vsub.f32 %v5963_v32, %v2240_v59  ;;  %vm2323_vm9 = vcmp.eq.s32.totalorder %v5919_v9, %v5979_v8  ;;  %v5981_v32 = vld [vmem:[#allocation72_spill] sm:$0xff] }
 0x563   :  { %v3555_v4 = vpop.eup %3554  ;;  %v1960_v55 = vsub.f32 %v5970_v18, %v1863_v20  ;;  %vm2703_vm10 = vcmp.eq.s32.totalorder %v5919_v9, %v5981_v32  ;;  %v5983_v18 = vld [vmem:[#allocation13_spill] sm:$0xff]  ;;  %v5991_v32 = vld [vmem:[#allocation86_spill] sm:$0xff] }
 0x564   :  { %v2617_v53 = vmul.f32 0.6931472, %v3555_v4  ;;  %v2591_v2 = vpop.xlane.xlu1 %2590  ;;  %v2354_v23 = vsel %vm2322_vm2, %v2338_v11, 0.0  ;;  %v3557_v58 = vpop.eup %3556 }
 0x565   :  { %3564 = vlog2.f32 %v2591_v2  ;;  %2383 = vadd.xlane.f32.xlu1 %v2354_v23  ;;  %2002 = vadd.xlane.f32.xlu0 %v1974_v51  ;;  %v2621_v43 = vmul.f32 0.6931472, %v3557_v58  ;;  %v1976_v48 = vsel %vm1944_vm6, %v1960_v55, 0.0 }
 0x566   :  { %v2716_v26 = vsub.f32 %v5968_v62, %v2617_v53 }
 0x567   :  { %v3559_v25 = vpop.eup %3558  ;;  %v2718_v16 = vsub.f32 %v5974_v31, %v2621_v43 }
 0x568   :  { %v3561_v30 = vpop.eup %3560  ;;  %v1865_v41 = vmul.f32 0.6931472, %v3559_v25  ;;  %v2732_v14 = vsel %vm2700_vm3, %v2716_v26, 0.0  ;;  %v1979_v61 = vpop.xlane.xlu1 %1978 }
 0x569   :  { %2760 = vadd.xlane.f32.xlu0 %v2732_v14  ;;  %2381 = vadd.xlane.f32.xlu1 %v2353_v46  ;;  %v2242_v10 = vmul.f32 0.6931472, %v3561_v30  ;;  %v2734_v59 = vsel %vm2702_vm7, %v2718_v16, 0.0  ;;  %v5982_v14 = vld [vmem:[#allocation74_spill] sm:$0xff]  ;;  %v2010_v8 = vsub.f32 0.0, %v1979_v61 }
 0x56a   :  { %v1961_v22 = vsub.f32 %v5971_v33, %v1865_v41  ;;  %v1401_v55 = vmul.f32 %v5983_v18, %v5982_v14  ;;  %v5984_v33 = vld [vmem:[#allocation73_spill] sm:$0xff] }
 0x56b   :  { %v3563_v49 = vpop.eup %3562  ;;  %v2339_v40 = vsub.f32 %v5978_v19, %v2242_v10 }
 0x56c   :  { %v2244_v47 = vmul.f32 0.6931472, %v3563_v49  ;;  %v1977_v54 = vsel %vm1945_vm5, %v1961_v22, 0.0  ;;  %v2358_v20 = vpop.xlane.xlu1 %2357  ;;  %v5985_v22 = vld [vmem:[#allocation91_spill] sm:$0xff] }
 0x56d   :  { %2008 = vadd.xlane.f32.xlu1 %v1977_v54  ;;  %2006 = vadd.xlane.f32.xlu0 %v1976_v48  ;;  %v2355_v0 = vsel %vm2323_vm9, %v2339_v40, 0.0  ;;  %v1402_v49 = vmul.f32 %v5985_v22, %v5984_v33 }
 0x56e   :  { %v2340_v56 = vsub.f32 %v5975_v50, %v2244_v47  ;;  %v5987_v50 = vld [vmem:[#allocation76_spill] sm:$0xff] }
 0x56f   :  { %v3565_v60 = vpop.eup %3564  ;;  %v1417_v54 = vadd.f32 %v1402_v49, %v1401_v55 }
 0x570   :  { %v2623_v1 = vmul.f32 0.6931472, %v3565_v60  ;;  %v2356_v28 = vsel %vm2324_vm8, %v2340_v56, 0.0  ;;  %v1981_v4 = vpop.xlane.xlu0 %1980  ;;  %v5527_v2 = vpop.xlane.xlu1 %2736  ;;  %v1404_v56 = vmul.f32 %v5276_v37, %v5987_v50  ;;  %v5988_v60 = vld [vmem:[#allocation88_spill] sm:$0xff] }
 0x571   :  { %2387 = vadd.xlane.f32.xlu1 %v2356_v28  ;;  %2764 = vadd.xlane.f32.xlu0 %v2734_v59  ;;  %v1418_v48 = vadd.f32 %v1417_v54, %v1403_v29  ;;  %v1405_v13 = vmul.f32 %v5286_v5, %v5988_v60  ;;  %v2011_v27 = vsub.f32 0.0, %v1981_v4  ;;  %v5989_v28 = vld [vmem:[#allocation87_spill] sm:$0xff]  ;;  %v2026_v54 = vmul.f32 %v5983_v18, %v2010_v8 }
 0x572   :  { %v2719_v15 = vsub.f32 %v5980_v45, %v2623_v1  ;;  %v1406_v59 = vmul.f32 %v5293_v42, %v5989_v28 }
 0x573   :  { %v1419_v1 = vadd.f32 %v1418_v48, %v1404_v56  ;;  %v2027_v14 = vmul.f32 %v5985_v22, %v2011_v27  ;;  %v2389_v48 = vsub.f32 0.0, %v2358_v20  ;;  %v2768_v56 = vsub.f32 0.0, %v5527_v2  ;;  %v5993_v27 = vld [vmem:[#allocation96_spill] sm:$0xff] }
 0x574   :  { %v2735_v11 = vsel %vm2703_vm10, %v2719_v15, 0.0  ;;  %v2360_v35 = vpop.xlane.xlu0 %2359  ;;  %v5990_v15 = vld [vmem:[#allocation92_spill] sm:$0xff] }
 0x575   :  { %2385 = vadd.xlane.f32.xlu1 %v2355_v0  ;;  %v1420_v45 = vadd.f32 %v1419_v1, %v1405_v13  ;;  %v2390_v49 = vsub.f32 0.0, %v2360_v35 }
 0x577   :  { %v1421_v33 = vadd.f32 %v1420_v45, %v1406_v59  ;;  %v5994_v59 = vld [vmem:[#allocation98_spill] sm:$0xff]  ;;  %v2406_v8 = vmul.f32 %v5985_v22, %v2390_v49 }
 0x578   :  { %v2739_v24 = vpop.xlane.xlu0 %2738  ;;  %v1409_v20 = vmul.f32 %v5318_v63, %v5994_v59 }
 0x579   :  { %2766 = vadd.xlane.f32.xlu1 %v2735_v11  ;;  %v1407_v11 = vmul.f32 %v5991_v32, %v5990_v15  ;;  %v2769_v4 = vsub.f32 0.0, %v2739_v24  ;;  %v2042_v24 = vadd.f32 %v2027_v14, %v2026_v54 }
 0x57b   :  { %v1422_v50 = vadd.f32 %v1421_v33, %v1407_v11  ;;  %v2784_v11 = vmul.f32 %v5983_v18, %v2768_v56 }
 0x57c   :  { %v5525_v12 = vpop.xlane.xlu0 %2742 }
 0x57d   :  { %v2771_v33 = vsub.f32 0.0, %v5525_v12 }
 0x580   :  { %v1983_v53 = vpop.xlane.xlu0 %1982 }
 0x581   :  { %v2012_v0 = vsub.f32 0.0, %v1983_v53 }
 0x583   :  { %v2028_v61 = vmul.f32 %v5266_v52, %v2012_v0 }
 0x584   :  { %v5529_v23 = vpop.xlane.xlu0 %2361  ;;  %v1985_v51 = vpop.xlane.xlu1 %1984 }
 0x585   :  { %v2013_v55 = vsub.f32 0.0, %v1985_v51  ;;  %v2391_v60 = vsub.f32 0.0, %v5529_v23  ;;  %v5992_v51 = vld [vmem:[#allocation94_spill] sm:$0xff]  ;;  %v2043_v45 = vadd.f32 %v2042_v24, %v2028_v61 }
 0x586   :  { %v1408_v35 = vmul.f32 %v5993_v27, %v5992_v51 }
 0x587   :  { %v2029_v1 = vmul.f32 %v5276_v37, %v2013_v55  ;;  %v2407_v14 = vmul.f32 %v5266_v52, %v2391_v60  ;;  %v5996_v60 = vld [vmem:[#allocation100_spill] sm:$0xff] }
 0x588   :  { %v2741_v58 = vpop.xlane.xlu0 %2740  ;;  %v5531_v17 = vpop.xlane.xlu1 %2363 }
 0x589   :  { %v2770_v13 = vsub.f32 0.0, %v2741_v58  ;;  %v2392_v2 = vsub.f32 0.0, %v5531_v17  ;;  %v2405_v58 = vmul.f32 %v5983_v18, %v2389_v48  ;;  %v1423_v17 = vadd.f32 %v1422_v50, %v1408_v35 }
 0x58a   :  { %v2044_v49 = vadd.f32 %v2043_v45, %v2029_v1 }
 0x58b   :  { %v2786_v55 = vmul.f32 %v5266_v52, %v2770_v13  ;;  %v2421_v54 = vadd.f32 %v2406_v8, %v2405_v58  ;;  %v2408_v61 = vmul.f32 %v5276_v37, %v2392_v2  ;;  %v1424_v56 = vadd.f32 %v1423_v17, %v1409_v20  ;;  %v5995_v52 = vld [vmem:[#allocation99_spill] sm:$0xff] }
 0x58c   :  { %v1411_v13 = vmul.f32 %v5340_v39, %v5996_v60 }
 0x58d   :  { %v2422_v51 = vadd.f32 %v2421_v54, %v2407_v14 }
 0x58f   :  { %v5533_v62 = vpop.xlane.xlu0 %2746  ;;  %v2423_v20 = vadd.f32 %v2422_v51, %v2408_v61 }
 0x593   :  { %v1987_v25 = vpop.xlane.xlu0 %1986 }
 0x594   :  { %v2014_v53 = vsub.f32 0.0, %v1987_v25  ;;  %v2785_v25 = vmul.f32 %v5985_v22, %v2769_v4 }
 0x596   :  { %v2030_v15 = vmul.f32 %v5286_v5, %v2014_v53  ;;  %v2800_v48 = vadd.f32 %v2785_v25, %v2784_v11  ;;  %v2773_v11 = vsub.f32 0.0, %v5533_v62  ;;  %v5998_v62 = vld [vmem:[#allocation102_spill] sm:$0xff] }
 0x597   :  { %v1413_v54 = vmul.f32 %v5354_v3, %v5998_v62 }
 0x598   :  { %v2045_v50 = vadd.f32 %v2044_v49, %v2030_v15  ;;  %v2801_v35 = vadd.f32 %v2800_v48, %v2786_v55  ;;  %v5997_v55 = vld [vmem:[#allocation101_spill] sm:$0xff] }
 0x5be   :  { %v5535_v26 = vpop.xlane.xlu1 %1988 }
 0x5bf   :  { %v2015_v28 = vsub.f32 0.0, %v5535_v26 }
 0x5c1   :  { %v2031_v4 = vmul.f32 %v5293_v42, %v2015_v28 }
 0x5c2   :  { %v5537_v38 = vpop.xlane.xlu1 %2367 }
 0x5c3   :  { %v2046_v1 = vadd.f32 %v2045_v50, %v2031_v4  ;;  %v2394_v8 = vsub.f32 0.0, %v5537_v38 }
 0x5c6   :  { %v5539_v46 = vpop.xlane.xlu1 %2365  ;;  %v5541_v30 = vpop.xlane.xlu0 %2744 }
 0x5c7   :  { %v2393_v22 = vsub.f32 0.0, %v5539_v46  ;;  %v1410_v46 = vmul.f32 %v5331_v44, %v5995_v52 }
 0x5c9   :  { %v2409_v24 = vmul.f32 %v5286_v5, %v2393_v22  ;;  %v1425_v15 = vadd.f32 %v1424_v56, %v1410_v46 }
 0x5ca   :  { %v5543_v43 = vpop.xlane.xlu1 %1992  ;;  %v5545_v41 = vpop.xlane.xlu0 %2750 }
 0x5cb   :  { %v2017_v28 = vsub.f32 0.0, %v5543_v43  ;;  %v1426_v22 = vadd.f32 %v1425_v15, %v1411_v13 }
 0x5cd   :  { %v2033_v38 = vmul.f32 %v5993_v27, %v2017_v28 }
 0x5ce   :  { %v5553_v10 = vpop.xlane.xlu1 %2371  ;;  %v5555_v47 = vpop.xlane.xlu0 %1990 }
 0x5cf   :  { %v2016_v26 = vsub.f32 0.0, %v5555_v47  ;;  %v2772_v47 = vsub.f32 0.0, %v5541_v30  ;;  %v2787_v30 = vmul.f32 %v5276_v37, %v2771_v33  ;;  %v2424_v37 = vadd.f32 %v2423_v20, %v2409_v24 }
 0x5d0   :  { %v2396_v56 = vsub.f32 0.0, %v5553_v10 }
 0x5d1   :  { %v2032_v12 = vmul.f32 %v5991_v32, %v2016_v26  ;;  %v2788_v25 = vmul.f32 %v5286_v5, %v2772_v47  ;;  %v2802_v14 = vadd.f32 %v2801_v35, %v2787_v30  ;;  %v2789_v47 = vmul.f32 %v5293_v42, %v2773_v11 }
 0x5d2   :  { %v5557_v31 = vpop.xlane.xlu1 %2369  ;;  %v5559_v16 = vpop.xlane.xlu0 %2748  ;;  %v2775_v35 = vsub.f32 0.0, %v5545_v41 }
 0x5d3   :  { %v2395_v2 = vsub.f32 0.0, %v5557_v31  ;;  %v2047_v26 = vadd.f32 %v2046_v1, %v2032_v12  ;;  %v2774_v43 = vsub.f32 0.0, %v5559_v16  ;;  %v2410_v31 = vmul.f32 %v5293_v42, %v2394_v8  ;;  %v5999_v12 = vld [vmem:[#allocation46_spill] sm:$0xff] }
 0x5d4   :  { %v2803_v17 = vadd.f32 %v2802_v14, %v2788_v25  ;;  %v1414_v60 = vmul.f32 %v5364_v34, %v5999_v12  ;;  %v2412_v8 = vmul.f32 %v5993_v27, %v2396_v56 }
 0x5d5   :  { %v2411_v33 = vmul.f32 %v5991_v32, %v2395_v2  ;;  %v2048_v48 = vadd.f32 %v2047_v26, %v2033_v38  ;;  %v2425_v52 = vadd.f32 %v2424_v37, %v2410_v31  ;;  %v2790_v46 = vmul.f32 %v5991_v32, %v2774_v43 }
 0x5d6   :  { %v5567_v19 = vpop.xlane.xlu1 %1996  ;;  %v5569_v40 = vpop.xlane.xlu0 %2754  ;;  %v2791_v26 = vmul.f32 %v5993_v27, %v2775_v35 }
 0x5d7   :  { %v2019_v16 = vsub.f32 0.0, %v5567_v19  ;;  %v2426_v24 = vadd.f32 %v2425_v52, %v2411_v33  ;;  %v2804_v19 = vadd.f32 %v2803_v17, %v2789_v47  ;;  %v2777_v31 = vsub.f32 0.0, %v5569_v40 }
 0x5d9   :  { %v2035_v28 = vmul.f32 %v5331_v44, %v2019_v16  ;;  %v2427_v11 = vadd.f32 %v2426_v24, %v2412_v8  ;;  %v2793_v56 = vmul.f32 %v5331_v44, %v2777_v31 }
 0x5da   :  { %v5574_v57 = vpop.xlane.xlu1 %2375  ;;  %v5576_v29 = vpop.xlane.xlu0 %1994 }
 0x5db   :  { %v2018_v59 = vsub.f32 0.0, %v5576_v29  ;;  %v1412_v29 = vmul.f32 %v5348_v21, %v5997_v55  ;;  %v2398_v55 = vsub.f32 0.0, %v5574_v57 }
 0x5dd   :  { %v2034_v5 = vmul.f32 %v5318_v63, %v2018_v59  ;;  %v1427_v50 = vadd.f32 %v1426_v22, %v1412_v29  ;;  %v6000_v59 = vld [vmem:[#allocation9_spill] sm:$0xff] }
 0x5de   :  { %v5591_v0 = vpop.xlane.xlu1 %2373  ;;  %v5593_v23 = vpop.xlane.xlu0 %2752  ;;  %v1415_v20 = vmul.f32 %v5379_v7, %v6000_v59 }
 0x5df   :  { %v2049_v13 = vadd.f32 %v2048_v48, %v2034_v5  ;;  %v2397_v51 = vsub.f32 0.0, %v5591_v0  ;;  %v2776_v30 = vsub.f32 0.0, %v5593_v23  ;;  %v1428_v10 = vadd.f32 %v1427_v50, %v1413_v54 }
 0x5e0   :  { %v2805_v0 = vadd.f32 %v2804_v19, %v2790_v46 }
 0x5e1   :  { %v1429_v25 = vadd.f32 %v1428_v10, %v1414_v60  ;;  %v2413_v41 = vmul.f32 %v5318_v63, %v2397_v51  ;;  %v2050_v23 = vadd.f32 %v2049_v13, %v2035_v28  ;;  %v2792_v37 = vmul.f32 %v5318_v63, %v2776_v30 }
 0x5e2   :  { %v5606_v53 = vpop.xlane.xlu1 %2000  ;;  %v5608_v18 = vpop.xlane.xlu0 %2758 }
 0x5e3   :  { %v2021_v2 = vsub.f32 0.0, %v5606_v53  ;;  %v1430_v22 = vadd.f32 %v1429_v25, %v1415_v20  ;;  %v2806_v53 = vadd.f32 %v2805_v0, %v2791_v26  ;;  %v2428_v33 = vadd.f32 %v2427_v11, %v2413_v41 }
 0x5e4   :  { %v2779_v60 = vsub.f32 0.0, %v5608_v18 }
 0x5e5   :  { %v2037_v62 = vmul.f32 %v5348_v21, %v2021_v2  ;;  %v2807_v16 = vadd.f32 %v2806_v53, %v2792_v37 }
 0x5e6   :  { %v5622_v58 = vpop.xlane.xlu1 %2379  ;;  %v1999_v45 = vpop.xlane.xlu0 %1998  ;;  %v2795_v18 = vmul.f32 %v5348_v21, %v2779_v60 }
 0x5e7   :  { %v2020_v61 = vsub.f32 0.0, %v1999_v45  ;;  %v6001_v45 = vld [vmem:[#allocation12_spill] sm:$0xff]  ;;  %v2808_v13 = vadd.f32 %v2807_v16, %v2793_v56 }
 0x5e8   :  { %v1416_v15 = vmul.f32 %v5406_v6, %v6001_v45  ;;  %v1678_v45 = vrot.slane %v5409_v36, 4 }
 0x5e9   :  { %v2036_v32 = vmul.f32 %v5340_v39, %v2020_v61  ;;  %v2414_v61 = vmul.f32 %v5331_v44, %v2398_v55 }
 0x5ea   :  { %v2378_v49 = vpop.xlane.xlu1 %2377  ;;  %v2757_v4 = vpop.xlane.xlu0 %2756  ;;  %v1431_v54 = vadd.f32 %v1430_v22, %v1416_v15  ;;  %v1679_v22 = vadd.f32 %v1678_v45, %v5409_v36 }
 0x5eb   :  { %v2051_v29 = vadd.f32 %v2050_v23, %v2036_v32  ;;  %v2399_v38 = vsub.f32 0.0, %v2378_v49  ;;  %v2778_v17 = vsub.f32 0.0, %v2757_v4  ;;  %v2400_v4 = vsub.f32 0.0, %v5622_v58 }
 0x5ec   :  { %v2429_v52 = vadd.f32 %v2428_v33, %v2414_v61  ;;  %v1432_v12 = vrot.slane %v1431_v54, 4 }
 0x5ed   :  { %v2415_v57 = vmul.f32 %v5340_v39, %v2399_v38  ;;  %v2052_v47 = vadd.f32 %v2051_v29, %v2037_v62  ;;  %v2794_v40 = vmul.f32 %v5340_v39, %v2778_v17  ;;  %v2416_v39 = vmul.f32 %v5348_v21, %v2400_v4 }
 0x5ee   :  { %v2005_v1 = vpop.xlane.xlu1 %2004  ;;  %v5643_v42 = vpop.xlane.xlu0 %2762  ;;  %v1433_v59 = vadd.f32 %v1432_v12, %v1431_v54 }
 0x5ef   :  { %v2023_v49 = vsub.f32 0.0, %v2005_v1  ;;  %v2430_v19 = vadd.f32 %v2429_v52, %v2415_v57  ;;  %v2809_v44 = vadd.f32 %v2808_v13, %v2794_v40  ;;  %v2781_v15 = vsub.f32 0.0, %v5643_v42 }
 0x5f0   :  { %v1434_v55 = vrot.slane %v1433_v59, 2  ;;  %v1680_v57 = vrot.slane %v1679_v22, 2 }
 0x5f1   :  { %v2039_v30 = vmul.f32 %v5364_v34, %v2023_v49  ;;  %v2431_v41 = vadd.f32 %v2430_v19, %v2416_v39  ;;  %v2810_v26 = vadd.f32 %v2809_v44, %v2795_v18  ;;  %v2797_v31 = vmul.f32 %v5364_v34, %v2781_v15 }
 0x5f2   :  { %v2384_v14 = vpop.xlane.xlu1 %2383  ;;  %v2003_v43 = vpop.xlane.xlu0 %2002  ;;  %v1435_v62 = vadd.f32 %v1434_v55, %v1433_v59 }
 0x5f3   :  { %v2022_v5 = vsub.f32 0.0, %v2003_v43  ;;  %v2402_v25 = vsub.f32 0.0, %v2384_v14 }
 0x5f4   :  { %v1436_v56 = vrot.slane %v1435_v62, 1 }
 0x5f5   :  { %v2038_v27 = vmul.f32 %v5354_v3, %v2022_v5 }
 0x5f6   :  { %v2382_v63 = vpop.xlane.xlu1 %2381  ;;  %v2761_v48 = vpop.xlane.xlu0 %2760  ;;  %v1437_v60 = vadd.f32 %v1436_v56, %v1435_v62 }
 0x5f7   :  { %v2053_v46 = vadd.f32 %v2052_v47, %v2038_v27  ;;  %v2401_v50 = vsub.f32 0.0, %v2382_v63  ;;  %v2780_v51 = vsub.f32 0.0, %v2761_v48 }
 0x5f9   :  { %v2417_v58 = vmul.f32 %v5354_v3, %v2401_v50  ;;  %v2054_v28 = vadd.f32 %v2053_v46, %v2039_v30  ;;  %v2796_v20 = vmul.f32 %v5354_v3, %v2780_v51  ;;  %v2418_v3 = vmul.f32 %v5364_v34, %v2402_v25 }
 0x5fa   :  { %v2009_v35 = vpop.xlane.xlu1 %2008  ;;  %v2007_v24 = vpop.xlane.xlu0 %2006 }
 0x5fb   :  { %v2025_v1 = vsub.f32 0.0, %v2009_v35  ;;  %v2024_v10 = vsub.f32 0.0, %v2007_v24  ;;  %v2432_v11 = vadd.f32 %v2431_v41, %v2417_v58  ;;  %v2811_v29 = vadd.f32 %v2810_v26, %v2796_v20 }
 0x5fd   :  { %v2040_v32 = vmul.f32 %v5379_v7, %v2024_v10  ;;  %v2041_v2 = vmul.f32 %v5406_v6, %v2025_v1  ;;  %v2433_v33 = vadd.f32 %v2432_v11, %v2418_v3  ;;  %v2812_v27 = vadd.f32 %v2811_v29, %v2797_v31 }
 0x5fe   :  { %v2388_v8 = vpop.xlane.xlu1 %2387  ;;  %v2765_v0 = vpop.xlane.xlu0 %2764  ;;  %v1438_v1 = vmul.f32 0.03125, %v1437_v60 }
 0x5ff   :  { %v2055_v23 = vadd.f32 %v2054_v28, %v2040_v32  ;;  %v2782_v43 = vsub.f32 0.0, %v2765_v0  ;;  %v2404_v5 = vsub.f32 0.0, %v2388_v8 }
 0x600   :  { %v2825_v18 = vsel %vm2824_vm12, %v1438_v1, 0.0 }
 0x601   :  { %v2056_v37 = vadd.f32 %v2055_v23, %v2041_v2  ;;  %v2798_v17 = vmul.f32 %v5379_v7, %v2782_v43  ;;  %v2420_v63 = vmul.f32 %v5406_v6, %v2404_v5 }
 0x602   :  { %v2386_v21 = vpop.xlane.xlu1 %2385 }
 0x603   :  { %v2057_v38 = vrot.slane %v2056_v37, 4  ;;  %v2403_v14 = vsub.f32 0.0, %v2386_v21  ;;  %v2813_v47 = vadd.f32 %v2812_v27, %v2798_v17 }
 0x605   :  { %v2058_v53 = vadd.f32 %v2057_v38, %v2056_v37  ;;  %v2419_v42 = vmul.f32 %v5379_v7, %v2403_v14  ;;  %v1681_v7 = vadd.f32 %v1680_v57, %v1679_v22 }
 0x606   :  { %v2767_v54 = vpop.xlane.xlu1 %2766 }
 0x607   :  { %v2059_v16 = vrot.slane %v2058_v53, 2  ;;  %v2434_v48 = vadd.f32 %v2433_v33, %v2419_v42  ;;  %v2783_v61 = vsub.f32 0.0, %v2767_v54  ;;  %v1682_v19 = vrot.slane %v1681_v7, 1 }
 0x609   :  { %v2060_v49 = vadd.f32 %v2059_v16, %v2058_v53  ;;  %v2435_v36 = vadd.f32 %v2434_v48, %v2420_v63  ;;  %v2799_v34 = vmul.f32 %v5406_v6, %v2783_v61  ;;  %v1683_v44 = vadd.f32 %v1682_v19, %v1681_v7 }
 0x60b   :  { %v2061_v40 = vrot.slane %v2060_v49, 1  ;;  %v2436_v4 = vrot.slane %v2435_v36, 4  ;;  %v2814_v52 = vadd.f32 %v2813_v47, %v2799_v34  ;;  %v1684_v8 = vmul.f32 0.03125, %v1683_v44 }
 0x60d   :  { %v2437_v46 = vadd.f32 %v2436_v4, %v2435_v36  ;;  %v2815_v50 = vrot.slane %v2814_v52, 4  ;;  %v2062_v12 = vadd.f32 %v2061_v40, %v2060_v49  ;;  %v2834_v45 = vsel %vm2833_vm15, %v1684_v8, 0.0 }
 0x60f   :  { %v2438_v13 = vrot.slane %v2437_v46, 2  ;;  %v2816_v51 = vadd.f32 %v2815_v50, %v2814_v52  ;;  %v2063_v30 = vmul.f32 0.125, %v2062_v12 }
 0x611   :  { %v2439_v35 = vadd.f32 %v2438_v13, %v2437_v46  ;;  %v2817_v24 = vrot.slane %v2816_v51, 2  ;;  %v2823_v28 = vsel %vm2822_vm11, %v2063_v30, 0.0 }
 0x612   :  { %v2826_v20 = vadd.f32 %v2825_v18, %v2823_v28 }
 0x613   :  { %v2818_v10 = vadd.f32 %v2817_v24, %v2816_v51  ;;  %v2440_v6 = vrot.slane %v2439_v35, 1 }
 0x615   :  { %v2441_v39 = vadd.f32 %v2440_v6, %v2439_v35  ;;  %v2819_v58 = vrot.slane %v2818_v10, 1 }
 0x617   :  { %v2442_v32 = vmul.f32 0.125, %v2441_v39  ;;  %v2820_v59 = vadd.f32 %v2819_v58, %v2818_v10 }
 0x619   :  { %v2821_v0 = vmul.f32 0.125, %v2820_v59  ;;  %v2828_v25 = vsel %vm2827_vm13, %v2442_v32, 0.0 }
 0x61a   :  { %v2829_v41 = vadd.f32 %v2828_v25, %v2826_v20 }
 0x61b   :  { %v2831_v2 = vsel %vm2830_vm14, %v2821_v0, 0.0 }
 0x61c   :  { %v2832_v23 = vadd.f32 %v2831_v2, %v2829_v41 }
 0x61e   :  { %v2835_v15 = vadd.f32 %v2834_v45, %v2832_v23 }
 0x620   :  { %2836 = vst [vmem:[#allocation4] sm:$0x1] %v2835_v15 }
 0x621   :  { %3586 = shalt.err (!%p3583_p4)
}
 0x622   :  { %s3587_s10 = scalar_lea.hbm %s5705_s6, 16 }
 0x623   :  { %p3588_p5 = scmp.ne.s32.totalorder %s5705_s6, %s3587_s10  ;;  %p3591_p6 = scmp.lt.u32.totalorder %s3587_s10, %s5705_s6 }
 0x625   :  { %p3593_p7 = pnand %p3591_p6, %p3588_p5 }
 0x627   :  { %3596 = shalt.err (!%p3593_p7)
}
 0x628   :  { %2846 = dma.vmem_to_hbm [thread:$0]  %s2844_s29, 16, %s5705_s6, [#allocation5]  }
 0x629   :  { %3597 = dma.done.wait [#allocation5], 16  }
 0x62a   :  { %3598 = vsyncadd [#allocation5], 4294967280 }
 0x62b   :  { %2850 = vsyncpa [#allocation5], 1 }

</bundles_post_ra>
